<compile_context>
chip_gen: v7x
topology: tpu7x:2x2x1
jax: 0.10.0
libtpu: 0.0.40
codegen_flags: <defaults>
</compile_context>

<pallas_src>
import functools

import jax
import jax.numpy as jnp
from jax.experimental import pallas as pl
from jax.experimental.pallas import tpu as pltpu


# ---------------------------------------------------------------------------
# Fused attention kernel: one grid step == `batch_block` batch elements.
# ---------------------------------------------------------------------------
def _attention_kernel(x_ref, wqkv_ref, wo_ref, bo_ref, o_ref,
                      qkv_scr, head_scr, *, batch_block, seq, heads, dim_head,
                      scale):
    BB, N = batch_block, seq
    inner = heads * dim_head
    D = x_ref.shape[-1]

    # --- Fused QKV projection: (BB*N, D) @ (D, 3*inner), bf16 ops, f32 acc.
    #     (BB, N, D) -> (BB*N, D) collapses leading dims only: layout-free.
    x2d = x_ref[...].reshape(BB * N, D).astype(jnp.bfloat16)
    qkv = jnp.dot(x2d, wqkv_ref[...], preferred_element_type=jnp.float32)
    qkv_scr[...] = qkv.astype(jnp.bfloat16)       # park in VMEM scratch

    # --- Per-(batch, head) attention. q/k/v are sliced straight from the
    #     scratch ref so the full qkv slab never stays live in vregs.
    for b in range(BB):
        r0 = b * N
        for h in range(heads):
            c = h * dim_head
            q = qkv_scr[r0:r0 + N, c:c + dim_head]                        # bf16
            k = qkv_scr[r0:r0 + N, inner + c:inner + c + dim_head]        # bf16
            v = qkv_scr[r0:r0 + N, 2 * inner + c:2 * inner + c + dim_head]

            # scores = q @ k^T * scale (contract last dims; f32 accumulate).
            s = jax.lax.dot_general(q, k, (((1,), (1,)), ((), ())),
                                    preferred_element_type=jnp.float32)
            s = s * scale

            # Max-stabilized softmax in f32; normalization deferred past p@v.
            s = s - jnp.max(s, axis=-1, keepdims=True)
            p = jnp.exp(s)
            denom = jnp.sum(p, axis=-1, keepdims=True)                   # (N,1)

            pv = jnp.dot(p.astype(jnp.bfloat16), v,
                         preferred_element_type=jnp.float32)             # (N,dh)
            pv = pv * pl.reciprocal(denom, approx=True)   # EUP slot, ~free

            head_scr[r0:r0 + N, c:c + dim_head] = pv.astype(jnp.bfloat16)

    # --- Output projection + bias on the f32 accumulator, lane-dense store.
    y = jnp.dot(head_scr[...], wo_ref[...], preferred_element_type=jnp.float32)
    y = y + bo_ref[...].astype(jnp.float32)
    o_ref[...] = y.reshape(BB, N, D).astype(o_ref.dtype)


def attention_pallas(x, w_qkv, w_out, b_out, *, heads, dim_head,
                     batch_block=None):
    """x: (B, N, D). w_qkv: (D, 3*heads*dim_head). w_out: (heads*dim_head, D).
    b_out: (D,). Returns (B, N, D)."""
    B, N, D = x.shape
    inner = heads * dim_head
    assert w_qkv.shape == (D, 3 * inner)
    assert w_out.shape == (inner, D)
    assert b_out.shape == (D,)
    assert N % 8 == 0 and D % 128 == 0, "demo requires TPU-tileable N, D"

    # Two batch elements per grid step -> M = 2N rows for the projection
    # matmuls (fills the 256-wide MXU on v6e/v7x); still "parallel" over grid.
    if batch_block is None:
        batch_block = 2 if (B % 2 == 0 and B >= 2) else 1
    assert B % batch_block == 0

    scale = float(dim_head) ** -0.5
    kernel = functools.partial(_attention_kernel, batch_block=batch_block,
                               seq=N, heads=heads, dim_head=dim_head,
                               scale=scale)

    # Weights live in HBM / VMEM as bf16 (MXU-native), bias stays f32.
    w_qkv_bf = w_qkv.astype(jnp.bfloat16)
    w_out_bf = w_out.astype(jnp.bfloat16)
    b_out_2d = b_out.reshape(1, D).astype(jnp.float32)

    return pl.pallas_call(
        kernel,
        out_shape=jax.ShapeDtypeStruct((B, N, D), x.dtype),
        grid_spec=pltpu.PrefetchScalarGridSpec(
            num_scalar_prefetch=0,
            grid=(B // batch_block,),
            in_specs=[
                pl.BlockSpec((batch_block, N, D), lambda b: (b, 0, 0)),  # x
                pl.BlockSpec((D, 3 * inner), lambda b: (0, 0)),          # W_qkv
                pl.BlockSpec((inner, D), lambda b: (0, 0)),              # W_out
                pl.BlockSpec((1, D), lambda b: (0, 0)),                  # b_out
            ],
            out_specs=pl.BlockSpec((batch_block, N, D), lambda b: (b, 0, 0)),
            scratch_shapes=[
                pltpu.VMEM((batch_block * N, 3 * inner), jnp.bfloat16),  # qkv
                pltpu.VMEM((batch_block * N, inner), jnp.bfloat16),      # heads
            ],
        ),
        compiler_params=pltpu.CompilerParams(
            dimension_semantics=("parallel",),
            vmem_limit_bytes=32 * 1024 * 1024,
        ),
    )(x, w_qkv_bf, w_out_bf, b_out_2d)


# ---------------------------------------------------------------------------
# Pure-JAX reference (mirrors the PyTorch module, f32 throughout)
# ---------------------------------------------------------------------------
def attention_ref(x, w_qkv, w_out, b_out, *, heads, dim_head):
    B, N, D = x.shape
    inner = heads * dim_head
    qkv = x @ w_qkv                                          # (B, N, 3*inner)
    q, k, v = jnp.split(qkv, 3, axis=-1)

    def to_heads(t):
        return t.reshape(B, N, heads, dim_head).transpose(0, 2, 1, 3)

    q, k, v = to_heads(q), to_heads(k), to_heads(v)          # (B, H, N, dh)
    s = jnp.einsum('bhnd,bhmd->bhnm', q, k) * (float(dim_head) ** -0.5)
    p = jax.nn.softmax(s, axis=-1)
    o = jnp.einsum('bhnm,bhmd->bhnd', p, v)                  # (B, H, N, dh)
    o = o.transpose(0, 2, 1, 3).reshape(B, N, inner)
    return o @ w_out + b_out


if __name__ == "__main__":
    key = jax.random.PRNGKey(0)
    B, N, D = 4, 128, 128          # batch, tokens, dim (lane-dense)
    heads, dim_head = 2, 64        # inner_dim = 128 -> project_out = True
    inner = heads * dim_head

    kx, kqkv, ko, kb = jax.random.split(key, 4)
    x = jax.random.normal(kx, (B, N, D), jnp.float32)
    w_qkv = jax.random.normal(kqkv, (D, 3 * inner), jnp.float32) / jnp.sqrt(D)
    w_out = jax.random.normal(ko, (inner, D), jnp.float32) / jnp.sqrt(inner)
    b_out = 0.01 * jax.random.normal(kb, (D,), jnp.float32)

    out = attention_pallas(x, w_qkv, w_out, b_out, heads=heads,
                           dim_head=dim_head)
    out = jax.block_until_ready(out)

    ref = attention_ref(x, w_qkv, w_out, b_out, heads=heads, dim_head=dim_head)

    assert out.shape == (B, N, D)
    max_err = float(jnp.max(jnp.abs(out - ref)))
    # Tolerance accounts for bf16 MXU operands (f32 accumulate) vs f32 ref.
    assert jnp.allclose(out, ref, atol=3e-2, rtol=3e-2), f"mismatch: {max_err}"

    print("KERNEL_OK")
</pallas_src>

<mosaic_0001>
module attributes {stable_mosaic.version = 11 : i64} {
  func.func @_attention_kernel(%arg0: i32, %arg1: memref<2x128x128xf32, #tpu.memory_space<vmem>>, %arg2: memref<128x384xbf16, #tpu.memory_space<vmem>>, %arg3: memref<128x128xbf16, #tpu.memory_space<vmem>>, %arg4: memref<1x128xf32, #tpu.memory_space<vmem>>, %arg5: memref<2x128x128xf32, #tpu.memory_space<vmem>>, %arg6: memref<256x384xbf16, #tpu.memory_space<vmem>>, %arg7: memref<256x128xbf16, #tpu.memory_space<vmem>>) attributes {dimension_semantics = [#tpu.dimension_semantics<parallel>], iteration_bounds = array<i64: 2>, scalar_prefetch = 0 : i64, scratch_operands = 2 : i64, tpu.core_type = #tpu.core_type<tc>, window_params = [{transform_indices = @transform_0, window_bounds = array<i64: 2, 128, 128>}, {pipeline_mode = #tpu.pipeline_mode<synchronous>, transform_indices = @transform_1, window_bounds = array<i64: 128, 384>}, {pipeline_mode = #tpu.pipeline_mode<synchronous>, transform_indices = @transform_2, window_bounds = array<i64: 128, 128>}, {pipeline_mode = #tpu.pipeline_mode<synchronous>, transform_indices = @transform_3, window_bounds = array<i64: 1, 128>}, {transform_indices = @transform_4, window_bounds = array<i64: 2, 128, 128>}]} {
    %c0 = arith.constant 0 : index
    %c0_0 = arith.constant 0 : index
    %c0_1 = arith.constant 0 : index
    %0 = vector.load %arg1[%c0, %c0_0, %c0_1] : memref<2x128x128xf32, #tpu.memory_space<vmem>>, vector<2x128x128xf32>
    %1 = vector.shape_cast %0 : vector<2x128x128xf32> to vector<256x128xf32>
    %2 = arith.truncf %1 : vector<256x128xf32> to vector<256x128xbf16>
    %c0_2 = arith.constant 0 : index
    %c0_3 = arith.constant 0 : index
    %3 = vector.load %arg2[%c0_2, %c0_3] : memref<128x384xbf16, #tpu.memory_space<vmem>>, vector<128x384xbf16>
    %cst = arith.constant dense<0.000000e+00> : vector<256x384xf32>
    %4 = tpu.matmul %2, %3, %cst {dimension_numbers = #tpu.dot_dimension_numbers<[1], [0], [0], [1], [0, 0, 1, 1], [], []>} : vector<256x128xbf16>, vector<128x384xbf16>, vector<256x384xf32> -> vector<256x384xf32>
    %5 = arith.truncf %4 : vector<256x384xf32> to vector<256x384xbf16>
    %c0_4 = arith.constant 0 : index
    %c0_5 = arith.constant 0 : index
    %6 = vector.load %arg6[%c0_4, %c0_5] : memref<256x384xbf16, #tpu.memory_space<vmem>>, vector<256x384xbf16>
    tpu.vector_store %arg6[%c0_4, %c0_5], %5 {strides = array<i32>} : memref<256x384xbf16, #tpu.memory_space<vmem>>, vector<256x384xbf16>,
    %c0_6 = arith.constant 0 : index
    %c0_7 = arith.constant 0 : index
    %7 = vector.load %arg6[%c0_6, %c0_7] : memref<256x384xbf16, #tpu.memory_space<vmem>>, vector<128x64xbf16>
    %c0_8 = arith.constant 0 : index
    %c128 = arith.constant 128 : index
    %8 = vector.load %arg6[%c0_8, %c128] : memref<256x384xbf16, #tpu.memory_space<vmem>>, vector<128x64xbf16>
    %c0_9 = arith.constant 0 : index
    %c256 = arith.constant 256 : index
    %9 = vector.load %arg6[%c0_9, %c256] : memref<256x384xbf16, #tpu.memory_space<vmem>>, vector<128x64xbf16>
    %cst_10 = arith.constant dense<0.000000e+00> : vector<128x128xf32>
    %10 = tpu.matmul %7, %8, %cst_10 {dimension_numbers = #tpu.dot_dimension_numbers<[1], [1], [0], [0], [0, 0, 1, 0], [], []>} : vector<128x64xbf16>, vector<128x64xbf16>, vector<128x128xf32> -> vector<128x128xf32>
    %cst_11 = arith.constant 1.250000e-01 : f32
    %11 = vector.broadcast %cst_11 : f32 to vector<128x128xf32>
    %12 = arith.mulf %10, %11 : vector<128x128xf32>
    %cst_12 = arith.constant dense<0xFF800000> : vector<128xf32>
    %13 = vector.multi_reduction <maximumf>, %12, %cst_12 [1] : vector<128x128xf32> to vector<128xf32>
    %14 = vector.shape_cast %13 : vector<128xf32> to vector<128x1xf32>
    %15 = vector.broadcast %14 : vector<128x1xf32> to vector<128x128xf32>
    %16 = arith.subf %12, %15 : vector<128x128xf32>
    %17 = math.exp %16 : vector<128x128xf32>
    %cst_13 = arith.constant dense<0.000000e+00> : vector<128xf32>
    %18 = vector.multi_reduction <add>, %17, %cst_13 [1] : vector<128x128xf32> to vector<128xf32>
    %19 = vector.shape_cast %18 : vector<128xf32> to vector<128x1xf32>
    %20 = arith.truncf %17 : vector<128x128xf32> to vector<128x128xbf16>
    %cst_14 = arith.constant dense<0.000000e+00> : vector<128x64xf32>
    %21 = tpu.matmul %20, %9, %cst_14 {dimension_numbers = #tpu.dot_dimension_numbers<[1], [0], [0], [1], [0, 0, 1, 1], [], []>} : vector<128x128xbf16>, vector<128x64xbf16>, vector<128x64xf32> -> vector<128x64xf32>
    %22 = tpu.reciprocal %19 {approx = true} : vector<128x1xf32> -> vector<128x1xf32>
    %23 = vector.broadcast %22 : vector<128x1xf32> to vector<128x64xf32>
    %24 = arith.mulf %21, %23 : vector<128x64xf32>
    %25 = arith.truncf %24 : vector<128x64xf32> to vector<128x64xbf16>
    %c0_15 = arith.constant 0 : index
    %c0_16 = arith.constant 0 : index
    %26 = vector.load %arg7[%c0_15, %c0_16] : memref<256x128xbf16, #tpu.memory_space<vmem>>, vector<128x64xbf16>
    tpu.vector_store %arg7[%c0_15, %c0_16], %25 {strides = array<i32>} : memref<256x128xbf16, #tpu.memory_space<vmem>>, vector<128x64xbf16>,
    %c0_17 = arith.constant 0 : index
    %c64 = arith.constant 64 : index
    %27 = vector.load %arg6[%c0_17, %c64] : memref<256x384xbf16, #tpu.memory_space<vmem>>, vector<128x64xbf16>
    %c0_18 = arith.constant 0 : index
    %c192 = arith.constant 192 : index
    %28 = vector.load %arg6[%c0_18, %c192] : memref<256x384xbf16, #tpu.memory_space<vmem>>, vector<128x64xbf16>
    %c0_19 = arith.constant 0 : index
    %c320 = arith.constant 320 : index
    %29 = vector.load %arg6[%c0_19, %c320] : memref<256x384xbf16, #tpu.memory_space<vmem>>, vector<128x64xbf16>
    %cst_20 = arith.constant dense<0.000000e+00> : vector<128x128xf32>
    %30 = tpu.matmul %27, %28, %cst_20 {dimension_numbers = #tpu.dot_dimension_numbers<[1], [1], [0], [0], [0, 0, 1, 0], [], []>} : vector<128x64xbf16>, vector<128x64xbf16>, vector<128x128xf32> -> vector<128x128xf32>
    %cst_21 = arith.constant 1.250000e-01 : f32
    %31 = vector.broadcast %cst_21 : f32 to vector<128x128xf32>
    %32 = arith.mulf %30, %31 : vector<128x128xf32>
    %cst_22 = arith.constant dense<0xFF800000> : vector<128xf32>
    %33 = vector.multi_reduction <maximumf>, %32, %cst_22 [1] : vector<128x128xf32> to vector<128xf32>
    %34 = vector.shape_cast %33 : vector<128xf32> to vector<128x1xf32>
    %35 = vector.broadcast %34 : vector<128x1xf32> to vector<128x128xf32>
    %36 = arith.subf %32, %35 : vector<128x128xf32>
    %37 = math.exp %36 : vector<128x128xf32>
    %cst_23 = arith.constant dense<0.000000e+00> : vector<128xf32>
    %38 = vector.multi_reduction <add>, %37, %cst_23 [1] : vector<128x128xf32> to vector<128xf32>
    %39 = vector.shape_cast %38 : vector<128xf32> to vector<128x1xf32>
    %40 = arith.truncf %37 : vector<128x128xf32> to vector<128x128xbf16>
    %cst_24 = arith.constant dense<0.000000e+00> : vector<128x64xf32>
    %41 = tpu.matmul %40, %29, %cst_24 {dimension_numbers = #tpu.dot_dimension_numbers<[1], [0], [0], [1], [0, 0, 1, 1], [], []>} : vector<128x128xbf16>, vector<128x64xbf16>, vector<128x64xf32> -> vector<128x64xf32>
    %42 = tpu.reciprocal %39 {approx = true} : vector<128x1xf32> -> vector<128x1xf32>
    %43 = vector.broadcast %42 : vector<128x1xf32> to vector<128x64xf32>
    %44 = arith.mulf %41, %43 : vector<128x64xf32>
    %45 = arith.truncf %44 : vector<128x64xf32> to vector<128x64xbf16>
    %c0_25 = arith.constant 0 : index
    %c64_26 = arith.constant 64 : index
    %46 = vector.load %arg7[%c0_25, %c64_26] : memref<256x128xbf16, #tpu.memory_space<vmem>>, vector<128x64xbf16>
    tpu.vector_store %arg7[%c0_25, %c64_26], %45 {strides = array<i32>} : memref<256x128xbf16, #tpu.memory_space<vmem>>, vector<128x64xbf16>,
    %c128_27 = arith.constant 128 : index
    %c0_28 = arith.constant 0 : index
    %47 = vector.load %arg6[%c128_27, %c0_28] : memref<256x384xbf16, #tpu.memory_space<vmem>>, vector<128x64xbf16>
    %c128_29 = arith.constant 128 : index
    %c128_30 = arith.constant 128 : index
    %48 = vector.load %arg6[%c128_29, %c128_30] : memref<256x384xbf16, #tpu.memory_space<vmem>>, vector<128x64xbf16>
    %c128_31 = arith.constant 128 : index
    %c256_32 = arith.constant 256 : index
    %49 = vector.load %arg6[%c128_31, %c256_32] : memref<256x384xbf16, #tpu.memory_space<vmem>>, vector<128x64xbf16>
    %cst_33 = arith.constant dense<0.000000e+00> : vector<128x128xf32>
    %50 = tpu.matmul %47, %48, %cst_33 {dimension_numbers = #tpu.dot_dimension_numbers<[1], [1], [0], [0], [0, 0, 1, 0], [], []>} : vector<128x64xbf16>, vector<128x64xbf16>, vector<128x128xf32> -> vector<128x128xf32>
    %cst_34 = arith.constant 1.250000e-01 : f32
    %51 = vector.broadcast %cst_34 : f32 to vector<128x128xf32>
    %52 = arith.mulf %50, %51 : vector<128x128xf32>
    %cst_35 = arith.constant dense<0xFF800000> : vector<128xf32>
    %53 = vector.multi_reduction <maximumf>, %52, %cst_35 [1] : vector<128x128xf32> to vector<128xf32>
    %54 = vector.shape_cast %53 : vector<128xf32> to vector<128x1xf32>
    %55 = vector.broadcast %54 : vector<128x1xf32> to vector<128x128xf32>
    %56 = arith.subf %52, %55 : vector<128x128xf32>
    %57 = math.exp %56 : vector<128x128xf32>
    %cst_36 = arith.constant dense<0.000000e+00> : vector<128xf32>
    %58 = vector.multi_reduction <add>, %57, %cst_36 [1] : vector<128x128xf32> to vector<128xf32>
    %59 = vector.shape_cast %58 : vector<128xf32> to vector<128x1xf32>
    %60 = arith.truncf %57 : vector<128x128xf32> to vector<128x128xbf16>
    %cst_37 = arith.constant dense<0.000000e+00> : vector<128x64xf32>
    %61 = tpu.matmul %60, %49, %cst_37 {dimension_numbers = #tpu.dot_dimension_numbers<[1], [0], [0], [1], [0, 0, 1, 1], [], []>} : vector<128x128xbf16>, vector<128x64xbf16>, vector<128x64xf32> -> vector<128x64xf32>
    %62 = tpu.reciprocal %59 {approx = true} : vector<128x1xf32> -> vector<128x1xf32>
    %63 = vector.broadcast %62 : vector<128x1xf32> to vector<128x64xf32>
    %64 = arith.mulf %61, %63 : vector<128x64xf32>
    %65 = arith.truncf %64 : vector<128x64xf32> to vector<128x64xbf16>
    %c128_38 = arith.constant 128 : index
    %c0_39 = arith.constant 0 : index
    %66 = vector.load %arg7[%c128_38, %c0_39] : memref<256x128xbf16, #tpu.memory_space<vmem>>, vector<128x64xbf16>
    tpu.vector_store %arg7[%c128_38, %c0_39], %65 {strides = array<i32>} : memref<256x128xbf16, #tpu.memory_space<vmem>>, vector<128x64xbf16>,
    %c128_40 = arith.constant 128 : index
    %c64_41 = arith.constant 64 : index
    %67 = vector.load %arg6[%c128_40, %c64_41] : memref<256x384xbf16, #tpu.memory_space<vmem>>, vector<128x64xbf16>
    %c128_42 = arith.constant 128 : index
    %c192_43 = arith.constant 192 : index
    %68 = vector.load %arg6[%c128_42, %c192_43] : memref<256x384xbf16, #tpu.memory_space<vmem>>, vector<128x64xbf16>
    %c128_44 = arith.constant 128 : index
    %c320_45 = arith.constant 320 : index
    %69 = vector.load %arg6[%c128_44, %c320_45] : memref<256x384xbf16, #tpu.memory_space<vmem>>, vector<128x64xbf16>
    %cst_46 = arith.constant dense<0.000000e+00> : vector<128x128xf32>
    %70 = tpu.matmul %67, %68, %cst_46 {dimension_numbers = #tpu.dot_dimension_numbers<[1], [1], [0], [0], [0, 0, 1, 0], [], []>} : vector<128x64xbf16>, vector<128x64xbf16>, vector<128x128xf32> -> vector<128x128xf32>
    %cst_47 = arith.constant 1.250000e-01 : f32
    %71 = vector.broadcast %cst_47 : f32 to vector<128x128xf32>
    %72 = arith.mulf %70, %71 : vector<128x128xf32>
    %cst_48 = arith.constant dense<0xFF800000> : vector<128xf32>
    %73 = vector.multi_reduction <maximumf>, %72, %cst_48 [1] : vector<128x128xf32> to vector<128xf32>
    %74 = vector.shape_cast %73 : vector<128xf32> to vector<128x1xf32>
    %75 = vector.broadcast %74 : vector<128x1xf32> to vector<128x128xf32>
    %76 = arith.subf %72, %75 : vector<128x128xf32>
    %77 = math.exp %76 : vector<128x128xf32>
    %cst_49 = arith.constant dense<0.000000e+00> : vector<128xf32>
    %78 = vector.multi_reduction <add>, %77, %cst_49 [1] : vector<128x128xf32> to vector<128xf32>
    %79 = vector.shape_cast %78 : vector<128xf32> to vector<128x1xf32>
    %80 = arith.truncf %77 : vector<128x128xf32> to vector<128x128xbf16>
    %cst_50 = arith.constant dense<0.000000e+00> : vector<128x64xf32>
    %81 = tpu.matmul %80, %69, %cst_50 {dimension_numbers = #tpu.dot_dimension_numbers<[1], [0], [0], [1], [0, 0, 1, 1], [], []>} : vector<128x128xbf16>, vector<128x64xbf16>, vector<128x64xf32> -> vector<128x64xf32>
    %82 = tpu.reciprocal %79 {approx = true} : vector<128x1xf32> -> vector<128x1xf32>
    %83 = vector.broadcast %82 : vector<128x1xf32> to vector<128x64xf32>
    %84 = arith.mulf %81, %83 : vector<128x64xf32>
    %85 = arith.truncf %84 : vector<128x64xf32> to vector<128x64xbf16>
    %c128_51 = arith.constant 128 : index
    %c64_52 = arith.constant 64 : index
    %86 = vector.load %arg7[%c128_51, %c64_52] : memref<256x128xbf16, #tpu.memory_space<vmem>>, vector<128x64xbf16>
    tpu.vector_store %arg7[%c128_51, %c64_52], %85 {strides = array<i32>} : memref<256x128xbf16, #tpu.memory_space<vmem>>, vector<128x64xbf16>,
    %c0_53 = arith.constant 0 : index
    %c0_54 = arith.constant 0 : index
    %87 = vector.load %arg7[%c0_53, %c0_54] : memref<256x128xbf16, #tpu.memory_space<vmem>>, vector<256x128xbf16>
    %c0_55 = arith.constant 0 : index
    %c0_56 = arith.constant 0 : index
    %88 = vector.load %arg3[%c0_55, %c0_56] : memref<128x128xbf16, #tpu.memory_space<vmem>>, vector<128x128xbf16>
    %cst_57 = arith.constant dense<0.000000e+00> : vector<256x128xf32>
    %89 = tpu.matmul %87, %88, %cst_57 {dimension_numbers = #tpu.dot_dimension_numbers<[1], [0], [0], [1], [0, 0, 1, 1], [], []>} : vector<256x128xbf16>, vector<128x128xbf16>, vector<256x128xf32> -> vector<256x128xf32>
    %c0_58 = arith.constant 0 : index
    %c0_59 = arith.constant 0 : index
    %90 = vector.load %arg4[%c0_58, %c0_59] : memref<1x128xf32, #tpu.memory_space<vmem>>, vector<1x128xf32>
    %91 = vector.broadcast %90 : vector<1x128xf32> to vector<256x128xf32>
    %92 = arith.addf %89, %91 : vector<256x128xf32>
    %93 = vector.shape_cast %92 : vector<256x128xf32> to vector<2x128x128xf32>
    %c0_60 = arith.constant 0 : index
    %c0_61 = arith.constant 0 : index
    %c0_62 = arith.constant 0 : index
    %94 = vector.load %arg5[%c0_60, %c0_61, %c0_62] : memref<2x128x128xf32, #tpu.memory_space<vmem>>, vector<2x128x128xf32>
    tpu.vector_store %arg5[%c0_60, %c0_61, %c0_62], %93 {strides = array<i32>} : memref<2x128x128xf32, #tpu.memory_space<vmem>>, vector<2x128x128xf32>,
    return
  }
  func.func @transform_0(%arg0: i32) -> (i32, i32, i32) {
    %c0_i32 = arith.constant 0 : i32
    %c0_i32_0 = arith.constant 0 : i32
    %c0_i32_1 = arith.constant 0 : i32
    return %arg0, %c0_i32, %c0_i32_0 : i32, i32, i32
  }
  func.func @transform_1(%arg0: i32) -> (i32, i32) {
    %c0_i32 = arith.constant 0 : i32
    %c0_i32_0 = arith.constant 0 : i32
    %c0_i32_1 = arith.constant 0 : i32
    return %c0_i32, %c0_i32_0 : i32, i32
  }
  func.func @transform_2(%arg0: i32) -> (i32, i32) {
    %c0_i32 = arith.constant 0 : i32
    %c0_i32_0 = arith.constant 0 : i32
    %c0_i32_1 = arith.constant 0 : i32
    return %c0_i32, %c0_i32_0 : i32, i32
  }
  func.func @transform_3(%arg0: i32) -> (i32, i32) {
    %c0_i32 = arith.constant 0 : i32
    %c0_i32_0 = arith.constant 0 : i32
    %c0_i32_1 = arith.constant 0 : i32
    return %c0_i32, %c0_i32_0 : i32, i32
  }
  func.func @transform_4(%arg0: i32) -> (i32, i32, i32) {
    %c0_i32 = arith.constant 0 : i32
    %c0_i32_0 = arith.constant 0 : i32
    %c0_i32_1 = arith.constant 0 : i32
    return %arg0, %c0_i32, %c0_i32_0 : i32, i32, i32
  }
}

</mosaic_0001>

<bundles_post_ra>
// kernel: tpu_custom_call.1
= control target key start
LH: loop header
LB: loop body
LE: loop exit
PB: predicated region body
PF: predicated region fallthrough
CT: control target
= control target key end

     0   :  { %9 = vsyncpa [#allocation5], 0  ;;  %s6087_s0 = inlined_call_operand.hbm [shape: f32[4,128,128], index: 0, kind: input, shape index: {}]   ;;  %s6088_s1 = inlined_call_operand.hbm [shape: bf16[128,384], index: 1, kind: input, shape index: {}]   ;;  %s6089_s2 = inlined_call_operand.hbm [shape: bf16[128,128], index: 2, kind: input, shape index: {}]   ;;  %s6090_s3 = inlined_call_operand.vmem [shape: f32[1,128], index: 3, kind: input, shape index: {}]   ;;  %s6091_s4 = inlined_call_operand.hbm [shape: f32[4,128,128], index: 4, kind: output, shape index: {}]  }
   0x1   :  { %11 = vsyncpa [#allocation5 + $0x1], 0 }
   0x2   :  { %12 = vsyncpa [#allocation8], 0 }
   0x3   :  { %13 = vsyncpa [#allocation6], 0 }
   0x4   :  { %15 = vsyncpa [#allocation6 + $0x1], 0  ;;  %s4555_s15 = smov 0   ;;  %s4557_s16 = smov 0  }
   0x5   :  { %s4559_s17 = smov 0   ;;  %s4561_s18 = smov 0  }
   0x6 LB: > { %s4576_s19 = sadd.s32 4294967295, %s4514_s18   ;;  %s3320_s20 = sadd.s32 4294967294, %s4514_s18   ;;  %s4514_s18 = sphi %s4561_s18, %s6191_s18   ;;  %s4510_s17 = sphi %s4559_s17, %s6190_s17   ;;  %s4506_s16 = sphi %s4557_s16, %s6189_s16   ;;  %s4502_s15 = sphi %s4555_s15, %s6188_s15  }
   0x7   : > { %p41_p0 = scmp.ne.s32.totalorder %s4506_s16, %s4502_s15  ;;  %p6092_p1 = scmp.eq.s32.totalorder %s4576_s19, 0 }
   0x8   : > { %p134_p3 = scmp.eq.s32.totalorder %s3320_s20, 1  ;;  %p3321_p5 = scmp.ge.s32.totalorder %s4514_s18, 1 }
   0x9   : > { %p4585_p4 = por %p6092_p1, %p41_p0  ;;  %p141_p7 = scmp.lt.s32.totalorder %s4514_s18, 3 }
   0xa   : > { %p4590_p6 = por %p134_p3, %p41_p0  ;;  %s4516_s24 = smov [#allocation7]  }
   0xb   : > { %s6117_s21 = scalar_select %p4585_p4, 1, 0 }
   0xc   : > { %s6118_s22 = scalar_select %p4590_p6, 1, 0 }
   0xd   : > { %p4595_p8 = pnand %p3321_p5, %p141_p7  ;;  %s153_s25 = sshll.u32 %s4516_s24, 4  ;;  %s4599_s25 = int_to_ptr.vmem [resolvable:$true] %s153_s25 }
   0xe   : > { %s4517_s27 = smov [#allocation9]   ;;  %s4358_s5 = scalar_lea.hbm %s6088_s1, 3072 }
   0xf   : > { %p3997_p9 = pneg %p4595_p8  ;;  %s166_s28 = sshll.u32 %s4517_s27, 4  ;;  %s4610_s28 = int_to_ptr.vmem [resolvable:$true] %s166_s28 }
  0x10   : > { %p4359_p12 = scmp.ne.s32.totalorder %s6088_s1, %s4358_s5  ;;  %p4365_p5 = scmp.lt.u32.totalorder %s4358_s5, %s6088_s1 }
  0x11   : > { %p4606_p11 = pnand %p3997_p9, %p6092_p1 }
  0x13   : > { %p4360_p13 = pneg %p4606_p11 }
  0x15   : > { %p4361_p0 = pnand %p4360_p13, %p4359_p12 }
  0x17   : > { %p4362_p3 = pneg %p4361_p0 }
  0x19   : > { %p4367_p7 = pnand %p4365_p5, %p4362_p3 }
  0x1b   : > { %4370 = shalt.err (!%p4367_p7)
}
  0x1c   : > { %s4371_s10 = scalar_lea.vmem %s4599_s25, 3072  ;;  %p4379_p2 = scmp.lt.s32.totalorder %s4599_s25, %s4599_s25 }
  0x1d   : > { %p4372_p9 = scmp.ne.s32.totalorder %s4599_s25, %s4371_s10  ;;  %p4380_p12 = scmp.lt.s32.totalorder %s4371_s10, %s4371_s10 }
  0x1f   : > { %p4374_p10 = pnand %p4372_p9, %p4360_p13  ;;  %p4381_p0 = por %p4380_p12, %p4379_p2 }
  0x21   : > { %p4375_p1 = pneg %p4374_p10 }
  0x23   : > { %p4382_p6 = pnand %p4381_p0, %p4375_p1 }
  0x25   : > { %4385 = shalt.err (!%p4382_p6)
}
  0x26   : > { %s4518_s11 = smov 192   ;;  %s4519_s12 = smov 12  }
  0x27   : > { %4000 = dma.hbm_to_vmem [thread:$0]  (!%p4606_p11), %s6088_s1, 3072, %s4599_s25, [#allocation8], %s4518_s11, %s4518_s11, %s4519_s12  }
  0x28   : > { %s4386_s27 = scalar_lea.hbm %s6089_s2, 1024 }
  0x29   : > { %p4387_p2 = scmp.ne.s32.totalorder %s6089_s2, %s4386_s27  ;;  %p4393_p10 = scmp.lt.u32.totalorder %s4386_s27, %s6089_s2 }
  0x2b   : > { %p4389_p1 = pnand %p4387_p2, %p4360_p13 }
  0x2d   : > { %p4390_p6 = pneg %p4389_p1 }
  0x2f   : > { %p4395_p3 = pnand %p4393_p10, %p4390_p6 }
  0x31   : > { %4398 = shalt.err (!%p4395_p3)
}
  0x32   : > { %s4399_s25 = scalar_lea.vmem %s4610_s28, 1024  ;;  %p4407_p12 = scmp.lt.s32.totalorder %s4610_s28, %s4610_s28 }
  0x33   : > { %p4400_p5 = scmp.ne.s32.totalorder %s4610_s28, %s4399_s25  ;;  %p4408_p0 = scmp.lt.s32.totalorder %s4399_s25, %s4399_s25 }
  0x35   : > { %p4402_p7 = pnand %p4400_p5, %p4360_p13  ;;  %p4409_p2 = por %p4408_p0, %p4407_p12 }
  0x37   : > { %p4403_p9 = pneg %p4402_p7 }
  0x39   : > { %p4410_p1 = pnand %p4409_p2, %p4403_p9 }
  0x3b   : > { %4413 = shalt.err (!%p4410_p1)
}
  0x3c   : > { %s4520_s7 = smov 64   ;;  %s4521_s8 = smov 4  }
  0x3d   : > { %4003 = dma.hbm_to_vmem [thread:$0]  (!%p4606_p11), %s6089_s2, 1024, %s4610_s28, [#allocation8], %s4520_s7, %s4520_s7, %s4521_s8  }
  0x3e   : > { %s4665_s11 = sadd.s32 1, %s4514_s18   ;;  %s28_s13 = sadd.s32 1, %s4510_s17 }
  0x3f   : > { %s25_s12 = ssub.s32 %s4514_s18, %s4665_s11  ;;  %p35_p6 = scmp.ne.s32.totalorder %s4510_s17, %s4506_s16 }
  0x40   : > { %p26_p13 = scmp.eq.s32.totalorder %s25_s12, 0  ;;  %p36_p10 = scmp.eq.s32.totalorder %s4514_s18, 0 }
  0x41   : > { %p6121_p5 = scmp.eq.s32.totalorder %s4576_s19, 1  ;;  %p4014_p9 = scmp.lt.s32.totalorder %s4514_s18, 2 }
  0x42   : > { %s4674_s14 = scalar_select %p26_p13, %s4510_s17, %s28_s13  }
  0x43   : > { %p37_p3 = por %p36_p10, %p35_p6  ;;  %p4678_p7 = por %p6121_p5, %p35_p6 }
  0x44   : > { %s183_s26 = sand.u32 1, %s4510_s17   ;;  %s3406_s28 = sshll.u32 %s4514_s18, 12 }
  0x45   : > { %s6122_s20 = scalar_select %p4678_p7, 1, 0 }
  0x46   : > { %s3325_s24 = sshll.u32 %s183_s26, 8  ;;  %s4688_s30 = scalar_lea.hbm %s6087_s0, %s3406_s28 }
  0x47   : > { %s187_s5 = scalar_lea.vmem [#allocation4], %s3325_s24  ;;  %p4692_p11 = pnand %p4014_p9, %p37_p3 }
  0x48   : > { %s195_s6 = sshll.u32 %s187_s5, 4  ;;  %s4696_s7 = scalar_lea.sflag [#allocation5], %s183_s26  ;;  %s4690_s6 = int_to_ptr.vmem [resolvable:$true] %s195_s6 }
  0x49   : > { %s4414_s8 = scalar_lea.hbm %s4688_s30, 4096  ;;  %p4416_p0 = pneg %p4692_p11 }
  0x4a   : > { %p4415_p12 = scmp.ne.s32.totalorder %s4688_s30, %s4414_s8  ;;  %s4419_s12 = scalar_lea.hbm %s6087_s0, 8192 }
  0x4b   : > { %p4420_p13 = scmp.lt.u32.totalorder %s4688_s30, %s6087_s0  ;;  %p4421_p6 = scmp.lt.u32.totalorder %s4419_s12, %s4414_s8 }
  0x4c   : > { %p4417_p2 = pnand %p4416_p0, %p4415_p12  ;;  %p4423_p3 = scmp.lt.u32.totalorder %s4414_s8, %s4688_s30 }
  0x4d   : > { %p4422_p10 = por %p4421_p6, %p4420_p13 }
  0x4e   : > { %p4418_p1 = pneg %p4417_p2 }
  0x4f   : > { %p4424_p5 = por %p4423_p3, %p4422_p10 }
  0x51   : > { %p4425_p9 = pnand %p4424_p5, %p4418_p1 }
  0x53   : > { %4428 = shalt.err (!%p4425_p9)
}
  0x54   : > { %s4429_s26 = scalar_lea.vmem %s4690_s6, 4096  ;;  %s4522_s28 = smov [#allocation4]  }
  0x55   : > { %p4430_p12 = scmp.ne.s32.totalorder %s4690_s6, %s4429_s26  ;;  %s4434_s27 = sshll.u32 %s4522_s28, 4  ;;  %s4435_s27 = int_to_ptr.vmem [resolvable:$false] %s4434_s27 }
  0x56   : > { %s4436_s29 = scalar_lea.vmem %s4435_s27, 8192  ;;  %p4437_p4 = scmp.lt.s32.totalorder %s4690_s6, %s4435_s27 }
  0x57   : > { %p4432_p2 = pnand %p4430_p12, %p4416_p0  ;;  %p4438_p13 = scmp.lt.s32.totalorder %s4436_s29, %s4429_s26 }
  0x59   : > { %p4433_p7 = pneg %p4432_p2  ;;  %p4439_p6 = por %p4438_p13, %p4437_p4 }
  0x5b   : > { %p4440_p10 = pnand %p4439_p6, %p4433_p7 }
  0x5d   : > { %4443 = shalt.err (!%p4440_p10)
}
  0x5e   : > { %s4523_s5 = smov 128   ;;  %s4524_s8 = smov 8  }
  0x5f   : > { %4007 = dma.hbm_to_vmem [thread:$0]  (!%p4692_p11), %s4688_s30, 4096, %s4690_s6, %s4696_s7, %s4523_s5, %s4523_s5, %s4524_s8  }
  0x60   : > { %207 = sbr.rel (%p4595_p8) target bundleno = 2062 (0x80e), region = 36 }
  0x67   : > { %s4727_s9 = sand.u32 1, %s4506_s16   ;;  %p6124_p4 = scmp.ne.s32.totalorder %s6117_s21, 0 }
  0x68   : > { %s3330_s10 = sshll.u32 %s4727_s9, 8  ;;  %s210_s12 = scalar_lea.sflag [#allocation5], %s4727_s9 }
  0x69   : > { %s4733_s13 = scalar_lea.vmem [#allocation4], %s3330_s10 }
  0x6a   : > { %4489 = dma.done.wait (%p6124_p4), %s210_s12, 4096  }
  0x6b   : > { %4491 = vsyncadd (%p6124_p4), %s210_s12, 4294963200  ;;  %p6125_p7 = scmp.eq.s32.totalorder %s4576_s19, 0 }
  0x6d   : > { %4493 = dma.done.wait (%p6125_p7), [#allocation8], 4096   ;;  %p6126_p8 = pmov %p6125_p7 }
  0x6e   : > { %v4525_v0 = vmov 0   ;;  %v4062_v1 = vld [vmem:[#allocation7 + $0x4] ss:$12 sps:$4 sm:$0xff]   ;;  %v4064_v2 = vld [vmem:[#allocation7] ss:$12 sps:$4 sm:$0xff]   ;;  %v252_v26 = vld [vmem:[%s4733_s13 + $0x18] sm:$0xff] }
  0x6f   : > { %4495 = vsyncadd (%p6126_p8), [#allocation8], 4294963200  ;;  %489 = vmatprep.mubr.bf16.mxu0 %v4525_v0  ;;  %609 = vmatprep.mubr.bf16.mxu1 %v4525_v0  ;;  %v4065_v3 = vld [vmem:[#allocation7 + $0x1c] ss:$12 sps:$4 sm:$0xff]   ;;  %v4067_v4 = vld [vmem:[#allocation7 + $0x18] ss:$12 sps:$4 sm:$0xff]  }
  0x70   : > { %457 = vmatprep.subr.bf16.mxu0 %v4062_v1  ;;  %3937 = vmatprep.subr.bf16.mxu1 %v4062_v1  ;;  %v4068_v5 = vld [vmem:[#allocation7 + $0x34] ss:$12 sps:$4 sm:$0xff]   ;;  %v4070_v6 = vld [vmem:[#allocation7 + $0x30] ss:$12 sps:$4 sm:$0xff]   ;;  %v4071_v7 = vld [vmem:[#allocation7 + $0x4c] ss:$12 sps:$4 sm:$0xff]  }
  0x71   : > { %458 = vmatpush1.bf16.msra.mxu0 %v4064_v2  ;;  %3945 = vmatpush1.bf16.msra.mxu1 %v4064_v2  ;;  %v4073_v8 = vld [vmem:[#allocation7 + $0x48] ss:$12 sps:$4 sm:$0xff]   ;;  %v4074_v9 = vld [vmem:[#allocation7 + $0x64] ss:$12 sps:$4 sm:$0xff]   ;;  %v4076_v10 = vld [vmem:[#allocation7 + $0x60] ss:$12 sps:$4 sm:$0xff]  }
  0x72   : > { %459 = vmatprep.subr.bf16.mxu0 %v4065_v3  ;;  %3938 = vmatprep.subr.bf16.mxu1 %v4065_v3  ;;  %v4077_v11 = vld [vmem:[#allocation7 + $0x7c] ss:$12 sps:$4 sm:$0xff]   ;;  %v4079_v12 = vld [vmem:[#allocation7 + $0x78] ss:$12 sps:$4 sm:$0xff]   ;;  %v4080_v13 = vld [vmem:[#allocation7 + $0x94] ss:$12 sps:$4 sm:$0xff]  }
  0x73   : > { %v4082_v14 = vld [vmem:[#allocation7 + $0x90] ss:$12 sps:$4 sm:$0xff]   ;;  %v4083_v15 = vld [vmem:[#allocation7 + $0xac] ss:$12 sps:$4 sm:$0xff]   ;;  %v4085_v16 = vld [vmem:[#allocation7 + $0xa8] ss:$12 sps:$4 sm:$0xff]  }
  0x74   : > { %v249_v17 = vld [vmem:[%s4733_s13] sm:$0xff]  ;;  %v250_v18 = vld [vmem:[%s4733_s13 + $0x8] sm:$0xff]  ;;  %v251_v25 = vld [vmem:[%s4733_s13 + $0x10] sm:$0xff]  ;;  %vm931_vm0 = vcmask 523264   ;;  %s4526_s21 = smov 64   ;;  %vm1912_vm1 = vcmask 1048064  }
  0x75   : > { %460 = vmatpush1.bf16.msra.mxu0 %v4067_v4  ;;  %3946 = vmatpush1.bf16.msra.mxu1 %v4067_v4  ;;  %v273_v19 = vld [vmem:[%s4733_s13 + $0xc0] sm:$0xff]  ;;  %v274_v20 = vld [vmem:[%s4733_s13 + $0xc8] sm:$0xff]  ;;  %v281_v22 = vpack.c.bf16 %v250_v18, %v249_v17  ;;  %v275_v27 = vld [vmem:[%s4733_s13 + $0xd0] sm:$0xff]  ;;  %v282_v30 = vpack.c.bf16 %v252_v26, %v251_v25  ;;  %s5958_s6 = scalar_lea.vmem [#allocation10], %s3330_s10  ;;  %s3408_s25 = sshll.u32 %s4576_s19, 12 }
  0x76   : > { %461 = vmatprep.subr.bf16.mxu0 %v4068_v5  ;;  %3939 = vmatprep.subr.bf16.mxu1 %v4068_v5  ;;  %v4086_v21 = vld [vmem:[#allocation7 + $0x8] ss:$12 sps:$4 sm:$0xff]   ;;  %v4749_v23 = vpack.c.bf16 %v274_v20, %v273_v19  ;;  %v4087_v24 = vld [vmem:[#allocation7 + $0x20] ss:$12 sps:$4 sm:$0xff]   ;;  %v276_v28 = vld [vmem:[%s4733_s13 + $0xd8] sm:$0xff]  ;;  %s3228_s7 = sshll.u32 %s5958_s6, 4  ;;  %s6037_s28 = scalar_lea.hbm %s6091_s4, %s3408_s25  ;;  %s6039_s7 = int_to_ptr.vmem [resolvable:$true] %s3228_s7 }
  0x77   : > { %v4088_v29 = vld [vmem:[#allocation7 + $0x38] ss:$12 sps:$4 sm:$0xff]   ;;  %v4758_v31 = vpack.c.bf16 %v276_v28, %v275_v27  ;;  %v4089_v32 = vld [vmem:[#allocation7 + $0x50] ss:$12 sps:$4 sm:$0xff]   ;;  %v254_v34 = vld [vmem:[%s4733_s13 + $0x28] sm:$0xff]  ;;  %s3214_s19 = scalar_lea.sflag [#allocation6], %s4727_s9 }
  0x78   : > { %v253_v33 = vld [vmem:[%s4733_s13 + $0x20] sm:$0xff]  ;;  %v278_v36 = vld [vmem:[%s4733_s13 + $0xe8] sm:$0xff]  ;;  %v255_v41 = vld [vmem:[%s4733_s13 + $0x30] sm:$0xff]  ;;  %s4444_s27 = scalar_lea.vmem %s6039_s7, 4096  ;;  %p6185_p0 = scmp.ne.s32.totalorder %s6122_s20, 0 }
  0x79   : > { %462 = vmatpush1.bf16.msra.mxu0 %v4070_v6  ;;  %3947 = vmatpush1.bf16.msra.mxu1 %v4070_v6  ;;  %v277_v35 = vld [vmem:[%s4733_s13 + $0xe0] sm:$0xff]  ;;  %v4090_v37 = vld [vmem:[#allocation7 + $0x68] ss:$12 sps:$4 sm:$0xff]   ;;  %v283_v38 = vpack.c.bf16 %v254_v34, %v253_v33  ;;  %v256_v42 = vld [vmem:[%s4733_s13 + $0x38] sm:$0xff]  ;;  %p4445_p11 = scmp.ne.s32.totalorder %s6039_s7, %s4444_s27  ;;  %s4527_s29 = smov [#allocation10]  }
  0x7a   : > { %463 = vmatprep.subr.bf16.mxu0 %v4071_v7  ;;  %3940 = vmatprep.subr.bf16.mxu1 %v4071_v7  ;;  %v4767_v39 = vpack.c.bf16 %v278_v36, %v277_v35  ;;  %v4091_v40 = vld [vmem:[#allocation7 + $0x80] ss:$12 sps:$4 sm:$0xff]   ;;  %v279_v43 = vld [vmem:[%s4733_s13 + $0xf0] sm:$0xff]  ;;  %v280_v44 = vld [vmem:[%s4733_s13 + $0xf8] sm:$0xff]  ;;  %v284_v46 = vpack.c.bf16 %v256_v42, %v255_v41  ;;  %s4448_s5 = sshll.u32 %s4527_s29, 4  ;;  %s4449_s5 = int_to_ptr.vmem [resolvable:$false] %s4448_s5 }
  0x7b   : > { %v4092_v45 = vld [vmem:[#allocation7 + $0x98] ss:$12 sps:$4 sm:$0xff]   ;;  %v4776_v47 = vpack.c.bf16 %v280_v44, %v279_v43  ;;  %v4093_v48 = vld [vmem:[#allocation7 + $0xb0] ss:$12 sps:$4 sm:$0xff]   ;;  %v258_v50 = vld [vmem:[%s4733_s13 + $0x48] sm:$0xff]  ;;  %p4446_p1 = pnand %p4445_p11, %p6185_p0  ;;  %s4450_s8 = scalar_lea.vmem %s4449_s5, 8192 }
  0x7c   : > { %v257_v49 = vld [vmem:[%s4733_s13 + $0x40] sm:$0xff]  ;;  %v259_v52 = vld [vmem:[%s4733_s13 + $0x50] sm:$0xff]  ;;  %v260_v53 = vld [vmem:[%s4733_s13 + $0x58] sm:$0xff]  ;;  %p4451_p5 = scmp.lt.s32.totalorder %s6039_s7, %s4449_s5  ;;  %p4452_p9 = scmp.lt.s32.totalorder %s4450_s8, %s4444_s27 }
  0x7d   : > { %464 = vmatpush1.bf16.msra.mxu0 %v4073_v8  ;;  %3948 = vmatpush1.bf16.msra.mxu1 %v4073_v8  ;;  %v285_v51 = vpack.c.bf16 %v258_v50, %v257_v49  ;;  %v286_v54 = vpack.c.bf16 %v260_v53, %v259_v52  ;;  %v261_v55 = vld [vmem:[%s4733_s13 + $0x60] sm:$0xff]  ;;  %v262_v56 = vld [vmem:[%s4733_s13 + $0x68] sm:$0xff]  ;;  %v263_v58 = vld [vmem:[%s4733_s13 + $0x70] sm:$0xff]  ;;  %p4447_p3 = pneg %p4446_p1 }
  0x7e   : > { %465 = vmatprep.subr.bf16.mxu0 %v4074_v9  ;;  %3941 = vmatprep.subr.bf16.mxu1 %v4074_v9  ;;  %v287_v57 = vpack.c.bf16 %v262_v56, %v261_v55  ;;  %v264_v59 = vld [vmem:[%s4733_s13 + $0x78] sm:$0xff]  ;;  %v265_v61 = vld [vmem:[%s4733_s13 + $0x80] sm:$0xff]  ;;  %v266_v62 = vld [vmem:[%s4733_s13 + $0x88] sm:$0xff]  ;;  %p4453_p12 = por %p4452_p9, %p4451_p5 }
  0x7f   : > { %v288_v60 = vpack.c.bf16 %v264_v59, %v263_v58  ;;  %v289_v63 = vpack.c.bf16 %v266_v62, %v265_v61  ;;  %v267_v1 = vld [vmem:[%s4733_s13 + $0x90] sm:$0xff]  ;;  %v268_v2 = vld [vmem:[%s4733_s13 + $0x98] sm:$0xff]  ;;  %v269_v3 = vld [vmem:[%s4733_s13 + $0xa0] sm:$0xff] }
  0x80   : > { %v270_v4 = vld [vmem:[%s4733_s13 + $0xa8] sm:$0xff]  ;;  %v290_v5 = vpack.c.bf16 %v268_v2, %v267_v1  ;;  %v271_v7 = vld [vmem:[%s4733_s13 + $0xb0] sm:$0xff]  ;;  %v272_v8 = vld [vmem:[%s4733_s13 + $0xb8] sm:$0xff]  ;;  %p4454_p2 = pnand %p4453_p12, %p4447_p3 }
  0x81   : > { %466 = vmatpush1.bf16.msra.mxu0 %v4076_v10  ;;  %3949 = vmatpush1.bf16.msra.mxu1 %v4076_v10  ;;  %v291_v6 = vpack.c.bf16 %v270_v4, %v269_v3  ;;  %v292_v9 = vpack.c.bf16 %v272_v8, %v271_v7 }
  0x82   : > { %467 = vmatprep.subr.bf16.mxu0 %v4077_v11  ;;  %3942 = vmatprep.subr.bf16.mxu1 %v4077_v11 }
  0x85   : > { %468 = vmatpush1.bf16.msra.mxu0 %v4079_v12  ;;  %3950 = vmatpush1.bf16.msra.mxu1 %v4079_v12 }
  0x86   : > { %469 = vmatprep.subr.bf16.mxu0 %v4080_v13  ;;  %3943 = vmatprep.subr.bf16.mxu1 %v4080_v13 }
  0x89   : > { %470 = vmatpush1.bf16.msra.mxu0 %v4082_v14  ;;  %3951 = vmatpush1.bf16.msra.mxu1 %v4082_v14 }
  0x8a   : > { %471 = vmatprep.subr.bf16.mxu0 %v4083_v15  ;;  %3944 = vmatprep.subr.bf16.mxu1 %v4083_v15 }
  0x8d   : > { %472 = vmatpush1.bf16.msra.mxu0 %v4085_v16  ;;  %3952 = vmatpush1.bf16.msra.mxu1 %v4085_v16 }
  0x8e   : > { %3585 = vmatprep.subr.bf16.mxu1 %v4086_v21 }
  0x90   : > { %490 = vmatmul.mubr.bf16.vlgmr.msra.gmra.mrb[0].mxu0 %v281_v22  ;;  %610 = vmatmul.mubr.bf16.vlgmr.msra.gmra.mrb[0].mxu1 %v4749_v23 }
  0x91   : > { %499 = vmatprep.mubr.bf16.mxu0 %v4525_v0  ;;  %3586 = vmatpush3.bf16.msra.mxu1 %v4086_v21 }
  0x92   : > { %3587 = vmatprep.subr.bf16.mxu1 %v4087_v24  ;;  %619 = vmatprep.mubr.bf16.mxu1 %v4525_v0 }
  0x95   : > { %3588 = vmatpush3.bf16.msra.mxu1 %v4087_v24 }
  0x96   : > { %3589 = vmatprep.subr.bf16.mxu1 %v4088_v29 }
  0x98   : > { %500 = vmatmul.mubr.bf16.gmra.mrb[4].mxu0 %v282_v30  ;;  %620 = vmatmul.mubr.bf16.gmra.mrb[4].mxu1 %v4758_v31 }
  0x99   : > { %509 = vmatprep.mubr.bf16.mxu0 %v4525_v0  ;;  %3590 = vmatpush3.bf16.msra.mxu1 %v4088_v29 }
  0x9a   : > { %3591 = vmatprep.subr.bf16.mxu1 %v4089_v32  ;;  %629 = vmatprep.mubr.bf16.mxu1 %v4525_v0 }
  0x9d   : > { %3592 = vmatpush3.bf16.msra.mxu1 %v4089_v32 }
  0x9e   : > { %3593 = vmatprep.subr.bf16.mxu1 %v4090_v37 }
  0xa0   : > { %510 = vmatmul.mubr.bf16.gmra.mrb[8].mxu0 %v283_v38  ;;  %630 = vmatmul.mubr.bf16.gmra.mrb[8].mxu1 %v4767_v39 }
  0xa1   : > { %519 = vmatprep.mubr.bf16.mxu0 %v4525_v0  ;;  %3594 = vmatpush3.bf16.msra.mxu1 %v4090_v37 }
  0xa2   : > { %3595 = vmatprep.subr.bf16.mxu1 %v4091_v40  ;;  %639 = vmatprep.mubr.bf16.mxu1 %v4525_v0 }
  0xa5   : > { %3596 = vmatpush3.bf16.msra.mxu1 %v4091_v40 }
  0xa6   : > { %3597 = vmatprep.subr.bf16.mxu1 %v4092_v45 }
  0xa8   : > { %520 = vmatmul.mubr.bf16.gmra.mrb[12].mxu0 %v284_v46  ;;  %640 = vmatmul.mubr.bf16.gmra.mrb[12].mxu1 %v4776_v47 }
  0xa9   : > { %529 = vmatprep.mubr.bf16.mxu0 %v4525_v0  ;;  %3598 = vmatpush3.bf16.msra.mxu1 %v4092_v45 }
  0xaa   : > { %3599 = vmatprep.subr.bf16.mxu1 %v4093_v48  ;;  %3601 = vmatprep.mubr.bf16.mxu1 %v281_v22 }
  0xad   : > { %3600 = vmatpush3.bf16.msra.mxu1 %v4093_v48 }
  0xb0   : > { %530 = vmatmul.mubr.bf16.gmra.mrb[16].mxu0 %v285_v51  ;;  %3602 = vmatmul.mubr.bf16.vlgmr.msra.gmra.mrb[16].mxu1 %v282_v30 }
  0xb1   : > { %539 = vmatprep.mubr.bf16.mxu0 %v4525_v0  ;;  %3605 = vmatprep.mubr.bf16.mxu1 %v283_v38 }
  0xb8   : > { %540 = vmatmul.mubr.bf16.gmra.mrb[20].mxu0 %v286_v54  ;;  %3606 = vmatmul.mubr.bf16.gmra.mrb[20].mxu1 %v284_v46 }
  0xb9   : > { %549 = vmatprep.mubr.bf16.mxu0 %v4525_v0  ;;  %3609 = vmatprep.mubr.bf16.mxu1 %v285_v51 }
  0xc0   : > { %550 = vmatmul.mubr.bf16.gmra.mrb[24].mxu0 %v287_v57  ;;  %3610 = vmatmul.mubr.bf16.gmra.mrb[24].mxu1 %v286_v54 }
  0xc1   : > { %559 = vmatprep.mubr.bf16.mxu0 %v4525_v0  ;;  %3613 = vmatprep.mubr.bf16.mxu1 %v287_v57 }
  0xc8   : > { %560 = vmatmul.mubr.bf16.gmra.mrb[28].mxu0 %v288_v60  ;;  %3614 = vmatmul.mubr.bf16.gmra.mrb[28].mxu1 %v288_v60 }
  0xc9   : > { %569 = vmatprep.mubr.bf16.mxu0 %v4525_v0  ;;  %3617 = vmatprep.mubr.bf16.mxu1 %v289_v63 }
  0xd0   : > { %570 = vmatmul.mubr.bf16.gmra.mrb[32].mxu0 %v289_v63  ;;  %3618 = vmatmul.mubr.bf16.gmra.mrb[32].mxu1 %v290_v5 }
  0xd1   : > { %579 = vmatprep.mubr.bf16.mxu0 %v4525_v0  ;;  %3621 = vmatprep.mubr.bf16.mxu1 %v291_v6 }
  0xd8   : > { %580 = vmatmul.mubr.bf16.gmra.mrb[36].mxu0 %v290_v5  ;;  %3622 = vmatmul.mubr.bf16.gmra.mrb[36].mxu1 %v292_v9 }
  0xd9   : > { %589 = vmatprep.mubr.bf16.mxu0 %v4525_v0  ;;  %3625 = vmatprep.mubr.bf16.mxu1 %v4749_v23 }
  0xe0   : > { %590 = vmatmul.mubr.bf16.gmra.mrb[40].mxu0 %v291_v6  ;;  %3626 = vmatmul.mubr.bf16.gmra.mrb[40].mxu1 %v4758_v31 }
  0xe1   : > { %599 = vmatprep.mubr.bf16.mxu0 %v4525_v0  ;;  %3629 = vmatprep.mubr.bf16.mxu1 %v4767_v39 }
  0xe8   : > { %600 = vmatmul.mubr.bf16.gmra.mrb[44].mxu0 %v292_v9  ;;  %3630 = vmatmul.mubr.bf16.gmra.mrb[44].mxu1 %v4776_v47 }
 0x163   : > { %v491_v10 = vpop.f32.mrb[0].mxu0  ;;  %v4816_v22 = vpop.f32.mrb[0].mxu1 }
 0x164   : > { %v493_v11 = vpop.f32.mrb[1].mxu0  ;;  %v4821_v24 = vpop.f32.mrb[1].mxu1 }
 0x165   : > { %v495_v12 = vpop.f32.mrb[2].mxu0  ;;  %v615_v25 = vpop.f32.mrb[2].mxu1 }
 0x166   : > { %v4807_v13 = vpack.c.bf16 %v495_v12, %v491_v10  ;;  %v497_v14 = vpop.f32.mrb[3].mxu0  ;;  %v617_v27 = vpop.f32.mrb[3].mxu1 }
 0x167   : > { %v812_v15 = vpack.c.bf16 %v497_v14, %v493_v11 }
 0x168   : > { %3649 = vmatprep.mubr.msk.bf16.mxu1 %vm931_vm0, %v4807_v13 }
 0x169   : > { %1414 = vrot.lane.b32.xlu0 %v812_v15, %s4526_s21  ;;  %3953 = vmatprep.subr.msk.bf16.mxu1 %vm931_vm0, %v812_v15  ;;  %v957_v0 = vsel %vm931_vm0, %v812_v15, 0  ;;  %v4865_v15 = vpack.c.bf16 %v615_v25, %v4816_v22 }
 0x16a   : > { %3634 = vmatpush3.bf16.xpose.msra.mxu1 %v957_v0  ;;  %v4868_v0 = vpack.c.bf16 %v617_v27, %v4821_v24 }
 0x16b   : > { %v501_v16 = vpop.f32.mrb[4].mxu0  ;;  %v4823_v29 = vpop.f32.mrb[4].mxu1  ;;  %6127 = vst [vmem:[#allocation14_spill] sm:$0xff] %v4865_v15 }
 0x16c   : > { %v503_v17 = vpop.f32.mrb[5].mxu0  ;;  %v4825_v31 = vpop.f32.mrb[5].mxu1 }
 0x16d   : > { %v505_v18 = vpop.f32.mrb[6].mxu0  ;;  %v625_v34 = vpop.f32.mrb[6].mxu1 }
 0x16e   : > { %v4814_v19 = vpack.c.bf16 %v505_v18, %v501_v16  ;;  %v507_v20 = vpop.f32.mrb[7].mxu0  ;;  %v4829_v36 = vpop.f32.mrb[7].mxu1 }
 0x16f   : > { %v815_v21 = vpack.c.bf16 %v507_v20, %v503_v17  ;;  %v4880_v24 = vpack.c.bf16 %v4829_v36, %v4825_v31 }
 0x171   : > { %1416 = vrot.lane.b32.xlu0 %v815_v21, %s4526_s21  ;;  %3954 = vmatprep.subr.msk.bf16.mxu1 %vm931_vm0, %v815_v21  ;;  %v960_v23 = vsel %vm931_vm0, %v815_v21, 0  ;;  %v4874_v21 = vpack.c.bf16 %v625_v34, %v4823_v29 }
 0x172   : > { %3636 = vmatpush3.bf16.xpose.msra.mxu1 %v960_v23 }
 0x173   : > { %v511_v26 = vpop.f32.mrb[8].mxu0  ;;  %v4831_v37 = vpop.f32.mrb[8].mxu1  ;;  %6128 = vst [vmem:[#allocation15_spill] sm:$0xff] %v4874_v21 }
 0x174   : > { %v513_v28 = vpop.f32.mrb[9].mxu0  ;;  %v4836_v39 = vpop.f32.mrb[9].mxu1 }
 0x175   : > { %v515_v30 = vpop.f32.mrb[10].mxu0  ;;  %v635_v40 = vpop.f32.mrb[10].mxu1 }
 0x176   : > { %v4827_v32 = vpack.c.bf16 %v515_v30, %v511_v26  ;;  %v517_v33 = vpop.f32.mrb[11].mxu0  ;;  %v637_v42 = vpop.f32.mrb[11].mxu1 }
 0x177   : > { %v818_v35 = vpack.c.bf16 %v517_v33, %v513_v28  ;;  %v4888_v29 = vpack.c.bf16 %v637_v42, %v4836_v39 }
 0x179   : > { %1418 = vrot.lane.b32.xlu1 %v818_v35, %s4526_s21  ;;  %3955 = vmatprep.subr.msk.bf16.mxu1 %vm931_vm0, %v818_v35  ;;  %v963_v38 = vsel %vm931_vm0, %v818_v35, 0  ;;  %v4885_v35 = vpack.c.bf16 %v635_v40, %v4831_v37 }
 0x17a   : > { %3638 = vmatpush3.bf16.xpose.msra.mxu1 %v963_v38 }
 0x17b   : > { %v521_v41 = vpop.f32.mrb[12].mxu0  ;;  %v4838_v44 = vpop.f32.mrb[12].mxu1 }
 0x17c   : > { %v523_v43 = vpop.f32.mrb[13].mxu0  ;;  %v4840_v46 = vpop.f32.mrb[13].mxu1 }
 0x17d   : > { %v525_v45 = vpop.f32.mrb[14].mxu0  ;;  %v4844_v49 = vpop.f32.mrb[14].mxu1 }
 0x17e   : > { %v4842_v47 = vpack.c.bf16 %v525_v45, %v521_v41  ;;  %v527_v48 = vpop.f32.mrb[15].mxu0  ;;  %v4846_v51 = vpop.f32.mrb[15].mxu1  ;;  %v4899_v37 = vpack.c.bf16 %v4844_v49, %v4838_v44 }
 0x17f   : > { %v821_v50 = vpack.c.bf16 %v527_v48, %v523_v43  ;;  %v4905_v42 = vpack.c.bf16 %v4846_v51, %v4840_v46 }
 0x180   : > { %6129 = vst [vmem:[#allocation16_spill] sm:$0xff] %v4899_v37 }
 0x181   : > { %1420 = vrot.lane.b32.xlu1 %v821_v50, %s4526_s21  ;;  %3956 = vmatprep.subr.msk.bf16.mxu1 %vm931_vm0, %v821_v50  ;;  %v966_v52 = vsel %vm931_vm0, %v821_v50, 0  ;;  %6130 = vst [vmem:[#allocation17_spill] sm:$0xff] %v4905_v42 }
 0x182   : > { %3640 = vmatpush3.bf16.xpose.msra.mxu1 %v966_v52 }
 0x183   : > { %v531_v53 = vpop.f32.mrb[16].mxu0  ;;  %v3603_v54 = vpop.f32.mrb[16].mxu1 }
 0x184   : > { %v533_v55 = vpop.f32.mrb[17].mxu0  ;;  %v684_v56 = vpop.f32.mrb[17].mxu1 }
 0x185   : > { %v535_v57 = vpop.f32.mrb[18].mxu0  ;;  %v3604_v58 = vpop.f32.mrb[18].mxu1 }
 0x186   : > { %v4851_v59 = vpack.c.bf16 %v535_v57, %v531_v53  ;;  %v537_v60 = vpop.f32.mrb[19].mxu0  ;;  %v687_v61 = vpop.f32.mrb[19].mxu1  ;;  %v4855_v1 = vpack.c.bf16 %v3604_v58, %v3603_v54 }
 0x187   : > { %v824_v62 = vpack.c.bf16 %v537_v60, %v533_v55  ;;  %v4853_v63 = vpack.c.bf16 %v687_v61, %v684_v56 }
 0x189   : > { %1422 = vrot.lane.b32.xlu0 %v824_v62, %s4526_s21  ;;  %3957 = vmatprep.subr.msk.bf16.mxu1 %vm931_vm0, %v824_v62  ;;  %v969_v2 = vsel %vm931_vm0, %v824_v62, 0 }
 0x18a   : > { %3642 = vmatpush3.bf16.xpose.msra.mxu1 %v969_v2 }
 0x18b   : > { %v541_v3 = vpop.f32.mrb[20].mxu0  ;;  %v3607_v4 = vpop.f32.mrb[20].mxu1 }
 0x18c   : > { %v543_v5 = vpop.f32.mrb[21].mxu0  ;;  %v700_v6 = vpop.f32.mrb[21].mxu1 }
 0x18d   : > { %v545_v7 = vpop.f32.mrb[22].mxu0  ;;  %v3608_v8 = vpop.f32.mrb[22].mxu1 }
 0x18e   : > { %v4860_v9 = vpack.c.bf16 %v545_v7, %v541_v3  ;;  %v547_v10 = vpop.f32.mrb[23].mxu0  ;;  %v4862_v11 = vpack.c.bf16 %v3608_v8, %v3607_v4  ;;  %v703_v12 = vpop.f32.mrb[23].mxu1 }
 0x18f   : > { %v827_v14 = vpack.c.bf16 %v547_v10, %v543_v5  ;;  %v4876_v23 = vpack.c.bf16 %v703_v12, %v700_v6 }
 0x191   : > { %1424 = vrot.lane.b32.xlu1 %v827_v14, %s4526_s21  ;;  %3958 = vmatprep.subr.msk.bf16.mxu1 %vm931_vm0, %v827_v14  ;;  %v972_v16 = vsel %vm931_vm0, %v827_v14, 0 }
 0x192   : > { %3644 = vmatpush3.bf16.xpose.msra.mxu1 %v972_v16 }
 0x193   : > { %v551_v17 = vpop.f32.mrb[24].mxu0  ;;  %v3611_v18 = vpop.f32.mrb[24].mxu1 }
 0x194   : > { %v553_v20 = vpop.f32.mrb[25].mxu0  ;;  %v716_v22 = vpop.f32.mrb[25].mxu1 }
 0x195   : > { %v555_v25 = vpop.f32.mrb[26].mxu0  ;;  %v3612_v26 = vpop.f32.mrb[26].mxu1 }
 0x196   : > { %v4882_v27 = vpack.c.bf16 %v555_v25, %v551_v17  ;;  %v557_v28 = vpop.f32.mrb[27].mxu0  ;;  %v719_v30 = vpop.f32.mrb[27].mxu1  ;;  %v4892_v38 = vpack.c.bf16 %v3612_v26, %v3611_v18 }
 0x197   : > { %v830_v33 = vpack.c.bf16 %v557_v28, %v553_v20  ;;  %v4890_v34 = vpack.c.bf16 %v719_v30, %v716_v22 }
 0x199   : > { %1426 = vrot.lane.b32.xlu0 %v830_v33, %s4526_s21  ;;  %3959 = vmatprep.subr.msk.bf16.mxu1 %vm931_vm0, %v830_v33  ;;  %v975_v31 = vsel %vm931_vm0, %v830_v33, 0 }
 0x19a   : > { %3646 = vmatpush3.bf16.xpose.msra.mxu1 %v975_v31 }
 0x19b   : > { %v561_v36 = vpop.f32.mrb[28].mxu0  ;;  %v3615_v41 = vpop.f32.mrb[28].mxu1 }
 0x19c   : > { %v563_v43 = vpop.f32.mrb[29].mxu0  ;;  %v732_v39 = vpop.f32.mrb[29].mxu1 }
 0x19d   : > { %1390 = vrot.lane.b32.xlu0 %v4807_v13, %s4526_s21  ;;  %v565_v40 = vpop.f32.mrb[30].mxu0  ;;  %v3616_v45 = vpop.f32.mrb[30].mxu1 }
 0x19e   : > { %v4907_v48 = vpack.c.bf16 %v565_v40, %v561_v36  ;;  %v567_v50 = vpop.f32.mrb[31].mxu0  ;;  %v4909_v52 = vpack.c.bf16 %v3616_v45, %v3615_v41  ;;  %v735_v53 = vpop.f32.mrb[31].mxu1 }
 0x19f   : > { %v833_v54 = vpack.c.bf16 %v567_v50, %v563_v43  ;;  %v4911_v55 = vpack.c.bf16 %v735_v53, %v732_v39 }
 0x1a1   : > { %1394 = vrot.lane.b32.xlu0 %v4827_v32, %s4526_s21  ;;  %1428 = vrot.lane.b32.xlu1 %v833_v54, %s4526_s21  ;;  %v978_v13 = vsel %vm931_vm0, %v833_v54, 0 }
 0x1a2   : > { %3960 = vmatprep.subr.msk.bf16.mxu1 %vm931_vm0, %v833_v54 }
 0x1a3   : > { %3648 = vmatpush3.bf16.xpose.msra.mxu1 %v978_v13  ;;  %v571_v44 = vpop.f32.mrb[32].mxu0  ;;  %v3619_v16 = vpop.f32.mrb[32].mxu1 }
 0x1a4   : > { %v573_v46 = vpop.f32.mrb[33].mxu0  ;;  %3665 = vmatprep.subr.bf16.mxu1 %v4853_v63  ;;  %v748_v20 = vpop.f32.mrb[33].mxu1 }
 0x1a5   : > { %1398 = vrot.lane.b32.xlu0 %v4851_v59, %s4526_s21  ;;  %1392 = vrot.lane.b32.xlu1 %v4814_v19, %s4526_s21  ;;  %v575_v49 = vpop.f32.mrb[34].mxu0 }
 0x1a6   : > { %v4923_v51 = vpack.c.bf16 %v575_v49, %v571_v44  ;;  %v577_v56 = vpop.f32.mrb[35].mxu0 }
 0x1a7   : > { %v4925_v57 = vpack.c.bf16 %v577_v56, %v573_v46 }
 0x1a8   : > { %6131 = vst [vmem:[#allocation18_spill] sm:$0xff] %v4923_v51 }
 0x1a9   : > { %1396 = vrot.lane.b32.xlu1 %v4842_v47, %s4526_s21  ;;  %1402 = vrot.lane.b32.xlu0 %v4882_v27, %s4526_s21 }
 0x1aa   : > { %3650 = vmatmul.mubr.msk.bf16.vlgmr.msra.gmra.mrb[48].mxu1 %vm931_vm0, %v4814_v19 }
 0x1ab   : > { %3653 = vmatprep.mubr.msk.bf16.mxu1 %vm931_vm0, %v4827_v32  ;;  %v581_v58 = vpop.f32.mrb[36].mxu0  ;;  %3666 = vmatpush3.bf16.msra.mxu1 %v4853_v63 }
 0x1ac   : > { %v583_v60 = vpop.f32.mrb[37].mxu0  ;;  %3667 = vmatprep.subr.bf16.mxu1 %v4855_v1 }
 0x1ad   : > { %1400 = vrot.lane.b32.xlu1 %v4860_v9, %s4526_s21  ;;  %v585_v61 = vpop.f32.mrb[38].mxu0  ;;  %1723 = vrot.lane.b32.xlu0 %v4876_v23, %s4526_s21 }
 0x1ae   : > { %v4941_v62 = vpack.c.bf16 %v585_v61, %v581_v58  ;;  %v587_v2 = vpop.f32.mrb[39].mxu0 }
 0x1af   : > { %v4943_v19 = vpack.c.bf16 %v587_v2, %v583_v60  ;;  %3668 = vmatpush3.bf16.msra.mxu1 %v4855_v1 }
 0x1b0   : > { %3669 = vmatprep.subr.bf16.mxu1 %v4876_v23 }
 0x1b1   : > { %1404 = vrot.lane.b32.xlu1 %v4907_v48, %s4526_s21  ;;  %1729 = vrot.lane.b32.xlu0 %v4892_v38, %s4526_s21 }
 0x1b2   : > { %3654 = vmatmul.mubr.msk.bf16.gmra.mrb[52].mxu1 %vm931_vm0, %v4842_v47 }
 0x1b3   : > { %3657 = vmatprep.mubr.msk.bf16.mxu1 %vm931_vm0, %v4851_v59  ;;  %v591_v32 = vpop.f32.mrb[40].mxu0  ;;  %3670 = vmatpush3.bf16.msra.mxu1 %v4876_v23  ;;  %v3620_v23 = vpop.f32.mrb[34].mxu1 }
 0x1b4   : > { %v593_v3 = vpop.f32.mrb[41].mxu0  ;;  %3671 = vmatprep.subr.bf16.mxu1 %v4862_v11  ;;  %v5004_v22 = vpack.c.bf16 %v3620_v23, %v3619_v16  ;;  %v751_v25 = vpop.f32.mrb[35].mxu1  ;;  %v1988_v16 = vsel %vm931_vm0, %v4888_v29, 0 }
 0x1b5   : > { %1719 = vrot.lane.b32.xlu1 %v4853_v63, %s4526_s21  ;;  %v595_v4 = vpop.f32.mrb[42].mxu0  ;;  %1733 = vrot.lane.b32.xlu0 %v4909_v52, %s4526_s21  ;;  %v5006_v26 = vpack.c.bf16 %v751_v25, %v748_v20 }
 0x1b6   : > { %v4961_v5 = vpack.c.bf16 %v595_v4, %v591_v32  ;;  %v597_v6 = vpop.f32.mrb[43].mxu0 }
 0x1b7   : > { %v4963_v47 = vpack.c.bf16 %v597_v6, %v593_v3  ;;  %3672 = vmatpush3.bf16.msra.mxu1 %v4862_v11 }
 0x1b8   : > { %6132 = vst [vmem:[#allocation19_spill] sm:$0xff] %v4961_v5  ;;  %3673 = vmatprep.subr.bf16.mxu1 %v4890_v34 }
 0x1b9   : > { %1721 = vrot.lane.b32.xlu1 %v4855_v1, %s4526_s21  ;;  %2429 = vrot.lane.b32.xlu0 %v4943_v19, %s4526_s21 }
 0x1ba   : > { %3658 = vmatmul.mubr.msk.bf16.gmra.mrb[56].mxu1 %vm931_vm0, %v4860_v9 }
 0x1bb   : > { %3661 = vmatprep.mubr.msk.bf16.mxu1 %vm931_vm0, %v4882_v27  ;;  %v601_v59 = vpop.f32.mrb[44].mxu0  ;;  %3674 = vmatpush3.bf16.msra.mxu1 %v4890_v34  ;;  %v3623_v27 = vpop.f32.mrb[36].mxu1 }
 0x1bc   : > { %v603_v63 = vpop.f32.mrb[45].mxu0  ;;  %3675 = vmatprep.subr.bf16.mxu1 %v4892_v38  ;;  %v764_v28 = vpop.f32.mrb[37].mxu1 }
 0x1bd   : > { %1725 = vrot.lane.b32.xlu1 %v4862_v11, %s4526_s21  ;;  %v605_v7 = vpop.f32.mrb[46].mxu0  ;;  %v3624_v30 = vpop.f32.mrb[38].mxu1 }
 0x1be   : > { %v4979_v1 = vpack.c.bf16 %v605_v7, %v601_v59  ;;  %v607_v8 = vpop.f32.mrb[47].mxu0  ;;  %v5008_v33 = vpack.c.bf16 %v3624_v30, %v3623_v27  ;;  %v1970_v59 = vsel %vm931_vm0, %v4925_v57, 0 }
 0x1bf   : > { %v4981_v10 = vpack.c.bf16 %v607_v8, %v603_v63  ;;  %3676 = vmatpush3.bf16.msra.mxu1 %v4892_v38 }
 0x1c0   : > { %6133 = vst [vmem:[#allocation20_spill] sm:$0xff] %v4979_v1  ;;  %3677 = vmatprep.subr.bf16.mxu1 %v4911_v55 }
 0x1c1   : > { %1727 = vrot.lane.b32.xlu1 %v4890_v34, %s4526_s21  ;;  %v767_v34 = vpop.f32.mrb[39].mxu1 }
 0x1c2   : > { %3662 = vmatmul.mubr.msk.bf16.gmra.mrb[60].mxu1 %vm931_vm0, %v4907_v48  ;;  %v5010_v31 = vpack.c.bf16 %v767_v34, %v764_v28  ;;  %v3627_v36 = vpop.f32.mrb[40].mxu1 }
 0x1c3   : > { %3678 = vmatpush3.bf16.msra.mxu1 %v4911_v55  ;;  %v780_v43 = vpop.f32.mrb[41].mxu1 }
 0x1c4   : > { %3679 = vmatprep.subr.bf16.mxu1 %v4909_v52  ;;  %6134 = vst [vmem:[#allocation21_spill] sm:$0xff] %v5010_v31  ;;  %v3628_v39 = vpop.f32.mrb[42].mxu1 }
 0x1c5   : > { %1731 = vrot.lane.b32.xlu1 %v4911_v55, %s4526_s21  ;;  %v5014_v40 = vpack.c.bf16 %v3628_v39, %v3627_v36  ;;  %v783_v45 = vpop.f32.mrb[43].mxu1 }
 0x1c6   : > { %v5016_v48 = vpack.c.bf16 %v783_v45, %v780_v43  ;;  %v3631_v50 = vpop.f32.mrb[44].mxu1 }
 0x1c7   : > { %3680 = vmatpush3.bf16.msra.mxu1 %v4909_v52  ;;  %v796_v52 = vpop.f32.mrb[45].mxu1 }
 0x1c8   : > { %6135 = vst [vmem:[#allocation22_spill] sm:$0xff] %v5016_v48  ;;  %v3632_v53 = vpop.f32.mrb[46].mxu1 }
 0x1c9   : > { %2427 = vrot.lane.b32.xlu1 %v4925_v57, %s4526_s21  ;;  %v5018_v54 = vpack.c.bf16 %v3632_v53, %v3631_v50  ;;  %v799_v55 = vpop.f32.mrb[47].mxu1 }
 0x1ca   : > { %v5020_v44 = vpack.c.bf16 %v799_v55, %v796_v52 }
 0x1cc   : > { %6136 = vst [vmem:[#allocation23_spill] sm:$0xff] %v5020_v44 }
 0x1cd   : > { %2431 = vrot.lane.b32.xlu1 %v4963_v47, %s4526_s21 }
 0x1db   : > { %v1415_v9 = vpop.permute.xlu0 %1414 }
 0x1dc   : > { %3961 = vmatprep.subr.msk.bf16.mxu0 %vm931_vm0, %v1415_v9  ;;  %v1455_v11 = vsel %vm931_vm0, %v1415_v9, 0  ;;  %v1973_v9 = vsel %vm931_vm0, %v4943_v19, 0 }
 0x1dd   : > { %3698 = vmatpush3.bf16.xpose.msra.mxu0 %v1455_v11 }
 0x1e3   : > { %v1417_v12 = vpop.permute.xlu0 %1416 }
 0x1e4   : > { %3962 = vmatprep.subr.msk.bf16.mxu0 %vm931_vm0, %v1417_v12  ;;  %v1458_v14 = vsel %vm931_vm0, %v1417_v12, 0  ;;  %v1976_v12 = vsel %vm931_vm0, %v4963_v47, 0 }
 0x1e5   : > { %3700 = vmatpush3.bf16.xpose.msra.mxu0 %v1458_v14  ;;  %v1985_v14 = vsel %vm931_vm0, %v4880_v24, 0 }
 0x1eb   : > { %v1419_v17 = vpop.permute.xlu1 %1418 }
 0x1ec   : > { %3963 = vmatprep.subr.msk.bf16.mxu0 %vm931_vm0, %v1419_v17  ;;  %v1461_v18 = vsel %vm931_vm0, %v1419_v17, 0  ;;  %v1991_v17 = vsel %vm931_vm0, %v4905_v42, 0 }
 0x1ed   : > { %3702 = vmatpush3.bf16.xpose.msra.mxu0 %v1461_v18 }
 0x1f3   : > { %v1421_v38 = vpop.permute.xlu1 %1420 }
 0x1f4   : > { %3964 = vmatprep.subr.msk.bf16.mxu0 %vm931_vm0, %v1421_v38  ;;  %v1464_v41 = vsel %vm931_vm0, %v1421_v38, 0 }
 0x1f5   : > { %3704 = vmatpush3.bf16.xpose.msra.mxu0 %v1464_v41 }
 0x1fb   : > { %v1423_v13 = vpop.permute.xlu0 %1422 }
 0x1fc   : > { %3965 = vmatprep.subr.msk.bf16.mxu0 %vm931_vm0, %v1423_v13  ;;  %v1467_v46 = vsel %vm931_vm0, %v1423_v13, 0 }
 0x1fd   : > { %3706 = vmatpush3.bf16.xpose.msra.mxu0 %v1467_v46 }
 0x203   : > { %v1425_v49 = vpop.permute.xlu1 %1424 }
 0x204   : > { %3966 = vmatprep.subr.msk.bf16.mxu0 %vm931_vm0, %v1425_v49  ;;  %v1470_v56 = vsel %vm931_vm0, %v1425_v49, 0 }
 0x205   : > { %3708 = vmatpush3.bf16.xpose.msra.mxu0 %v1470_v56 }
 0x20b   : > { %v1427_v58 = vpop.permute.xlu0 %1426 }
 0x20c   : > { %3967 = vmatprep.subr.msk.bf16.mxu0 %vm931_vm0, %v1427_v58  ;;  %v1473_v60 = vsel %vm931_vm0, %v1427_v58, 0 }
 0x20d   : > { %3710 = vmatpush3.bf16.xpose.msra.mxu0 %v1473_v60 }
 0x20f   : > { %v1391_v61 = vpop.permute.xlu0 %1390 }
 0x210   : > { %3713 = vmatprep.mubr.msk.bf16.mxu0 %vm931_vm0, %v1391_v61 }
 0x213   : > { %v1429_v2 = vpop.permute.xlu1 %1428  ;;  %v1395_v6 = vpop.permute.xlu0 %1394 }
 0x214   : > { %3968 = vmatprep.subr.msk.bf16.mxu0 %vm931_vm0, %v1429_v2  ;;  %v1476_v32 = vsel %vm931_vm0, %v1429_v2, 0 }
 0x215   : > { %3712 = vmatpush3.bf16.xpose.msra.mxu0 %v1476_v32 }
 0x216   : > { %3969 = vmatprep.subr.msk.bf16.mxu0 %vm931_vm0, %v4925_v57 }
 0x217   : > { %v1393_v3 = vpop.permute.xlu1 %1392  ;;  %v1399_v8 = vpop.permute.xlu0 %1398 }
 0x21b   : > { %v1397_v4 = vpop.permute.xlu1 %1396  ;;  %v1403_v11 = vpop.permute.xlu0 %1402 }
 0x21c   : > { %3714 = vmatmul.mubr.msk.bf16.vlgmr.msra.gmra.mrb[48].mxu0 %vm931_vm0, %v1393_v3 }
 0x21d   : > { %3717 = vmatprep.mubr.msk.bf16.mxu0 %vm931_vm0, %v1395_v6  ;;  %3762 = vmatpush3.bf16.xpose.msra.mxu0 %v1970_v59 }
 0x21e   : > { %3970 = vmatprep.subr.msk.bf16.mxu0 %vm931_vm0, %v4943_v19  ;;  %v1979_v19 = vsel %vm931_vm0, %v4981_v10, 0 }
 0x21f   : > { %v1401_v63 = vpop.permute.xlu1 %1400 }
 0x223   : > { %v1405_v7 = vpop.permute.xlu1 %1404 }
 0x224   : > { %3718 = vmatmul.mubr.msk.bf16.gmra.mrb[52].mxu0 %vm931_vm0, %v1397_v4 }
 0x225   : > { %3721 = vmatprep.mubr.msk.bf16.mxu0 %vm931_vm0, %v1399_v8  ;;  %3764 = vmatpush3.bf16.xpose.msra.mxu0 %v1973_v9 }
 0x226   : > { %3971 = vmatprep.subr.msk.bf16.mxu0 %vm931_vm0, %v4963_v47  ;;  %v1982_v47 = vsel %vm931_vm0, %v4868_v0, 0 }
 0x227   : > { %v5045_v57 = vpop.permute.xlu1 %1719 }
 0x228   : > { %3729 = vmatprep.subr.bf16.mxu1 %v5045_v57 }
 0x22b   : > { %v5137_v8 = vpop.permute.xlu1 %1721 }
 0x22c   : > { %3722 = vmatmul.mubr.msk.bf16.gmra.mrb[56].mxu0 %vm931_vm0, %v1401_v63 }
 0x22d   : > { %3725 = vmatprep.mubr.msk.bf16.mxu0 %vm931_vm0, %v1403_v11  ;;  %3766 = vmatpush3.bf16.xpose.msra.mxu0 %v1976_v12 }
 0x22e   : > { %3972 = vmatprep.subr.msk.bf16.mxu0 %vm931_vm0, %v4981_v10 }
 0x234   : > { %3726 = vmatmul.mubr.msk.bf16.gmra.mrb[60].mxu0 %vm931_vm0, %v1405_v7 }
 0x235   : > { %3768 = vmatpush3.bf16.xpose.msra.mxu0 %v1979_v19  ;;  %3777 = vmatprep.mubr.msk.bf16.mxu0 %vm931_vm0, %v4923_v51 }
 0x236   : > { %3973 = vmatprep.subr.msk.bf16.mxu0 %vm931_vm0, %v4868_v0 }
 0x23d   : > { %3770 = vmatpush3.bf16.xpose.msra.mxu0 %v1982_v47 }
 0x23e   : > { %3974 = vmatprep.subr.msk.bf16.mxu0 %vm931_vm0, %v4880_v24 }
 0x245   : > { %3772 = vmatpush3.bf16.xpose.msra.mxu0 %v1985_v14  ;;  %v5144_v14 = vpop.permute.xlu1 %1725 }
 0x246   : > { %3975 = vmatprep.subr.msk.bf16.mxu0 %vm931_vm0, %v4888_v29 }
 0x24d   : > { %3774 = vmatpush3.bf16.xpose.msra.mxu0 %v1988_v16  ;;  %v5147_v16 = vpop.permute.xlu0 %1723 }
 0x24e   : > { %3976 = vmatprep.subr.msk.bf16.mxu0 %vm931_vm0, %v4905_v42 }
 0x255   : > { %3776 = vmatpush3.bf16.xpose.msra.mxu0 %v1991_v17 }
 0x25c   : > { %3778 = vmatmul.mubr.msk.bf16.vlgmr.msra.gmra.mrb[64].mxu0 %vm931_vm0, %v4941_v62 }
 0x25d   : > { %3781 = vmatprep.mubr.msk.bf16.mxu0 %vm931_vm0, %v4961_v5 }
 0x264   : > { %3782 = vmatmul.mubr.msk.bf16.gmra.mrb[68].mxu0 %vm931_vm0, %v4979_v1 }
 0x265   : > { %3785 = vmatprep.mubr.msk.bf16.mxu0 %vm931_vm0, %v4865_v15 }
 0x26c   : > { %3786 = vmatmul.mubr.msk.bf16.gmra.mrb[72].mxu0 %vm931_vm0, %v4874_v21 }
 0x26d   : > { %3789 = vmatprep.mubr.msk.bf16.mxu0 %vm931_vm0, %v4885_v35 }
 0x274   : > { %3790 = vmatmul.mubr.msk.bf16.gmra.mrb[76].mxu0 %vm931_vm0, %v4899_v37 }
 0x27d   : > { %v3651_v18 = vpop.f32.mrb[48].mxu1 }
 0x27e   : > { %v5089_v20 = vmul.f32 0.125, %v3651_v18  ;;  %v1014_v23 = vpop.f32.mrb[49].mxu1 }
 0x27f   : > { %v3652_v25 = vpop.f32.mrb[50].mxu1  ;;  %v5094_v30 = vmul.f32 0.125, %v1014_v23 }
 0x280   : > { %v1017_v27 = vpop.f32.mrb[51].mxu1  ;;  %1097 = vmax.xlane.f32.xlu0 %v5089_v20  ;;  %v5098_v38 = vmul.f32 0.125, %v3652_v25 }
 0x281   : > { %v5092_v28 = vmul.f32 0.125, %v1017_v27 }
 0x283   : > { %1095 = vmax.xlane.f32.xlu1 %v5092_v28 }
 0x284   : > { %1093 = vmax.xlane.f32.xlu0 %v5094_v30 }
 0x285   : > { %v3655_v34 = vpop.f32.mrb[52].mxu1 }
 0x286   : > { %v5100_v36 = vmul.f32 0.125, %v3655_v34  ;;  %v1030_v41 = vpop.f32.mrb[53].mxu1 }
 0x287   : > { %v3656_v43 = vpop.f32.mrb[54].mxu1  ;;  %v5104_v45 = vmul.f32 0.125, %v1030_v41  ;;  %v5155_v41 = vpop.permute.xlu1 %1727 }
 0x288   : > { %v1033_v39 = vpop.f32.mrb[55].mxu1  ;;  %1099 = vmax.xlane.f32.xlu0 %v5098_v38  ;;  %1105 = vmax.xlane.f32.xlu1 %v5100_v36  ;;  %v5106_v50 = vmul.f32 0.125, %v3656_v43 }
 0x289   : > { %v5110_v53 = vmul.f32 0.125, %v1033_v39 }
 0x28c   : > { %1107 = vmax.xlane.f32.xlu0 %v5106_v50  ;;  %1101 = vmax.xlane.f32.xlu1 %v5104_v45 }
 0x28d   : > { %v3659_v52 = vpop.f32.mrb[56].mxu1 }
 0x28e   : > { %v5112_v55 = vmul.f32 0.125, %v3659_v52  ;;  %v1046_v13 = vpop.f32.mrb[57].mxu1  ;;  %v5161_v52 = vpop.permute.xlu0 %1729 }
 0x28f   : > { %v3660_v46 = vpop.f32.mrb[58].mxu1  ;;  %v5116_v56 = vmul.f32 0.125, %v1046_v13 }
 0x290   : > { %v1049_v49 = vpop.f32.mrb[59].mxu1  ;;  %1103 = vmax.xlane.f32.xlu0 %v5110_v53  ;;  %1113 = vmax.xlane.f32.xlu1 %v5112_v55  ;;  %v5118_v58 = vmul.f32 0.125, %v3660_v46 }
 0x291   : > { %v5122_v61 = vmul.f32 0.125, %v1049_v49 }
 0x294   : > { %1115 = vmax.xlane.f32.xlu0 %v5118_v58  ;;  %1109 = vmax.xlane.f32.xlu1 %v5116_v56 }
 0x295   : > { %v3663_v60 = vpop.f32.mrb[60].mxu1 }
 0x296   : > { %v5124_v2 = vmul.f32 0.125, %v3663_v60  ;;  %v1062_v32 = vpop.f32.mrb[61].mxu1 }
 0x297   : > { %v3664_v3 = vpop.f32.mrb[62].mxu1  ;;  %v5128_v6 = vmul.f32 0.125, %v1062_v32 }
 0x298   : > { %v1065_v4 = vpop.f32.mrb[63].mxu1  ;;  %1111 = vmax.xlane.f32.xlu0 %v5122_v61  ;;  %1121 = vmax.xlane.f32.xlu1 %v5124_v2  ;;  %v5130_v59 = vmul.f32 0.125, %v3664_v3  ;;  %v5169_v3 = vpop.permute.xlu1 %1731 }
 0x299   : > { %v5134_v63 = vmul.f32 0.125, %v1065_v4 }
 0x29c   : > { %1123 = vmax.xlane.f32.xlu0 %v5130_v59  ;;  %1117 = vmax.xlane.f32.xlu1 %v5128_v6 }
 0x2a0   : > { %1119 = vmax.xlane.f32.xlu0 %v5134_v63 }
 0x2ef   : > { %v3715_v7 = vpop.f32.mrb[48].mxu0 }
 0x2f0   : > { %v5139_v9 = vmul.f32 0.125, %v3715_v7  ;;  %v1512_v11 = vpop.f32.mrb[49].mxu0  ;;  %v5173_v7 = vpop.permute.xlu0 %1733 }
 0x2f1   : > { %v3716_v12 = vpop.f32.mrb[50].mxu0  ;;  %v5142_v47 = vmul.f32 0.125, %v1512_v11 }
 0x2f2   : > { %1595 = vmax.xlane.f32.xlu0 %v5139_v9  ;;  %v1515_v19 = vpop.f32.mrb[51].mxu0  ;;  %v5149_v18 = vmul.f32 0.125, %v3716_v12 }
 0x2f3   : > { %v5157_v43 = vmul.f32 0.125, %v1515_v19 }
 0x2f4   : > { %v5187_v37 = vpop.permute.xlu0 %2429 }
 0x2f5   : > { %6138 = vst [vmem:[#allocation25_spill] sm:$0xff] %v5187_v37 }
 0x2f6   : > { %1591 = vmax.xlane.f32.xlu0 %v5142_v47 }
 0x2f7   : > { %v3719_v17 = vpop.f32.mrb[52].mxu0 }
 0x2f8   : > { %v5151_v23 = vmul.f32 0.125, %v3719_v17  ;;  %v1528_v25 = vpop.f32.mrb[53].mxu0  ;;  %v5181_v17 = vpop.permute.xlu1 %2427 }
 0x2f9   : > { %v3720_v27 = vpop.f32.mrb[54].mxu0  ;;  %v5159_v39 = vmul.f32 0.125, %v1528_v25  ;;  %6137 = vst [vmem:[#allocation24_spill] sm:$0xff] %v5181_v17 }
 0x2fa   : > { %1597 = vmax.xlane.f32.xlu0 %v5149_v18  ;;  %1603 = vmax.xlane.f32.xlu1 %v5151_v23  ;;  %v1531_v34 = vpop.f32.mrb[55].mxu0  ;;  %v5165_v46 = vmul.f32 0.125, %v3720_v27 }
 0x2fb   : > { %v5167_v49 = vmul.f32 0.125, %v1531_v34 }
 0x2fe   : > { %1593 = vmax.xlane.f32.xlu0 %v5157_v43  ;;  %1599 = vmax.xlane.f32.xlu1 %v5159_v39 }
 0x2ff   : > { %v3723_v13 = vpop.f32.mrb[56].mxu0 }
 0x300   : > { %v1544_v60 = vpop.f32.mrb[57].mxu0  ;;  %v5175_v11 = vmul.f32 0.125, %v3723_v13 }
 0x301   : > { %v3724_v32 = vpop.f32.mrb[58].mxu0  ;;  %v5183_v25 = vmul.f32 0.125, %v1544_v60 }
 0x302   : > { %1605 = vmax.xlane.f32.xlu1 %v5165_v46  ;;  %1601 = vmax.xlane.f32.xlu0 %v5167_v49  ;;  %v1547_v4 = vpop.f32.mrb[59].mxu0  ;;  %v5177_v12 = vmul.f32 0.125, %v3724_v32  ;;  %v5191_v32 = vpop.permute.xlu1 %2431 }
 0x303   : > { %v5185_v27 = vmul.f32 0.125, %v1547_v4  ;;  %6139 = vst [vmem:[#allocation26_spill] sm:$0xff] %v5191_v32 }
 0x306   : > { %1611 = vmax.xlane.f32.xlu1 %v5175_v11  ;;  %1613 = vmax.xlane.f32.xlu0 %v5177_v12 }
 0x307   : > { %v3727_v19 = vpop.f32.mrb[60].mxu0 }
 0x308   : > { %v1560_v34 = vpop.f32.mrb[61].mxu0  ;;  %v5193_v15 = vmul.f32 0.125, %v3727_v19 }
 0x309   : > { %v3728_v21 = vpop.f32.mrb[62].mxu0  ;;  %v5199_v60 = vmul.f32 0.125, %v1560_v34 }
 0x30a   : > { %1607 = vmax.xlane.f32.xlu1 %v5183_v25  ;;  %1609 = vmax.xlane.f32.xlu0 %v5185_v27  ;;  %v1563_v13 = vpop.f32.mrb[63].mxu0  ;;  %v5195_v44 = vmul.f32 0.125, %v3728_v21 }
 0x30b   : > { %v5201_v4 = vmul.f32 0.125, %v1563_v13 }
 0x30d   : > { %v1098_v17 = vpop.xlane.xlu0 %1097 }
 0x30e   : > { %1619 = vmax.xlane.f32.xlu1 %v5193_v15  ;;  %1621 = vmax.xlane.f32.xlu0 %v5195_v44  ;;  %v1127_v1 = vsub.f32 %v5089_v20, %v1098_v17 }
 0x310   : > { %v1096_v37 = vpop.xlane.xlu1 %1095  ;;  %v1145_v51 = vmul.f32 1.442695, %v1127_v1 }
 0x311   : > { %v1126_v5 = vsub.f32 %v5092_v28, %v1096_v37  ;;  %v1094_v48 = vpop.xlane.xlu0 %1093 }
 0x312   : > { %v1125_v19 = vsub.f32 %v5094_v30, %v1094_v48  ;;  %1615 = vmax.xlane.f32.xlu1 %v5199_v60  ;;  %1617 = vmax.xlane.f32.xlu0 %v5201_v4 }
 0x313   : > { %v1143_v21 = vmul.f32 1.442695, %v1126_v5 }
 0x314   : > { %v1141_v32 = vmul.f32 1.442695, %v1125_v19 }
 0x315   : > { %4102 = vpow2.f32 %v1143_v21  ;;  %v1100_v34 = vpop.xlane.xlu0 %1099  ;;  %v1106_v42 = vpop.xlane.xlu1 %1105 }
 0x316   : > { %4104 = vpow2.f32 %v1141_v32  ;;  %v1128_v13 = vsub.f32 %v5098_v38, %v1100_v34  ;;  %v1131_v30 = vsub.f32 %v5100_v36, %v1106_v42 }
 0x317   : > { %4106 = vpow2.f32 %v1145_v51 }
 0x318   : > { %v1147_v31 = vmul.f32 1.442695, %v1128_v13  ;;  %v1153_v51 = vmul.f32 1.442695, %v1131_v30 }
 0x319   : > { %v1108_v20 = vpop.xlane.xlu0 %1107  ;;  %v1102_v37 = vpop.xlane.xlu1 %1101 }
 0x31a   : > { %4108 = vpow2.f32 %v1147_v31  ;;  %v1132_v48 = vsub.f32 %v5106_v50, %v1108_v20  ;;  %v1129_v28 = vsub.f32 %v5104_v45, %v1102_v37 }
 0x31c   : > { %v1155_v5 = vmul.f32 1.442695, %v1132_v48  ;;  %v1149_v17 = vmul.f32 1.442695, %v1129_v28 }
 0x31d   : > { %v1104_v1 = vpop.xlane.xlu0 %1103  ;;  %v1114_v19 = vpop.xlane.xlu1 %1113 }
 0x31e   : > { %v1130_v21 = vsub.f32 %v5110_v53, %v1104_v1  ;;  %4110 = vpow2.f32 %v1155_v5  ;;  %v1135_v20 = vsub.f32 %v5112_v55, %v1114_v19 }
 0x31f   : > { %v5213_v32 = vpop.eup %4102  ;;  %4112 = vpow2.f32 %v1149_v17 }
 0x320   : > { %v5215_v38 = vpop.eup %4104  ;;  %v1151_v34 = vmul.f32 1.442695, %v1130_v21 }
 0x321   : > { %v1116_v31 = vpop.xlane.xlu0 %1115  ;;  %v1110_v50 = vpop.xlane.xlu1 %1109  ;;  %v1205_v45 = vpack.c.bf16 %v5213_v32, %v5215_v38 }
 0x322   : > { %4114 = vpow2.f32 %v1151_v34  ;;  %v1136_v42 = vsub.f32 %v5118_v58, %v1116_v31  ;;  %v1133_v36 = vsub.f32 %v5116_v56, %v1110_v50  ;;  %v5221_v13 = vpop.eup %4106  ;;  %v1161_v58 = vmul.f32 1.442695, %v1135_v20 }
 0x323   : > { %3681 = vmatprep.mubr.bf16.mxu1 %v1205_v45  ;;  %4116 = vpow2.f32 %v1153_v51 }
 0x324   : > { %v5223_v53 = vpop.eup %4108  ;;  %v1163_v37 = vmul.f32 1.442695, %v1136_v42  ;;  %v1157_v48 = vmul.f32 1.442695, %v1133_v36 }
 0x325   : > { %v1112_v28 = vpop.xlane.xlu0 %1111  ;;  %v1122_v30 = vpop.xlane.xlu1 %1121  ;;  %v1206_v5 = vpack.c.bf16 %v5223_v53, %v5221_v13 }
 0x326   : > { %v1134_v17 = vsub.f32 %v5122_v61, %v1112_v28  ;;  %4118 = vpow2.f32 %v1163_v37  ;;  %v1139_v31 = vsub.f32 %v5124_v2, %v1122_v30 }
 0x327   : > { %3682 = vmatmul.mubr.bf16.vlgmr.msra.gmra.mrb[64].mxu1 %v1206_v5  ;;  %4120 = vpow2.f32 %v1157_v48 }
 0x328   : > { %v1159_v56 = vmul.f32 1.442695, %v1134_v17  ;;  %3730 = vmatpush3.bf16.msra.mxu1 %v5045_v57  ;;  %v5231_v55 = vpop.eup %4110  ;;  %v1169_v2 = vmul.f32 1.442695, %v1139_v31 }
 0x329   : > { %v1124_v1 = vpop.xlane.xlu0 %1123  ;;  %v1118_v21 = vpop.xlane.xlu1 %1117  ;;  %3731 = vmatprep.subr.bf16.mxu1 %v5137_v8 }
 0x32a   : > { %4122 = vpow2.f32 %v1159_v56  ;;  %v1140_v19 = vsub.f32 %v5130_v59, %v1124_v1  ;;  %v1137_v51 = vsub.f32 %v5128_v6, %v1118_v21  ;;  %v5235_v34 = vpop.eup %4112 }
 0x32b   : > { %4124 = vpow2.f32 %v1161_v58 }
 0x32c   : > { %v5237_v61 = vpop.eup %4114  ;;  %v1171_v57 = vmul.f32 1.442695, %v1140_v19  ;;  %3732 = vmatpush3.bf16.msra.mxu1 %v5137_v8  ;;  %v1165_v50 = vmul.f32 1.442695, %v1137_v51 }
 0x32d   : > { %v1120_v45 = vpop.xlane.xlu0 %1119  ;;  %3733 = vmatprep.subr.bf16.mxu1 %v5147_v16  ;;  %v1207_v42 = vpack.c.bf16 %v5237_v61, %v5235_v34  ;;  %v5244_v59 = vpop.eup %4116 }
 0x32e   : > { %v1138_v6 = vsub.f32 %v5134_v63, %v1120_v45  ;;  %v1208_v36 = vpack.c.bf16 %v5231_v55, %v5244_v59  ;;  %4126 = vpow2.f32 %v1171_v57 }
 0x32f   : > { %3685 = vmatprep.mubr.bf16.mxu1 %v1207_v42  ;;  %v3779_v20 = vpop.f32.mrb[64].mxu0  ;;  %4128 = vpow2.f32 %v1165_v50 }
 0x330   : > { %v1167_v37 = vmul.f32 1.442695, %v1138_v6  ;;  %3734 = vmatpush3.bf16.msra.mxu1 %v5147_v16  ;;  %v5250_v8 = vmul.f32 0.125, %v3779_v20  ;;  %v2027_v48 = vpop.f32.mrb[65].mxu0  ;;  %v5253_v30 = vpop.eup %4118 }
 0x331   : > { %3686 = vmatmul.mubr.bf16.gmra.mrb[68].mxu1 %v1208_v36  ;;  %3735 = vmatprep.subr.bf16.mxu1 %v5144_v14  ;;  %v3780_v28 = vpop.f32.mrb[66].mxu0  ;;  %v5258_v17 = vpop.eup %4120  ;;  %v5262_v16 = vmul.f32 0.125, %v2027_v48 }
 0x332   : > { %4130 = vpow2.f32 %v1167_v37  ;;  %v5255_v63 = vmul.f32 0.125, %v3780_v28  ;;  %2110 = vmax.xlane.f32.xlu1 %v5250_v8  ;;  %v2030_v5 = vpop.f32.mrb[67].mxu0  ;;  %6140 = vst [vmem:[#allocation27_spill] sm:$0xff] %v5258_v17 }
 0x333   : > { %4132 = vpow2.f32 %v1169_v2  ;;  %v5271_v21 = vmul.f32 0.125, %v2030_v5 }
 0x334   : > { %v5260_v58 = vpop.eup %4122  ;;  %3736 = vmatpush3.bf16.msra.mxu1 %v5144_v14  ;;  %2112 = vmax.xlane.f32.xlu0 %v5255_v63 }
 0x335   : > { %3737 = vmatprep.subr.bf16.mxu1 %v5155_v41  ;;  %v1209_v56 = vpack.c.bf16 %v5260_v58, %v5258_v17  ;;  %v5269_v1 = vpop.eup %4124 }
 0x336   : > { %6141 = vst [vmem:[#allocation28_spill] sm:$0xff] %v5269_v1  ;;  %2106 = vmax.xlane.f32.xlu1 %v5262_v16  ;;  %v1210_v19 = vpack.c.bf16 %v5253_v30, %v5269_v1 }
 0x337   : > { %3689 = vmatprep.mubr.bf16.mxu1 %v1209_v56  ;;  %v3783_v51 = vpop.f32.mrb[68].mxu0 }
 0x338   : > { %3738 = vmatpush3.bf16.msra.mxu1 %v5155_v41  ;;  %v5277_v14 = vmul.f32 0.125, %v3783_v51  ;;  %2108 = vmax.xlane.f32.xlu0 %v5271_v21  ;;  %v2043_v31 = vpop.f32.mrb[69].mxu0  ;;  %v5283_v45 = vpop.eup %4126 }
 0x339   : > { %3690 = vmatmul.mubr.bf16.gmra.mrb[72].mxu1 %v1210_v19  ;;  %v5280_v57 = vmul.f32 0.125, %v2043_v31  ;;  %3739 = vmatprep.subr.bf16.mxu1 %v5161_v52  ;;  %v3784_v50 = vpop.f32.mrb[70].mxu0  ;;  %v5286_v6 = vpop.eup %4128 }
 0x33a   : > { %2118 = vmax.xlane.f32.xlu1 %v5277_v14  ;;  %v2046_v42 = vpop.f32.mrb[71].mxu0  ;;  %6142 = vst [vmem:[#allocation29_spill] sm:$0xff] %v5286_v6  ;;  %v5297_v2 = vmul.f32 0.125, %v3784_v50 }
 0x33b   : > { %v5306_v56 = vmul.f32 0.125, %v2046_v42 }
 0x33c   : > { %v5288_v36 = vpop.eup %4130  ;;  %3740 = vmatpush3.bf16.msra.mxu1 %v5161_v52  ;;  %2114 = vmax.xlane.f32.xlu0 %v5280_v57 }
 0x33d   : > { %3741 = vmatprep.subr.bf16.mxu1 %v5169_v3  ;;  %v1211_v41 = vpack.c.bf16 %v5288_v36, %v5286_v6  ;;  %v5295_v20 = vpop.eup %4132 }
 0x33e   : > { %6143 = vst [vmem:[#allocation30_spill] sm:$0xff] %v5295_v20  ;;  %v1212_v37 = vpack.c.bf16 %v5283_v45, %v5295_v20 }
 0x33f   : > { %3693 = vmatprep.mubr.bf16.mxu1 %v1211_v41  ;;  %v3787_v48 = vpop.f32.mrb[72].mxu0 }
 0x340   : > { %3742 = vmatpush3.bf16.msra.mxu1 %v5169_v3  ;;  %2120 = vmax.xlane.f32.xlu0 %v5297_v2  ;;  %v2059_v52 = vpop.f32.mrb[73].mxu0  ;;  %v5314_v3 = vmul.f32 0.125, %v3787_v48 }
 0x341   : > { %3694 = vmatmul.mubr.bf16.gmra.mrb[76].mxu1 %v1212_v37  ;;  %v5303_v28 = vmul.f32 0.125, %v2059_v52  ;;  %3743 = vmatprep.subr.bf16.mxu1 %v5173_v7  ;;  %v3788_v5 = vpop.f32.mrb[74].mxu0 }
 0x342   : > { %v2062_v19 = vpop.f32.mrb[75].mxu0  ;;  %v5318_v41 = vmul.f32 0.125, %v3788_v5 }
 0x343   : > { %2122 = vmax.xlane.f32.xlu1 %v5303_v28  ;;  %v5311_v51 = vmul.f32 0.125, %v2062_v19 }
 0x344   : > { %3744 = vmatpush3.bf16.msra.mxu1 %v5173_v7  ;;  %2116 = vmax.xlane.f32.xlu0 %v5306_v56 }
 0x345   : > { %3793 = vmatprep.subr.bf16.mxu1 %v5006_v26 }
 0x347   : > { %2124 = vmax.xlane.f32.xlu1 %v5311_v51  ;;  %v3791_v31 = vpop.f32.mrb[76].mxu0 }
 0x348   : > { %2126 = vmax.xlane.f32.xlu0 %v5314_v3  ;;  %v2075_v50 = vpop.f32.mrb[77].mxu0  ;;  %v5321_v7 = vmul.f32 0.125, %v3791_v31 }
 0x349   : > { %v3792_v42 = vpop.f32.mrb[78].mxu0  ;;  %v5324_v52 = vmul.f32 0.125, %v2075_v50 }
 0x34a   : > { %v2078_v37 = vpop.f32.mrb[79].mxu0  ;;  %6144 = vst [vmem:[#allocation31_spill] sm:$0xff] %v5321_v7  ;;  %v5333_v48 = vmul.f32 0.125, %v3792_v42 }
 0x34b   : > { %6145 = vst [vmem:[#allocation32_spill] sm:$0xff] %v5324_v52  ;;  %v5339_v6 = vmul.f32 0.125, %v2078_v37 }
 0x34c   : > { %2128 = vmax.xlane.f32.xlu0 %v5318_v41  ;;  %6146 = vst [vmem:[#allocation33_spill] sm:$0xff] %v5333_v48 }
 0x350   : > { %2134 = vmax.xlane.f32.xlu0 %v5321_v7 }
 0x354   : > { %2130 = vmax.xlane.f32.xlu0 %v5324_v52 }
 0x358   : > { %2433 = vrot.lane.b32.xlu1 %v4981_v10, %s4526_s21 }
 0x36a   : > { %2435 = vrot.lane.b32.xlu0 %v4868_v0, %s4526_s21 }
 0x36e   : > { %2437 = vrot.lane.b32.xlu0 %v4880_v24, %s4526_s21 }
 0x37c   : > { %2136 = vmax.xlane.f32.xlu1 %v5333_v48 }
 0x37f   : > { %v1596_v5 = vpop.xlane.xlu0 %1595 }
 0x380   : > { %v1625_v10 = vsub.f32 %v5139_v9, %v1596_v5 }
 0x382   : > { %v1643_v17 = vmul.f32 1.442695, %v1625_v10 }
 0x383   : > { %v1592_v19 = vpop.xlane.xlu0 %1591 }
 0x384   : > { %v1623_v31 = vsub.f32 %v5142_v47, %v1592_v19 }
 0x386   : > { %v1639_v20 = vmul.f32 1.442695, %v1623_v31 }
 0x387   : > { %v1598_v50 = vpop.xlane.xlu0 %1597  ;;  %v1604_v7 = vpop.xlane.xlu1 %1603 }
 0x388   : > { %v1626_v52 = vsub.f32 %v5149_v18, %v1598_v50  ;;  %4134 = vpow2.f32 %v1639_v20 }
 0x38a   : > { %v1645_v0 = vmul.f32 1.442695, %v1626_v52 }
 0x38b   : > { %v1594_v1 = vpop.xlane.xlu0 %1593  ;;  %v1600_v24 = vpop.xlane.xlu1 %1599 }
 0x38c   : > { %v1624_v42 = vsub.f32 %v5157_v43, %v1594_v1  ;;  %v1627_v48 = vsub.f32 %v5159_v39, %v1600_v24  ;;  %4136 = vpow2.f32 %v1645_v0  ;;  %v1629_v43 = vsub.f32 %v5151_v23, %v1604_v7 }
 0x38d   : > { %2405 = vrot.lane.b32.xlu1 %v4941_v62, %s4526_s21  ;;  %2132 = vmax.xlane.f32.xlu0 %v5339_v6 }
 0x38e   : > { %v1641_v47 = vmul.f32 1.442695, %v1624_v42  ;;  %v1647_v37 = vmul.f32 1.442695, %v1627_v48  ;;  %v1651_v19 = vmul.f32 1.442695, %v1629_v43 }
 0x38f   : > { %v1606_v9 = vpop.xlane.xlu1 %1605  ;;  %v1602_v18 = vpop.xlane.xlu0 %1601 }
 0x390   : > { %4138 = vpow2.f32 %v1641_v47  ;;  %v1630_v52 = vsub.f32 %v5165_v46, %v1606_v9  ;;  %v1628_v5 = vsub.f32 %v5167_v49, %v1602_v18 }
 0x391   : > { %4140 = vpow2.f32 %v1643_v17  ;;  %2415 = vrot.lane.b32.xlu1 %v4885_v35, %s4526_s21 }
 0x392   : > { %v1649_v62 = vmul.f32 1.442695, %v1628_v5  ;;  %v1653_v39 = vmul.f32 1.442695, %v1630_v52  ;;  %4142 = vpow2.f32 %v1647_v37  ;;  %v5355_v7 = vpop.eup %4134 }
 0x393   : > { %v1612_v1 = vpop.xlane.xlu1 %1611  ;;  %v1614_v20 = vpop.xlane.xlu0 %1613 }
 0x394   : > { %4144 = vpow2.f32 %v1649_v62  ;;  %v1633_v46 = vsub.f32 %v5175_v11, %v1612_v1  ;;  %v1634_v49 = vsub.f32 %v5177_v12, %v1614_v20 }
 0x395   : > { %2734 = vrot.lane.b32.xlu1 %v5004_v22, %s4526_s21  ;;  %4146 = vpow2.f32 %v1653_v39 }
 0x396   : > { %v5359_v31 = vpop.eup %4136  ;;  %4148 = vpow2.f32 %v1651_v19  ;;  %v1659_v11 = vmul.f32 1.442695, %v1633_v46  ;;  %v1661_v24 = vmul.f32 1.442695, %v1634_v49 }
 0x397   : > { %v1608_v17 = vpop.xlane.xlu1 %1607  ;;  %v1610_v23 = vpop.xlane.xlu0 %1609 }
 0x398   : > { %v1631_v35 = vsub.f32 %v5183_v25, %v1608_v17  ;;  %v1632_v48 = vsub.f32 %v5185_v27, %v1610_v23 }
 0x399   : > { %2738 = vrot.lane.b32.xlu1 %v5008_v33, %s4526_s21 }
 0x39a   : > { %v5363_v50 = vpop.eup %4138  ;;  %v1655_v10 = vmul.f32 1.442695, %v1631_v35  ;;  %v1657_v0 = vmul.f32 1.442695, %v1632_v48 }
 0x39b   : > { %v5365_v12 = vpop.eup %4140  ;;  %v1620_v42 = vpop.xlane.xlu1 %1619  ;;  %v1703_v25 = vpack.c.bf16 %v5363_v50, %v5355_v7 }
 0x39c   : > { %v1622_v47 = vpop.xlane.xlu0 %1621  ;;  %4150 = vpow2.f32 %v1655_v10  ;;  %v1704_v27 = vpack.c.bf16 %v5359_v31, %v5365_v12  ;;  %v5373_v9 = vpop.eup %4142  ;;  %v1637_v18 = vsub.f32 %v5193_v15, %v1620_v42  ;;  %v6150_v10 = vld [vmem:[#allocation22_spill] sm:$0xff] }
 0x39d   : > { %4152 = vpow2.f32 %v1657_v0  ;;  %3745 = vmatprep.mubr.bf16.mxu1 %v1703_v25  ;;  %2742 = vrot.lane.b32.xlu1 %v5014_v40, %s4526_s21  ;;  %v1638_v52 = vsub.f32 %v5195_v44, %v1622_v47  ;;  %v6151_v47 = vld [vmem:[#allocation19_spill] sm:$0xff] }
 0x39e   : > { %4154 = vpow2.f32 %v1659_v11  ;;  %3746 = vmatmul.mubr.bf16.vlgmr.msra.gmra.mrb[80].mxu1 %v1704_v27  ;;  %v5376_v37 = vpop.eup %4144  ;;  %v1667_v20 = vmul.f32 1.442695, %v1637_v18  ;;  %v6149_v11 = vld [vmem:[#allocation18_spill] sm:$0xff]  ;;  %v6152_v18 = vld [vmem:[#allocation20_spill] sm:$0xff] }
 0x39f   : > { %4156 = vpow2.f32 %v1661_v24  ;;  %3794 = vmatpush3.bf16.msra.mxu1 %v5006_v26  ;;  %v1616_v5 = vpop.xlane.xlu1 %1615  ;;  %v1705_v1 = vpack.c.bf16 %v5376_v37, %v5373_v9  ;;  %v5385_v15 = vpop.eup %4146  ;;  %v1669_v49 = vmul.f32 1.442695, %v1638_v52  ;;  %v6153_v52 = vld [vmem:[#allocation23_spill] sm:$0xff] }
 0x3a0   : > { %v1618_v43 = vpop.xlane.xlu0 %1617  ;;  %3795 = vmatprep.subr.bf16.mxu1 %v5004_v22  ;;  %v1635_v62 = vsub.f32 %v5199_v60, %v1616_v5  ;;  %v5389_v46 = vpop.eup %4148  ;;  %v6147_v60 = vld [vmem:[#allocation21_spill] sm:$0xff] }
 0x3a1   : > { %v1636_v39 = vsub.f32 %v5201_v4, %v1618_v43  ;;  %2746 = vrot.lane.b32.xlu1 %v5018_v54, %s4526_s21  ;;  %3749 = vmatprep.mubr.bf16.mxu1 %v1705_v1  ;;  %v1706_v4 = vpack.c.bf16 %v5385_v15, %v5389_v46  ;;  %v6154_v43 = vld [vmem:[#allocation14_spill] sm:$0xff]  ;;  %v6157_v1 = vld [vmem:[#allocation16_spill] sm:$0xff] }
 0x3a2   : > { %v1663_v44 = vmul.f32 1.442695, %v1635_v62  ;;  %v6156_v62 = vld [vmem:[#allocation24_spill] sm:$0xff] }
 0x3a3   : > { %v1665_v19 = vmul.f32 1.442695, %v1636_v39  ;;  %3796 = vmatpush3.bf16.msra.mxu1 %v5004_v22  ;;  %2439 = vrot.lane.b32.xlu0 %v4888_v29, %s4526_s21  ;;  %v6148_v22 = vld [vmem:[#allocation17_spill] sm:$0xff] }
 0x3a4   : > { %4158 = vpow2.f32 %v1663_v44  ;;  %3797 = vmatprep.subr.bf16.mxu1 %v6147_v60 }
 0x3a5   : > { %4160 = vpow2.f32 %v1665_v19 }
 0x3a6   : > { %v5397_v17 = vpop.eup %4150  ;;  %4162 = vpow2.f32 %v1667_v20  ;;  %3750 = vmatmul.mubr.bf16.gmra.mrb[84].mxu1 %v1706_v4 }
 0x3a7   : > { %v5399_v23 = vpop.eup %4152  ;;  %4164 = vpow2.f32 %v1669_v49  ;;  %3798 = vmatpush3.bf16.msra.mxu1 %v6147_v60  ;;  %2441 = vrot.lane.b32.xlu0 %v6148_v22, %s4526_s21 }
 0x3a8   : > { %v5404_v29 = vpop.eup %4154  ;;  %3799 = vmatprep.subr.bf16.mxu1 %v5008_v33  ;;  %v1707_v35 = vpack.c.bf16 %v5399_v23, %v5397_v17 }
 0x3a9   : > { %v5409_v48 = vpop.eup %4156 }
 0x3aa   : > { %3753 = vmatprep.mubr.bf16.mxu1 %v1707_v35  ;;  %v1708_v0 = vpack.c.bf16 %v5409_v48, %v5404_v29 }
 0x3ab   : > { %3800 = vmatpush3.bf16.msra.mxu1 %v5008_v33  ;;  %2403 = vrot.lane.b32.xlu0 %v6149_v11, %s4526_s21 }
 0x3ac   : > { %3801 = vmatprep.subr.bf16.mxu1 %v6150_v10 }
 0x3ae   : > { %v5417_v24 = vpop.eup %4158  ;;  %3754 = vmatmul.mubr.bf16.gmra.mrb[88].mxu1 %v1708_v0 }
 0x3af   : > { %v5419_v42 = vpop.eup %4160  ;;  %3802 = vmatpush3.bf16.msra.mxu1 %v6150_v10  ;;  %2407 = vrot.lane.b32.xlu0 %v6151_v47, %s4526_s21 }
 0x3b0   : > { %v5424_v25 = vpop.eup %4162  ;;  %3803 = vmatprep.subr.bf16.mxu1 %v5014_v40  ;;  %v1709_v33 = vpack.c.bf16 %v5419_v42, %v5417_v24 }
 0x3b1   : > { %v5429_v27 = vpop.eup %4164 }
 0x3b2   : > { %3757 = vmatprep.mubr.bf16.mxu1 %v1709_v33  ;;  %v1710_v5 = vpack.c.bf16 %v5429_v27, %v5424_v25 }
 0x3b3   : > { %3804 = vmatpush3.bf16.msra.mxu1 %v5014_v40  ;;  %2409 = vrot.lane.b32.xlu0 %v6152_v18, %s4526_s21  ;;  %v6155_v40 = vld [vmem:[#allocation15_spill] sm:$0xff] }
 0x3b4   : > { %3805 = vmatprep.subr.bf16.mxu1 %v6153_v52 }
 0x3b6   : > { %3758 = vmatmul.mubr.bf16.gmra.mrb[92].mxu1 %v1710_v5 }
 0x3b7   : > { %3806 = vmatpush3.bf16.msra.mxu1 %v6153_v52  ;;  %2411 = vrot.lane.b32.xlu0 %v6154_v43, %s4526_s21 }
 0x3b8   : > { %3807 = vmatprep.subr.bf16.mxu1 %v5018_v54 }
 0x3bb   : > { %3808 = vmatpush3.bf16.msra.mxu1 %v5018_v54  ;;  %2413 = vrot.lane.b32.xlu0 %v6155_v40, %s4526_s21 }
 0x3bc   : > { %3977 = vmatprep.subr.msk.bf16.mxu1 %vm931_vm0, %v6156_v62 }
 0x3bf   : > { %v2111_v39 = vpop.xlane.xlu1 %2110  ;;  %2417 = vrot.lane.b32.xlu0 %v6157_v1, %s4526_s21 }
 0x3c0   : > { %v2140_v19 = vsub.f32 %v5250_v8, %v2111_v39 }
 0x3c1   : > { %v2113_v20 = vpop.xlane.xlu0 %2112 }
 0x3c2   : > { %v2141_v44 = vsub.f32 %v5255_v63, %v2113_v20  ;;  %v2158_v0 = vmul.f32 1.442695, %v2140_v19 }
 0x3c3   : > { %v2107_v49 = vpop.xlane.xlu1 %2106  ;;  %2732 = vrot.lane.b32.xlu0 %v5006_v26, %s4526_s21 }
 0x3c4   : > { %v2160_v54 = vmul.f32 1.442695, %v2141_v44  ;;  %v2138_v4 = vsub.f32 %v5262_v16, %v2107_v49  ;;  %v6158_v49 = vld [vmem:[#allocation25_spill] sm:$0xff] }
 0x3c5   : > { %v2109_v22 = vpop.xlane.xlu0 %2108  ;;  %1175 = vadd.xlane.f32.xlu1 %v5213_v32 }
 0x3c6   : > { %v2154_v35 = vmul.f32 1.442695, %v2138_v4  ;;  %v2139_v11 = vsub.f32 %v5271_v21, %v2109_v22  ;;  %4166 = vpow2.f32 %v2160_v54 }
 0x3c7   : > { %2736 = vrot.lane.b32.xlu0 %v6147_v60, %s4526_s21  ;;  %v2119_v26 = vpop.xlane.xlu1 %2118 }
 0x3c8   : > { %v2156_v63 = vmul.f32 1.442695, %v2139_v11  ;;  %4168 = vpow2.f32 %v2154_v35  ;;  %v2144_v60 = vsub.f32 %v5277_v14, %v2119_v26  ;;  %v2471_v35 = vsel %vm931_vm0, %v6158_v49, 0 }
 0x3c9   : > { %v2115_v8 = vpop.xlane.xlu0 %2114  ;;  %1179 = vadd.xlane.f32.xlu1 %v5223_v53 }
 0x3ca   : > { %4170 = vpow2.f32 %v2156_v63  ;;  %v2142_v32 = vsub.f32 %v5280_v57, %v2115_v8 }
 0x3cb   : > { %4172 = vpow2.f32 %v2158_v0  ;;  %2740 = vrot.lane.b32.xlu0 %v6150_v10, %s4526_s21 }
 0x3cc   : > { %v2162_v47 = vmul.f32 1.442695, %v2142_v32 }
 0x3cd   : > { %v2121_v16 = vpop.xlane.xlu0 %2120  ;;  %1183 = vadd.xlane.f32.xlu1 %v5237_v61 }
 0x3ce   : > { %v2145_v21 = vsub.f32 %v5297_v2, %v2121_v16  ;;  %v2166_v2 = vmul.f32 1.442695, %v2144_v60  ;;  %4174 = vpow2.f32 %v2162_v47 }
 0x3cf   : > { %2744 = vrot.lane.b32.xlu0 %v6153_v52, %s4526_s21 }
 0x3d0   : > { %v2123_v53 = vpop.xlane.xlu1 %2122  ;;  %v2168_v33 = vmul.f32 1.442695, %v2145_v21  ;;  %v5468_v10 = vpop.eup %4166 }
 0x3d1   : > { %v2146_v18 = vsub.f32 %v5303_v28, %v2123_v53  ;;  %v2117_v5 = vpop.xlane.xlu0 %2116  ;;  %1187 = vadd.xlane.f32.xlu1 %v5231_v55 }
 0x3d2   : > { %v2143_v57 = vsub.f32 %v5306_v56, %v2117_v5  ;;  %v5471_v61 = vpop.eup %4168  ;;  %4176 = vpow2.f32 %v2168_v33 }
 0x3d3   : > { %v2170_v14 = vmul.f32 1.442695, %v2146_v18  ;;  %v6161_v18 = vld [vmem:[#allocation28_spill] sm:$0xff] }
 0x3d4   : > { %v5473_v43 = vpop.eup %4170  ;;  %v2164_v52 = vmul.f32 1.442695, %v2143_v57  ;;  %v2125_v40 = vpop.xlane.xlu1 %2124 }
 0x3d5   : > { %v5475_v39 = vpop.eup %4172  ;;  %v2147_v28 = vsub.f32 %v5311_v51, %v2125_v40  ;;  %v2127_v1 = vpop.xlane.xlu0 %2126  ;;  %1191 = vadd.xlane.f32.xlu1 %v5260_v58  ;;  %v2218_v55 = vpack.c.bf16 %v5473_v43, %v5471_v61  ;;  %v2468_v51 = vsel %vm931_vm0, %v6156_v62, 0 }
 0x3d6   : > { %4178 = vpow2.f32 %v2164_v52  ;;  %v2148_v56 = vsub.f32 %v5314_v3, %v2127_v1  ;;  %v2219_v20 = vpack.c.bf16 %v5468_v10, %v5475_v39 }
 0x3d7   : > { %4180 = vpow2.f32 %v2166_v2  ;;  %v2172_v44 = vmul.f32 1.442695, %v2147_v28  ;;  %3809 = vmatprep.mubr.bf16.mxu1 %v2218_v55 }
 0x3d8   : > { %4182 = vpow2.f32 %v2170_v14  ;;  %3810 = vmatmul.mubr.bf16.vlgmr.msra.gmra.mrb[96].mxu1 %v2219_v20  ;;  %v2174_v19 = vmul.f32 1.442695, %v2148_v56  ;;  %v5491_v4 = vpop.eup %4174  ;;  %v2434_v21 = vpop.permute.xlu1 %2433  ;;  %v6163_v14 = vld [vmem:[#allocation30_spill] sm:$0xff]  ;;  %v6164_v20 = vld [vmem:[#allocation32_spill] sm:$0xff] }
 0x3d9   : > { %4184 = vpow2.f32 %v2172_v44  ;;  %3826 = vmatpush3.bf16.xpose.msra.mxu1 %v2468_v51  ;;  %v2129_v58 = vpop.xlane.xlu0 %2128  ;;  %1195 = vadd.xlane.f32.xlu1 %v5253_v30 }
 0x3da   : > { %3978 = vmatprep.subr.msk.bf16.mxu1 %vm931_vm0, %v6158_v49  ;;  %v2149_v3 = vsub.f32 %v5318_v41, %v2129_v58  ;;  %4186 = vpow2.f32 %v2174_v19  ;;  %v6165_v19 = vld [vmem:[#allocation33_spill] sm:$0xff] }
 0x3dc   : > { %v2176_v54 = vmul.f32 1.442695, %v2149_v3  ;;  %v5493_v22 = vpop.eup %4176 }
 0x3dd   : > { %1199 = vadd.xlane.f32.xlu1 %v5288_v36  ;;  %v6159_v36 = vld [vmem:[#allocation26_spill] sm:$0xff]  ;;  %v5514_v26 = vpop.xlane.xlu0 %2134 }
 0x3de   : > { %4188 = vpow2.f32 %v2176_v54  ;;  %v2474_v16 = vsel %vm931_vm0, %v6159_v36, 0 }
 0x3e0   : > { %v5495_v62 = vpop.eup %4178 }
 0x3e1   : > { %v5499_v30 = vpop.eup %4180  ;;  %3828 = vmatpush3.bf16.xpose.msra.mxu1 %v2471_v35  ;;  %1203 = vadd.xlane.f32.xlu1 %v5283_v45  ;;  %v2220_v41 = vpack.c.bf16 %v5495_v62, %v5491_v4  ;;  %v2131_v47 = vpop.xlane.xlu0 %2130 }
 0x3e2   : > { %v5504_v11 = vpop.eup %4182  ;;  %3979 = vmatprep.subr.msk.bf16.mxu1 %vm931_vm0, %v6159_v36  ;;  %v2221_v0 = vpack.c.bf16 %v5493_v22, %v5499_v30  ;;  %v2150_v44 = vsub.f32 %v6164_v20, %v2131_v47 }
 0x3e3   : > { %v5510_v63 = vpop.eup %4184  ;;  %3813 = vmatprep.mubr.bf16.mxu1 %v2220_v41 }
 0x3e4   : > { %3814 = vmatmul.mubr.bf16.gmra.mrb[100].mxu1 %v2221_v0  ;;  %v2222_v8 = vpack.c.bf16 %v5510_v63, %v5504_v11  ;;  %v5517_v45 = vpop.eup %4186  ;;  %v2178_v35 = vmul.f32 1.442695, %v2150_v44 }
 0x3e5   : > { %1671 = vadd.xlane.f32.xlu1 %v5355_v7  ;;  %v2477_v7 = vsel %vm931_vm0, %v2434_v21, 0  ;;  %v2436_v53 = vpop.permute.xlu0 %2435 }
 0x3e6   : > { %3817 = vmatprep.mubr.bf16.mxu1 %v2222_v8  ;;  %4190 = vpow2.f32 %v2178_v35 }
 0x3e8   : > { %v5519_v32 = vpop.eup %4188 }
 0x3e9   : > { %3830 = vmatpush3.bf16.xpose.msra.mxu1 %v2474_v16  ;;  %1685 = vadd.xlane.f32.xlu1 %v5385_v15  ;;  %v2223_v60 = vpack.c.bf16 %v5519_v32, %v5517_v45  ;;  %v2480_v15 = vsel %vm931_vm0, %v2436_v53, 0  ;;  %v2438_v33 = vpop.permute.xlu0 %2437 }
 0x3ea   : > { %3980 = vmatprep.subr.msk.bf16.mxu1 %vm931_vm0, %v2434_v21 }
 0x3ec   : > { %3818 = vmatmul.mubr.bf16.gmra.mrb[104].mxu1 %v2223_v60 }
 0x3ed   : > { %1693 = vadd.xlane.f32.xlu1 %v5409_v48 }
 0x3ee   : > { %1173 = vadd.xlane.f32.xlu0 %v5215_v38 }
 0x3f1   : > { %3832 = vmatpush3.bf16.xpose.msra.mxu1 %v2477_v7  ;;  %1689 = vadd.xlane.f32.xlu1 %v5399_v23 }
 0x3f2   : > { %3981 = vmatprep.subr.msk.bf16.mxu1 %vm931_vm0, %v2436_v53  ;;  %1177 = vadd.xlane.f32.xlu0 %v5221_v13 }
 0x3f5   : > { %1701 = vadd.xlane.f32.xlu1 %v5429_v27  ;;  %v6160_v27 = vld [vmem:[#allocation27_spill] sm:$0xff] }
 0x3f6   : > { %1181 = vadd.xlane.f32.xlu0 %v5235_v34  ;;  %v2483_v34 = vsel %vm931_vm0, %v2438_v33, 0 }
 0x3f9   : > { %3834 = vmatpush3.bf16.xpose.msra.mxu1 %v2480_v15  ;;  %1697 = vadd.xlane.f32.xlu1 %v5419_v42 }
 0x3fa   : > { %v5537_v38 = vpop.f32.mrb[64].mxu1  ;;  %3982 = vmatprep.subr.msk.bf16.mxu1 %vm931_vm0, %v2438_v33  ;;  %1185 = vadd.xlane.f32.xlu0 %v5244_v59  ;;  %v6162_v59 = vld [vmem:[#allocation29_spill] sm:$0xff] }
 0x3fb   : > { %v5541_v23 = vpop.f32.mrb[65].mxu1 }
 0x3fc   : > { %v5543_v48 = vpop.f32.mrb[66].mxu1 }
 0x3fd   : > { %v5545_v13 = vpop.f32.mrb[67].mxu1 }
 0x3fe   : > { %1189 = vadd.xlane.f32.xlu0 %v6160_v27 }
 0x401   : > { %3836 = vmatpush3.bf16.xpose.msra.mxu1 %v2483_v34 }
 0x402   : > { %1193 = vadd.xlane.f32.xlu0 %v6161_v18 }
 0x404   : > { %v5550_v42 = vpop.f32.mrb[68].mxu1 }
 0x405   : > { %v5552_v5 = vpop.f32.mrb[69].mxu1 }
 0x406   : > { %v5554_v57 = vpop.f32.mrb[70].mxu1  ;;  %1197 = vadd.xlane.f32.xlu0 %v6162_v59 }
 0x407   : > { %v5557_v2 = vpop.f32.mrb[71].mxu1 }
 0x409   : > { %v2137_v55 = vpop.xlane.xlu1 %2136 }
 0x40a   : > { %1201 = vadd.xlane.f32.xlu0 %v6163_v14  ;;  %v2153_v58 = vsub.f32 %v6165_v19, %v2137_v55 }
 0x40c   : > { %v5560_v52 = vpop.f32.mrb[72].mxu1 }
 0x40d   : > { %v5562_v40 = vpop.f32.mrb[73].mxu1  ;;  %v2406_v15 = vpop.permute.xlu1 %2405 }
 0x40e   : > { %v5564_v28 = vpop.f32.mrb[74].mxu1  ;;  %1675 = vadd.xlane.f32.xlu0 %v5365_v12  ;;  %v6166_v12 = vld [vmem:[#allocation31_spill] sm:$0xff] }
 0x40f   : > { %v5567_v1 = vpop.f32.mrb[75].mxu1  ;;  %v2152_v54 = vsub.f32 %v6166_v12, %v5514_v26  ;;  %v5591_v26 = vpop.eup %4190 }
 0x410   : > { %6167 = vst [vmem:[#allocation21_spill] sm:$0xff] %v5591_v26 }
 0x411   : > { %v2182_v0 = vmul.f32 1.442695, %v2152_v54 }
 0x412   : > { %1677 = vadd.xlane.f32.xlu0 %v5359_v31  ;;  %v2184_v31 = vmul.f32 1.442695, %v2153_v58 }
 0x414   : > { %v5570_v56 = vpop.f32.mrb[76].mxu1  ;;  %4192 = vpow2.f32 %v2184_v31 }
 0x415   : > { %v5573_v51 = vpop.f32.mrb[77].mxu1 }
 0x416   : > { %v5576_v49 = vpop.f32.mrb[78].mxu1  ;;  %1673 = vadd.xlane.f32.xlu0 %v5363_v50 }
 0x417   : > { %v5579_v3 = vpop.f32.mrb[79].mxu1 }
 0x41a   : > { %1683 = vadd.xlane.f32.xlu0 %v5389_v46  ;;  %v2133_v41 = vpop.xlane.xlu0 %2132 }
 0x41b   : > { %v2151_v36 = vsub.f32 %v5339_v6, %v2133_v41 }
 0x41d   : > { %v2180_v8 = vmul.f32 1.442695, %v2151_v36 }
 0x41e   : > { %1679 = vadd.xlane.f32.xlu0 %v5373_v9  ;;  %v2440_v16 = vpop.permute.xlu0 %2439  ;;  %v5594_v21 = vpop.eup %4192 }
 0x41f   : > { %4194 = vpow2.f32 %v2180_v8  ;;  %3983 = vmatprep.subr.msk.bf16.mxu1 %vm931_vm0, %v2440_v16  ;;  %v2486_v50 = vsel %vm931_vm0, %v2440_v16, 0  ;;  %6168 = vst [vmem:[#allocation17_spill] sm:$0xff] %v5594_v21 }
 0x420   : > { %4196 = vpow2.f32 %v2182_v0  ;;  %3838 = vmatpush3.bf16.xpose.msra.mxu1 %v2486_v50 }
 0x422   : > { %1681 = vadd.xlane.f32.xlu0 %v5376_v37  ;;  %v2442_v46 = vpop.permute.xlu0 %2441 }
 0x423   : > { %3984 = vmatprep.subr.msk.bf16.mxu1 %vm931_vm0, %v2442_v46  ;;  %v2489_v9 = vsel %vm931_vm0, %v2442_v46, 0 }
 0x426   : > { %1691 = vadd.xlane.f32.xlu0 %v5404_v29  ;;  %v2404_v6 = vpop.permute.xlu0 %2403 }
 0x428   : > { %3840 = vmatpush3.bf16.xpose.msra.mxu1 %v2489_v9 }
 0x429   : > { %v5596_v60 = vpop.eup %4194 }
 0x42a   : > { %v5598_v47 = vpop.eup %4196  ;;  %1687 = vadd.xlane.f32.xlu0 %v5397_v17  ;;  %v2408_v37 = vpop.permute.xlu0 %2407  ;;  %v2224_v7 = vpack.c.bf16 %v5596_v60, %v5591_v26 }
 0x42b   : > { %v2225_v29 = vpack.c.bf16 %v5594_v21, %v5598_v47  ;;  %v2416_v17 = vpop.permute.xlu1 %2415 }
 0x42c   : > { %3821 = vmatprep.mubr.bf16.mxu1 %v2224_v7 }
 0x42d   : > { %3822 = vmatmul.mubr.bf16.gmra.mrb[108].mxu1 %v2225_v29 }
 0x42e   : > { %1699 = vadd.xlane.f32.xlu0 %v5424_v25  ;;  %3841 = vmatprep.mubr.msk.bf16.mxu1 %vm931_vm0, %v2404_v6  ;;  %v2410_v53 = vpop.permute.xlu0 %2409 }
 0x42f   : > { %v2735_v18 = vpop.permute.xlu1 %2734 }
 0x432   : > { %1695 = vadd.xlane.f32.xlu0 %v5417_v24  ;;  %v2412_v33 = vpop.permute.xlu0 %2411 }
 0x433   : > { %v2739_v59 = vpop.permute.xlu1 %2738 }
 0x435   : > { %3842 = vmatmul.mubr.msk.bf16.vlgmr.msra.gmra.mrb[112].mxu1 %vm931_vm0, %v2406_v15 }
 0x436   : > { %3845 = vmatprep.mubr.msk.bf16.mxu1 %vm931_vm0, %v2408_v37  ;;  %v2414_v27 = vpop.permute.xlu0 %2413 }
 0x437   : > { %v2743_v24 = vpop.permute.xlu1 %2742 }
 0x43a   : > { %v2418_v34 = vpop.permute.xlu0 %2417 }
 0x43b   : > { %v2747_v20 = vpop.permute.xlu1 %2746 }
 0x43d   : > { %3846 = vmatmul.mubr.msk.bf16.gmra.mrb[116].mxu1 %vm931_vm0, %v2410_v53 }
 0x43e   : > { %3849 = vmatprep.mubr.msk.bf16.mxu1 %vm931_vm0, %v2412_v33  ;;  %v2733_v25 = vpop.permute.xlu0 %2732 }
 0x43f   : > { %3857 = vmatprep.subr.bf16.mxu0 %v2733_v25 }
 0x440   : > { %3858 = vmatpush3.bf16.msra.mxu0 %v2733_v25 }
 0x441   : > { %3859 = vmatprep.subr.bf16.mxu0 %v2735_v18 }
 0x442   : > { %v2737_v14 = vpop.permute.xlu0 %2736 }
 0x444   : > { %3860 = vmatpush3.bf16.msra.mxu0 %v2735_v18 }
 0x445   : > { %3850 = vmatmul.mubr.msk.bf16.gmra.mrb[120].mxu1 %vm931_vm0, %v2414_v27  ;;  %3861 = vmatprep.subr.bf16.mxu0 %v2737_v14 }
 0x446   : > { %3853 = vmatprep.mubr.msk.bf16.mxu1 %vm931_vm0, %v2416_v17  ;;  %v2741_v55 = vpop.permute.xlu0 %2740 }
 0x448   : > { %3862 = vmatpush3.bf16.msra.mxu0 %v2737_v14 }
 0x449   : > { %3863 = vmatprep.subr.bf16.mxu0 %v2739_v59 }
 0x44a   : > { %v2745_v19 = vpop.permute.xlu0 %2744 }
 0x44c   : > { %3864 = vmatpush3.bf16.msra.mxu0 %v2739_v59 }
 0x44d   : > { %3854 = vmatmul.mubr.msk.bf16.gmra.mrb[124].mxu1 %vm931_vm0, %v2418_v34  ;;  %3865 = vmatprep.subr.bf16.mxu0 %v2741_v55 }
 0x450   : > { %3866 = vmatpush3.bf16.msra.mxu0 %v2741_v55 }
 0x451   : > { %3867 = vmatprep.subr.bf16.mxu0 %v2743_v24 }
 0x452   : > { %v1176_v44 = vpop.xlane.xlu1 %1175 }
 0x453   : > { %4198 = vrcp.f32 %v1176_v44 }
 0x454   : > { %3868 = vmatpush3.bf16.msra.mxu0 %v2743_v24 }
 0x455   : > { %3869 = vmatprep.subr.bf16.mxu0 %v2745_v19 }
 0x456   : > { %v1180_v58 = vpop.xlane.xlu1 %1179 }
 0x458   : > { %3870 = vmatpush3.bf16.msra.mxu0 %v2745_v19 }
 0x459   : > { %3871 = vmatprep.subr.bf16.mxu0 %v2747_v20 }
 0x45a   : > { %v1184_v12 = vpop.xlane.xlu1 %1183 }
 0x45c   : > { %3872 = vmatpush3.bf16.msra.mxu0 %v2747_v20 }
 0x45d   : > { %v4199_v14 = vpop.eup %4198 }
 0x45e   : > { %v1188_v54 = vpop.xlane.xlu1 %1187  ;;  %v1327_v20 = vmul.f32 %v4199_v14, %v5545_v13 }
 0x462   : > { %v1192_v35 = vpop.xlane.xlu1 %1191 }
 0x466   : > { %v1196_v31 = vpop.xlane.xlu1 %1195 }
 0x46a   : > { %v1200_v41 = vpop.xlane.xlu1 %1199 }
 0x46e   : > { %v5615_v36 = vpop.xlane.xlu1 %1203 }
 0x471   : > { %v5617_v0 = vpop.f32.mrb[80].mxu1 }
 0x472   : > { %v5619_v8 = vpop.f32.mrb[81].mxu1  ;;  %v5621_v16 = vpop.xlane.xlu1 %1671 }
 0x473   : > { %v5623_v50 = vpop.f32.mrb[82].mxu1 }
 0x474   : > { %v5625_v46 = vpop.f32.mrb[83].mxu1 }
 0x476   : > { %v5627_v6 = vpop.xlane.xlu1 %1685 }
 0x479   : > { %v5629_v9 = vpop.f32.mrb[84].mxu1 }
 0x47a   : > { %v5631_v37 = vpop.f32.mrb[85].mxu1  ;;  %v5633_v7 = vpop.xlane.xlu1 %1693 }
 0x47b   : > { %v5635_v29 = vpop.f32.mrb[86].mxu1  ;;  %v1174_v53 = vpop.xlane.xlu0 %1173 }
 0x47c   : > { %4200 = vrcp.f32 %v1174_v53  ;;  %v5637_v15 = vpop.f32.mrb[87].mxu1 }
 0x47d   : > { %4202 = vrcp.f32 %v1180_v58 }
 0x47e   : > { %v5639_v33 = vpop.xlane.xlu1 %1689 }
 0x47f   : > { %v1178_v17 = vpop.xlane.xlu0 %1177 }
 0x480   : > { %4204 = vrcp.f32 %v1178_v17 }
 0x481   : > { %v5641_v27 = vpop.f32.mrb[88].mxu1  ;;  %4206 = vrcp.f32 %v1184_v12 }
 0x482   : > { %v5643_v34 = vpop.f32.mrb[89].mxu1  ;;  %v1702_v18 = vpop.xlane.xlu1 %1701 }
 0x483   : > { %4208 = vrcp.f32 %v1702_v18  ;;  %v5645_v25 = vpop.f32.mrb[90].mxu1  ;;  %v1182_v59 = vpop.xlane.xlu0 %1181 }
 0x484   : > { %4210 = vrcp.f32 %v1182_v59  ;;  %v5647_v24 = vpop.f32.mrb[91].mxu1 }
 0x485   : > { %4212 = vrcp.f32 %v1188_v54 }
 0x486   : > { %v4201_v55 = vpop.eup %4200 }
 0x487   : > { %v1326_v44 = vmul.f32 %v4201_v55, %v5541_v23  ;;  %v1186_v19 = vpop.xlane.xlu0 %1185  ;;  %v4203_v58 = vpop.eup %4202 }
 0x488   : > { %4214 = vrcp.f32 %v1186_v19  ;;  %v1329_v59 = vmul.f32 %v4203_v58, %v5543_v48 }
 0x489   : > { %v5651_v12 = vpop.f32.mrb[92].mxu1  ;;  %v1342_v53 = vpack.c.bf16 %v1327_v20, %v1326_v44  ;;  %4216 = vrcp.f32 %v1192_v35 }
 0x48a   : > { %v4205_v17 = vpop.eup %4204  ;;  %v5653_v18 = vpop.f32.mrb[93].mxu1 }
 0x48b   : > { %v1328_v21 = vmul.f32 %v4205_v17, %v5537_v38  ;;  %v3760_v26 = vpop.f32.mrb[94].mxu1  ;;  %v1190_v54 = vpop.xlane.xlu0 %1189  ;;  %1350 = vst.msk [vmem:[#allocation3] sm:$0xff] %vm931_vm0, %v1342_v53 }
 0x48c   : > { %v4207_v13 = vpop.eup %4206  ;;  %4218 = vrcp.f32 %v1190_v54  ;;  %v5658_v23 = vpop.f32.mrb[95].mxu1 }
 0x48d   : > { %v4209_v14 = vpop.eup %4208  ;;  %v1343_v55 = vpack.c.bf16 %v1329_v59, %v1328_v21  ;;  %4220 = vrcp.f32 %v1196_v31  ;;  %v1331_v35 = vmul.f32 %v4207_v13, %v5557_v2 }
 0x48e   : > { %v4211_v19 = vpop.eup %4210  ;;  %v5660_v20 = vmul.f32 %v4209_v14, %v3760_v26 }
 0x48f   : > { %v1330_v48 = vmul.f32 %v4211_v19, %v5552_v5  ;;  %v1194_v44 = vpop.xlane.xlu0 %1193  ;;  %1351 = vst.msk [vmem:[#allocation3 + $0x8] sm:$0xff] %vm931_vm0, %v1343_v55  ;;  %v4213_v38 = vpop.eup %4212 }
 0x490   : > { %4222 = vrcp.f32 %v1194_v44  ;;  %v1333_v17 = vmul.f32 %v4213_v38, %v5554_v57 }
 0x491   : > { %v1344_v58 = vpack.c.bf16 %v1331_v35, %v1330_v48  ;;  %4224 = vrcp.f32 %v1200_v41 }
 0x492   : > { %v4215_v53 = vpop.eup %4214 }
 0x493   : > { %v1332_v21 = vmul.f32 %v4215_v53, %v5550_v42  ;;  %v1198_v59 = vpop.xlane.xlu0 %1197  ;;  %1352 = vst.msk [vmem:[#allocation3 + $0x10] sm:$0xff] %vm931_vm0, %v1344_v58  ;;  %v4217_v26 = vpop.eup %4216 }
 0x494   : > { %4226 = vrcp.f32 %v1198_v59  ;;  %v1335_v5 = vmul.f32 %v4217_v26, %v5567_v1 }
 0x495   : > { %v1345_v2 = vpack.c.bf16 %v1333_v17, %v1332_v21  ;;  %4228 = vrcp.f32 %v5615_v36 }
 0x496   : > { %v4219_v31 = vpop.eup %4218 }
 0x497   : > { %v1334_v54 = vmul.f32 %v4219_v31, %v5562_v40  ;;  %v1202_v13 = vpop.xlane.xlu0 %1201  ;;  %1353 = vst.msk [vmem:[#allocation3 + $0x18] sm:$0xff] %vm931_vm0, %v1345_v2  ;;  %v4221_v41 = vpop.eup %4220 }
 0x498   : > { %4230 = vrcp.f32 %v1202_v13  ;;  %v1337_v14 = vmul.f32 %v4221_v41, %v5564_v28 }
 0x499   : > { %v1346_v57 = vpack.c.bf16 %v1335_v5, %v1334_v54 }
 0x49a   : > { %v4223_v42 = vpop.eup %4222 }
 0x49b   : > { %v1336_v55 = vmul.f32 %v4223_v42, %v5560_v52  ;;  %v1676_v19 = vpop.xlane.xlu0 %1675  ;;  %1354 = vst.msk [vmem:[#allocation3 + $0x20] sm:$0xff] %vm931_vm0, %v1346_v57  ;;  %v4225_v35 = vpop.eup %4224 }
 0x49c   : > { %4232 = vrcp.f32 %v1676_v19  ;;  %v1339_v40 = vmul.f32 %v4225_v35, %v5579_v3 }
 0x49d   : > { %v1347_v36 = vpack.c.bf16 %v1337_v14, %v1336_v55 }
 0x49e   : > { %v4227_v48 = vpop.eup %4226 }
 0x49f   : > { %v1338_v1 = vmul.f32 %v4227_v48, %v5573_v51  ;;  %v1678_v44 = vpop.xlane.xlu0 %1677  ;;  %1355 = vst.msk [vmem:[#allocation3 + $0x28] sm:$0xff] %vm931_vm0, %v1347_v36  ;;  %v4229_v38 = vpop.eup %4228 }
 0x4a0   : > { %4234 = vrcp.f32 %v1678_v44  ;;  %v1341_v52 = vmul.f32 %v4229_v38, %v5576_v49 }
 0x4a1   : > { %v1348_v58 = vpack.c.bf16 %v1339_v40, %v1338_v1  ;;  %4236 = vrcp.f32 %v5621_v16 }
 0x4a2   : > { %v4231_v28 = vpop.eup %4230 }
 0x4a3   : > { %v1340_v53 = vmul.f32 %v4231_v28, %v5570_v56  ;;  %v1674_v17 = vpop.xlane.xlu0 %1673  ;;  %1356 = vst.msk [vmem:[#allocation3 + $0x30] sm:$0xff] %vm931_vm0, %v1348_v58 }
 0x4a4   : > { %4238 = vrcp.f32 %v1674_v17 }
 0x4a5   : > { %v1349_v3 = vpack.c.bf16 %v1341_v52, %v1340_v53  ;;  %4240 = vrcp.f32 %v5627_v6 }
 0x4a6   : > { %v4233_v21 = vpop.eup %4232 }
 0x4a7   : > { %v1684_v51 = vpop.xlane.xlu0 %1683  ;;  %1357 = vst.msk [vmem:[#allocation3 + $0x38] sm:$0xff] %vm931_vm0, %v1349_v3  ;;  %v5687_v49 = vmul.f32 %v4233_v21, %v5617_v0 }
 0x4a8   : > { %4242 = vrcp.f32 %v1684_v51 }
 0x4aa   : > { %v4235_v59 = vpop.eup %4234 }
 0x4ab   : > { %v5684_v26 = vpop.f32.mrb[96].mxu1  ;;  %v1680_v16 = vpop.xlane.xlu0 %1679  ;;  %v5690_v56 = vmul.f32 %v4235_v59, %v5623_v50 }
 0x4ac   : > { %v4237_v2 = vpop.eup %4236  ;;  %v5692_v31 = vpop.f32.mrb[97].mxu1  ;;  %4244 = vrcp.f32 %v1680_v16 }
 0x4ad   : > { %v5694_v5 = vpop.f32.mrb[98].mxu1  ;;  %v5701_v57 = vmul.f32 %v4237_v2, %v5619_v8 }
 0x4ae   : > { %v4239_v54 = vpop.eup %4238  ;;  %v5698_v13 = vpop.f32.mrb[99].mxu1 }
 0x4af   : > { %v1682_v41 = vpop.xlane.xlu0 %1681  ;;  %v5704_v0 = vmul.f32 %v4239_v54, %v5625_v46  ;;  %v4241_v50 = vpop.eup %4240 }
 0x4b0   : > { %4246 = vrcp.f32 %v1682_v41  ;;  %v5710_v55 = vmul.f32 %v4241_v50, %v5635_v29 }
 0x4b1   : > { %4248 = vrcp.f32 %v5633_v7 }
 0x4b2   : > { %v4243_v14 = vpop.eup %4242 }
 0x4b3   : > { %v1692_v19 = vpop.xlane.xlu0 %1691  ;;  %v5713_v35 = vmul.f32 %v4243_v14, %v5629_v9  ;;  %v1698_v9 = vpop.xlane.xlu1 %1697 }
 0x4b4   : > { %4250 = vrcp.f32 %v1692_v19 }
 0x4b5   : > { %4252 = vrcp.f32 %v5639_v33 }
 0x4b6   : > { %v4245_v48 = vpop.eup %4244 }
 0x4b7   : > { %v5718_v46 = vpop.f32.mrb[100].mxu1  ;;  %v1688_v36 = vpop.xlane.xlu0 %1687  ;;  %v5727_v38 = vmul.f32 %v4245_v48, %v5631_v37 }
 0x4b8   : > { %4254 = vrcp.f32 %v1688_v36  ;;  %v5720_v40 = vpop.f32.mrb[101].mxu1 }
 0x4b9   : > { %v5722_v7 = vpop.f32.mrb[102].mxu1 }
 0x4ba   : > { %v4247_v29 = vpop.eup %4246  ;;  %v5724_v1 = vpop.f32.mrb[103].mxu1 }
 0x4bb   : > { %v1700_v44 = vpop.xlane.xlu0 %1699  ;;  %v5730_v58 = vmul.f32 %v4247_v29, %v5637_v15  ;;  %v4249_v33 = vpop.eup %4248 }
 0x4bc   : > { %4256 = vrcp.f32 %v1700_v44  ;;  %v5735_v53 = vmul.f32 %v4249_v33, %v5645_v25 }
 0x4bd   : > { %4258 = vrcp.f32 %v1698_v9 }
 0x4be   : > { %v4251_v52 = vpop.eup %4250 }
 0x4bf   : > { %v5737_v17 = vpop.f32.mrb[104].mxu1  ;;  %v1696_v3 = vpop.xlane.xlu0 %1695  ;;  %v5740_v51 = vmul.f32 %v4251_v52, %v5641_v27 }
 0x4c0   : > { %v4253_v37 = vpop.eup %4252  ;;  %4260 = vrcp.f32 %v1696_v3  ;;  %v5742_v15 = vpop.f32.mrb[105].mxu1 }
 0x4c1   : > { %v5744_v21 = vpop.f32.mrb[106].mxu1  ;;  %v5751_v25 = vmul.f32 %v4253_v37, %v5647_v24 }
 0x4c2   : > { %v4255_v16 = vpop.eup %4254  ;;  %v5748_v2 = vpop.f32.mrb[107].mxu1 }
 0x4c3   : > { %v5754_v54 = vmul.f32 %v4255_v16, %v5643_v34 }
 0x4c6   : > { %v4257_v41 = vpop.eup %4256 }
 0x4c7   : > { %v5759_v50 = vmul.f32 %v4257_v41, %v5651_v12  ;;  %v4259_v14 = vpop.eup %4258 }
 0x4c8   : > { %v5764_v48 = vmul.f32 %v4259_v14, %v5658_v23 }
 0x4ca   : > { %v4261_v36 = vpop.eup %4260 }
 0x4cb   : > { %v5767_v24 = vmul.f32 %v4261_v36, %v5653_v18 }
 0x500   : > { %v5771_v29 = vpop.f32.mrb[108].mxu1 }
 0x501   : > { %6169 = vst [vmem:[#allocation18_spill] sm:$0xff] %v5771_v29  ;;  %v5773_v9 = vpop.f32.mrb[109].mxu1 }
 0x502   : > { %6170 = vst [vmem:[#allocation22_spill] sm:$0xff] %v5773_v9  ;;  %v5775_v12 = vpop.f32.mrb[110].mxu1 }
 0x503   : > { %6171 = vst [vmem:[#allocation19_spill] sm:$0xff] %v5775_v12  ;;  %v5777_v44 = vpop.f32.mrb[111].mxu1 }
 0x508   : > { %v3843_v33 = vpop.f32.mrb[112].mxu1 }
 0x509   : > { %v5779_v52 = vmul.f32 0.125, %v3843_v33  ;;  %v2525_v3 = vpop.f32.mrb[113].mxu1 }
 0x50a   : > { %v3844_v23 = vpop.f32.mrb[114].mxu1  ;;  %v2588_v16 = vmul.f32 0.125, %v2525_v3 }
 0x50b   : > { %2608 = vmax.xlane.f32.xlu1 %v5779_v52  ;;  %v2528_v18 = vpop.f32.mrb[115].mxu1  ;;  %v5782_v14 = vmul.f32 0.125, %v3844_v23 }
 0x50c   : > { %v2589_v37 = vmul.f32 0.125, %v2528_v18 }
 0x50e   : > { %2606 = vmax.xlane.f32.xlu0 %v2589_v37 }
 0x50f   : > { %2604 = vmax.xlane.f32.xlu1 %v2588_v16 }
 0x510   : > { %v3847_v41 = vpop.f32.mrb[116].mxu1 }
 0x511   : > { %v2541_v36 = vpop.f32.mrb[117].mxu1  ;;  %v5788_v59 = vmul.f32 0.125, %v3847_v41 }
 0x512   : > { %v5784_v19 = vmul.f32 0.125, %v2541_v36  ;;  %v3848_v34 = vpop.f32.mrb[118].mxu1 }
 0x513   : > { %2610 = vmax.xlane.f32.xlu1 %v5782_v14  ;;  %v2544_v33 = vpop.f32.mrb[119].mxu1  ;;  %v5791_v3 = vmul.f32 0.125, %v3848_v34 }
 0x514   : > { %2612 = vmax.xlane.f32.xlu0 %v5784_v19  ;;  %v5797_v28 = vmul.f32 0.125, %v2544_v33 }
 0x517   : > { %2616 = vmax.xlane.f32.xlu1 %v5788_v59 }
 0x518   : > { %v3851_v18 = vpop.f32.mrb[120].mxu1 }
 0x519   : > { %v2557_v27 = vpop.f32.mrb[121].mxu1  ;;  %v5803_v34 = vmul.f32 0.125, %v3851_v18 }
 0x51a   : > { %v5793_v8 = vmul.f32 0.125, %v2557_v27  ;;  %v3852_v23 = vpop.f32.mrb[122].mxu1 }
 0x51b   : > { %2618 = vmax.xlane.f32.xlu1 %v5791_v3  ;;  %v2560_v36 = vpop.f32.mrb[123].mxu1  ;;  %v5799_v6 = vmul.f32 0.125, %v3852_v23 }
 0x51c   : > { %2620 = vmax.xlane.f32.xlu0 %v5793_v8  ;;  %v5808_v9 = vmul.f32 0.125, %v2560_v36  ;;  %v6173_v36 = vpack.c.bf16 %v5690_v56, %v5687_v49 }
 0x51f   : > { %2614 = vmax.xlane.f32.xlu1 %v5797_v28 }
 0x520   : > { %2626 = vmax.xlane.f32.xlu0 %v5799_v6  ;;  %v3855_v41 = vpop.f32.mrb[124].mxu1 }
 0x521   : > { %v2573_v42 = vpop.f32.mrb[125].mxu1  ;;  %v5814_v23 = vmul.f32 0.125, %v3855_v41 }
 0x522   : > { %v3856_v27 = vpop.f32.mrb[126].mxu1  ;;  %v5818_v18 = vmul.f32 0.125, %v2573_v42  ;;  %v6174_v42 = vpack.c.bf16 %v5730_v58, %v5727_v38 }
 0x523   : > { %v5805_v12 = vmul.f32 0.125, %v3856_v27  ;;  %2624 = vmax.xlane.f32.xlu1 %v5803_v34  ;;  %v2576_v29 = vpop.f32.mrb[127].mxu1  ;;  %v5821_v27 = vld [vmem:[#allocation9] sm:$0xff]  }
 0x524   : > { %v5811_v33 = vmul.f32 0.125, %v2576_v29  ;;  %3889 = vmatprep.subr.bf16.mxu0 %v5821_v27  ;;  %v6172_v29 = vpack.c.bf16 %v5704_v0, %v5701_v57  ;;  %v6175_v57 = vpack.c.bf16 %v5710_v55, %v5713_v35 }
 0x525   : > { %2634 = vmax.xlane.f32.xlu0 %v5805_v12 }
 0x527   : > { %2622 = vmax.xlane.f32.xlu1 %v5808_v9 }
 0x529   : > { %2630 = vmax.xlane.f32.xlu0 %v5811_v33 }
 0x52b   : > { %2632 = vmax.xlane.f32.xlu1 %v5814_v23 }
 0x52f   : > { %2628 = vmax.xlane.f32.xlu1 %v5818_v18 }
 0x53f   : > { %1888 = vrot.lane.b32.xlu0 %v6172_v29, %s4526_s21 }
 0x540   : > { %1890 = vrot.lane.b32.xlu1 %v6173_v36, %s4526_s21 }
 0x55e   : > { %2188 = vadd.xlane.f32.xlu0 %v5473_v43 }
 0x562   : > { %2190 = vadd.xlane.f32.xlu0 %v5475_v39 }
 0x564   : > { %2186 = vadd.xlane.f32.xlu1 %v5471_v61 }
 0x568   : > { %2192 = vadd.xlane.f32.xlu1 %v5468_v10 }
 0x578   : > { %1892 = vrot.lane.b32.xlu0 %v6174_v42, %s4526_s21 }
 0x579   : > { %1894 = vrot.lane.b32.xlu1 %v6175_v57, %s4526_s21 }
 0x597   : > { %2196 = vadd.xlane.f32.xlu0 %v5495_v62 }
 0x598   : > { %v2609_v49 = vpop.xlane.xlu1 %2608 }
 0x599   : > { %v2638_v61 = vsub.f32 %v5779_v52, %v2609_v49 }
 0x59b   : > { %2198 = vadd.xlane.f32.xlu0 %v5499_v30  ;;  %v2607_v43 = vpop.xlane.xlu0 %2606  ;;  %v2656_v58 = vmul.f32 1.442695, %v2638_v61 }
 0x59c   : > { %v2637_v39 = vsub.f32 %v2589_v37, %v2607_v43  ;;  %v2605_v10 = vpop.xlane.xlu1 %2604 }
 0x59d   : > { %v2636_v56 = vsub.f32 %v2588_v16, %v2605_v10  ;;  %2194 = vadd.xlane.f32.xlu1 %v5491_v4 }
 0x59e   : > { %v2654_v0 = vmul.f32 1.442695, %v2637_v39 }
 0x59f   : > { %v2652_v38 = vmul.f32 1.442695, %v2636_v56 }
 0x5a0   : > { %4262 = vpow2.f32 %v2654_v0  ;;  %v2611_v41 = vpop.xlane.xlu1 %2610 }
 0x5a1   : > { %4264 = vpow2.f32 %v2652_v38  ;;  %v2639_v55 = vsub.f32 %v5782_v14, %v2611_v41  ;;  %2200 = vadd.xlane.f32.xlu1 %v5493_v22  ;;  %v2613_v30 = vpop.xlane.xlu0 %2612  ;;  %v4095_v38 = vld [vmem:[#allocation9 + $0x8] sm:$0xff]  }
 0x5a2   : > { %4266 = vpow2.f32 %v2656_v58  ;;  %v2640_v52 = vsub.f32 %v5784_v19, %v2613_v30  ;;  %v6176_v58 = vpack.c.bf16 %v5751_v25, %v5754_v54 }
 0x5a3   : > { %v2658_v62 = vmul.f32 1.442695, %v2639_v55 }
 0x5a4   : > { %v2617_v35 = vpop.xlane.xlu1 %2616  ;;  %v2660_v14 = vmul.f32 1.442695, %v2640_v52 }
 0x5a5   : > { %4268 = vpow2.f32 %v2658_v62  ;;  %v2642_v36 = vsub.f32 %v5788_v59, %v2617_v35  ;;  %v4096_v35 = vld [vmem:[#allocation9 + $0x10] sm:$0xff]  }
 0x5a6   : > { %4270 = vpow2.f32 %v2660_v14 }
 0x5a7   : > { %v2664_v39 = vmul.f32 1.442695, %v2642_v36 }
 0x5a8   : > { %v2619_v37 = vpop.xlane.xlu1 %2618 }
 0x5a9   : > { %v2643_v4 = vsub.f32 %v5791_v3, %v2619_v37  ;;  %v2621_v16 = vpop.xlane.xlu0 %2620 }
 0x5aa   : > { %v5852_v29 = vpop.eup %4262  ;;  %v2644_v59 = vsub.f32 %v5793_v8, %v2621_v16  ;;  %v6177_v8 = vpack.c.bf16 %v5735_v53, %v5740_v51  ;;  %v4097_v51 = vld [vmem:[#allocation9 + $0x18] sm:$0xff]  }
 0x5ab   : > { %v5855_v42 = vpop.eup %4264  ;;  %v2666_v57 = vmul.f32 1.442695, %v2643_v4 }
 0x5ac   : > { %v2615_v22 = vpop.xlane.xlu1 %2614  ;;  %v2716_v49 = vpack.c.bf16 %v5852_v29, %v5855_v42  ;;  %v5860_v19 = vpop.eup %4266  ;;  %v2668_v62 = vmul.f32 1.442695, %v2644_v59 }
 0x5ad   : > { %v2641_v43 = vsub.f32 %v5797_v28, %v2615_v22  ;;  %v2627_v61 = vpop.xlane.xlu0 %2626  ;;  %4272 = vpow2.f32 %v2666_v57 }
 0x5ae   : > { %3873 = vmatprep.mubr.bf16.mxu0 %v2716_v49  ;;  %v2647_v41 = vsub.f32 %v5799_v6, %v2627_v61 }
 0x5af   : > { %v5862_v3 = vpop.eup %4268  ;;  %v2662_v10 = vmul.f32 1.442695, %v2641_v43 }
 0x5b0   : > { %v2625_v56 = vpop.xlane.xlu1 %2624  ;;  %v2717_v0 = vpack.c.bf16 %v5862_v3, %v5860_v19  ;;  %v2674_v54 = vmul.f32 1.442695, %v2647_v41  ;;  %v5880_v4 = vpop.eup %4270 }
 0x5b1   : > { %4274 = vpow2.f32 %v2662_v10  ;;  %v2646_v28 = vsub.f32 %v5803_v34, %v2625_v56  ;;  %1896 = vrot.lane.b32.xlu0 %v6176_v58, %s4526_s21 }
 0x5b2   : > { %4276 = vpow2.f32 %v2664_v39  ;;  %1898 = vrot.lane.b32.xlu1 %v6177_v8, %s4526_s21  ;;  %3874 = vmatmul.mubr.bf16.vlgmr.msra.gmra.mrb[80].mxu0 %v2717_v0  ;;  %v2635_v55 = vpop.xlane.xlu0 %2634  ;;  %v4098_v39 = vld [vmem:[#allocation9 + $0x20] sm:$0xff]   ;;  %v4099_v0 = vld [vmem:[#allocation9 + $0x28] sm:$0xff]   ;;  %v4100_v8 = vld [vmem:[#allocation9 + $0x30] sm:$0xff]  }
 0x5b3   : > { %3890 = vmatpush3.bf16.msra.mxu0 %v5821_v27  ;;  %v2672_v30 = vmul.f32 1.442695, %v2646_v28  ;;  %4278 = vpow2.f32 %v2668_v62  ;;  %v4101_v62 = vld [vmem:[#allocation9 + $0x38] sm:$0xff]  }
 0x5b4   : > { %v2623_v34 = vpop.xlane.xlu1 %2622  ;;  %3891 = vmatprep.subr.bf16.mxu0 %v4095_v38 }
 0x5b5   : > { %v2645_v25 = vsub.f32 %v5808_v9, %v2623_v34  ;;  %4280 = vpow2.f32 %v2672_v30  ;;  %v2651_v9 = vsub.f32 %v5805_v12, %v2635_v55 }
 0x5b6   : > { %v2631_v52 = vpop.xlane.xlu0 %2630 }
 0x5b7   : > { %v2670_v6 = vmul.f32 1.442695, %v2645_v25  ;;  %v2649_v37 = vsub.f32 %v5811_v33, %v2631_v52  ;;  %3892 = vmatpush3.bf16.msra.mxu0 %v4095_v38  ;;  %v5883_v16 = vpop.eup %4272  ;;  %v2682_v12 = vmul.f32 1.442695, %v2651_v9 }
 0x5b8   : > { %v2633_v53 = vpop.xlane.xlu1 %2632  ;;  %3893 = vmatprep.subr.bf16.mxu0 %v4096_v35 }
 0x5b9   : > { %4282 = vpow2.f32 %v2670_v6  ;;  %v2650_v27 = vsub.f32 %v5814_v23, %v2633_v53  ;;  %v2678_v33 = vmul.f32 1.442695, %v2649_v37 }
 0x5ba   : > { %4284 = vpow2.f32 %v2674_v54  ;;  %v1889_v36 = vpop.permute.xlu0 %1888 }
 0x5bb   : > { %v5886_v14 = vpop.eup %4274  ;;  %1913 = vst.msk [vmem:[#allocation3] sm:$0xff] %vm1912_vm1, %v1889_v36  ;;  %3894 = vmatpush3.bf16.msra.mxu0 %v4096_v35  ;;  %v2680_v22 = vmul.f32 1.442695, %v2650_v27  ;;  %4286 = vpow2.f32 %v2678_v33 }
 0x5bc   : > { %v4277_v57 = vpop.eup %4276  ;;  %v2629_v49 = vpop.xlane.xlu1 %2628  ;;  %v2718_v43 = vpack.c.bf16 %v5886_v14, %v5880_v4  ;;  %3895 = vmatprep.subr.bf16.mxu0 %v4097_v51 }
 0x5bd   : > { %v2648_v23 = vsub.f32 %v5818_v18, %v2629_v49  ;;  %v2719_v61 = vpack.c.bf16 %v5883_v16, %v4277_v57  ;;  %4288 = vpow2.f32 %v2680_v22  ;;  %v4279_v56 = vpop.eup %4278 }
 0x5be   : > { %3877 = vmatprep.mubr.bf16.mxu0 %v2718_v43 }
 0x5bf   : > { %v2676_v59 = vmul.f32 1.442695, %v2648_v23  ;;  %3878 = vmatmul.mubr.bf16.gmra.mrb[84].mxu0 %v2719_v61  ;;  %v4281_v38 = vpop.eup %4280 }
 0x5c0   : > { %v1891_v10 = vpop.permute.xlu1 %1890  ;;  %3896 = vmatpush3.bf16.msra.mxu0 %v4097_v51 }
 0x5c1   : > { %4290 = vpow2.f32 %v2676_v59  ;;  %1914 = vst.msk [vmem:[#allocation3 + $0x8] sm:$0xff] %vm1912_vm1, %v1891_v10  ;;  %3897 = vmatprep.subr.bf16.mxu0 %v4098_v39 }
 0x5c2   : > { %4292 = vpow2.f32 %v2682_v12  ;;  %v2933_v52 = vld [vmem:[#allocation3] sm:$0xff] }
 0x5c3   : > { %v4283_v18 = vpop.eup %4282 }
 0x5c4   : > { %v4285_v28 = vpop.eup %4284  ;;  %v2720_v58 = vpack.c.bf16 %v4283_v18, %v4279_v56  ;;  %3898 = vmatpush3.bf16.msra.mxu0 %v4098_v39 }
 0x5c5   : > { %v2721_v41 = vpack.c.bf16 %v4285_v28, %v4281_v38  ;;  %3899 = vmatprep.subr.bf16.mxu0 %v4099_v0  ;;  %v4287_v55 = vpop.eup %4286 }
 0x5c6   : > { %3881 = vmatprep.mubr.bf16.mxu0 %v2720_v58 }
 0x5c7   : > { %3882 = vmatmul.mubr.bf16.gmra.mrb[88].mxu0 %v2721_v41  ;;  %v4289_v30 = vpop.eup %4288 }
 0x5c8   : > { %3900 = vmatpush3.bf16.msra.mxu0 %v4099_v0  ;;  %v2934_v6 = vld [vmem:[#allocation3 + $0x8] sm:$0xff] }
 0x5c9   : > { %3901 = vmatprep.subr.bf16.mxu0 %v4100_v8 }
 0x5cb   : > { %v4291_v34 = vpop.eup %4290 }
 0x5cc   : > { %v4293_v35 = vpop.eup %4292  ;;  %v2722_v25 = vpack.c.bf16 %v4287_v55, %v4291_v34  ;;  %3902 = vmatpush3.bf16.msra.mxu0 %v4100_v8 }
 0x5cd   : > { %v2723_v54 = vpack.c.bf16 %v4293_v35, %v4289_v30  ;;  %3903 = vmatprep.subr.bf16.mxu0 %v4101_v62 }
 0x5ce   : > { %3885 = vmatprep.mubr.bf16.mxu0 %v2722_v25 }
 0x5cf   : > { %3886 = vmatmul.mubr.bf16.gmra.mrb[92].mxu0 %v2723_v54 }
 0x5d0   : > { %2204 = vadd.xlane.f32.xlu0 %v5510_v63  ;;  %3905 = vmatprep.mubr.bf16.mxu0 %v2933_v52 }
 0x5d1   : > { %3904 = vmatpush3.bf16.msra.mxu0 %v4101_v62 }
 0x5d4   : > { %2206 = vadd.xlane.f32.xlu0 %v5517_v45 }
 0x5d6   : > { %2202 = vadd.xlane.f32.xlu1 %v5504_v11 }
 0x5d7   : > { %3906 = vmatmul.mubr.bf16.vlgmr.msra.gmra.mrb[96].mxu0 %v2934_v6 }
 0x5d8   : > { %2688 = vadd.xlane.f32.xlu0 %v5860_v19 }
 0x5da   : > { %2208 = vadd.xlane.f32.xlu1 %v5519_v32 }
 0x5dc   : > { %2684 = vadd.xlane.f32.xlu0 %v5855_v42 }
 0x5de   : > { %2690 = vadd.xlane.f32.xlu1 %v5862_v3 }
 0x5e0   : > { %2696 = vadd.xlane.f32.xlu0 %v4277_v57 }
 0x5e2   : > { %2686 = vadd.xlane.f32.xlu1 %v5852_v29 }
 0x5e4   : > { %2692 = vadd.xlane.f32.xlu0 %v5880_v4 }
 0x5e6   : > { %2698 = vadd.xlane.f32.xlu1 %v5883_v16 }
 0x5e8   : > { %2704 = vadd.xlane.f32.xlu0 %v4281_v38 }
 0x5ea   : > { %2694 = vadd.xlane.f32.xlu1 %v5886_v14 }
 0x5eb   : > { %v2189_v11 = vpop.xlane.xlu0 %2188 }
 0x5ec   : > { %2700 = vadd.xlane.f32.xlu0 %v4279_v56  ;;  %4294 = vrcp.f32 %v2189_v11 }
 0x5ee   : > { %2706 = vadd.xlane.f32.xlu1 %v4285_v28 }
 0x5ef   : > { %v2191_v63 = vpop.xlane.xlu0 %2190 }
 0x5f0   : > { %2712 = vadd.xlane.f32.xlu0 %v4289_v30 }
 0x5f1   : > { %v2187_v45 = vpop.xlane.xlu1 %2186 }
 0x5f2   : > { %4296 = vrcp.f32 %v2187_v45  ;;  %2702 = vadd.xlane.f32.xlu1 %v4283_v18 }
 0x5f3   : > { %v1893_v32 = vpop.permute.xlu0 %1892  ;;  %4298 = vrcp.f32 %v2191_v63 }
 0x5f4   : > { %1915 = vst.msk [vmem:[#allocation3 + $0x10] sm:$0xff] %vm1912_vm1, %v1893_v32  ;;  %2708 = vadd.xlane.f32.xlu0 %v4291_v34 }
 0x5f5   : > { %v2193_v29 = vpop.xlane.xlu1 %2192 }
 0x5f6   : > { %4300 = vrcp.f32 %v2193_v29  ;;  %2714 = vadd.xlane.f32.xlu1 %v4293_v35  ;;  %v4295_v19 = vpop.eup %4294 }
 0x5f7   : > { %v2340_v53 = vmul.f32 %v4295_v19, %v5698_v13  ;;  %v6178_v13 = vpack.c.bf16 %v5764_v48, %v5767_v24  ;;  %v6180_v24 = vld [vmem:[#allocation21_spill] sm:$0xff] }
 0x5f9   : > { %v1895_v42 = vpop.permute.xlu1 %1894 }
 0x5fa   : > { %1916 = vst.msk [vmem:[#allocation3 + $0x18] sm:$0xff] %vm1912_vm1, %v1895_v42  ;;  %2710 = vadd.xlane.f32.xlu1 %v4287_v55 }
 0x5fb   : > { %v2935_v3 = vld [vmem:[#allocation3 + $0x10] sm:$0xff] }
 0x5fc   : > { %v4297_v37 = vpop.eup %4296  ;;  %3909 = vmatprep.mubr.bf16.mxu0 %v2935_v3 }
 0x5fd   : > { %v2339_v51 = vmul.f32 %v4297_v37, %v5692_v31  ;;  %v4299_v4 = vpop.eup %4298  ;;  %v6179_v31 = vpack.c.bf16 %v5660_v20, %v5759_v50  ;;  %v6181_v50 = vld [vmem:[#allocation17_spill] sm:$0xff] }
 0x5fe   : > { %v2341_v9 = vmul.f32 %v4299_v4, %v5684_v26 }
 0x5ff   : > { %v2355_v27 = vpack.c.bf16 %v2340_v53, %v2339_v51 }
 0x600   : > { %v4301_v16 = vpop.eup %4300 }
 0x601   : > { %v2342_v36 = vmul.f32 %v4301_v16, %v5694_v5  ;;  %v2936_v14 = vld [vmem:[#allocation3 + $0x18] sm:$0xff]  ;;  %2363 = vst.msk [vmem:[#allocation3 + $0x40] sm:$0xff] %vm931_vm0, %v2355_v27 }
 0x602   : > { %3910 = vmatmul.mubr.bf16.gmra.mrb[100].mxu0 %v2936_v14 }
 0x603   : > { %v2356_v33 = vpack.c.bf16 %v2342_v36, %v2341_v9 }
 0x605   : > { %2364 = vst.msk [vmem:[#allocation3 + $0x48] sm:$0xff] %vm931_vm0, %v2356_v33 }
 0x60a   : > { %1900 = vrot.lane.b32.xlu0 %v6178_v13, %s4526_s21 }
 0x60b   : > { %1902 = vrot.lane.b32.xlu1 %v6179_v31, %s4526_s21 }
 0x624   : > { %v2197_v26 = vpop.xlane.xlu0 %2196 }
 0x625   : > { %4302 = vrcp.f32 %v2197_v26 }
 0x628   : > { %v2199_v57 = vpop.xlane.xlu0 %2198 }
 0x629   : > { %2212 = vadd.xlane.f32.xlu0 %v5596_v60 }
 0x62a   : > { %v2195_v5 = vpop.xlane.xlu1 %2194 }
 0x62b   : > { %4304 = vrcp.f32 %v2195_v5 }
 0x62c   : > { %v1897_v22 = vpop.permute.xlu0 %1896  ;;  %4306 = vrcp.f32 %v2199_v57 }
 0x62d   : > { %1917 = vst.msk [vmem:[#allocation3 + $0x20] sm:$0xff] %vm1912_vm1, %v1897_v22  ;;  %2214 = vadd.xlane.f32.xlu0 %v5598_v47 }
 0x62e   : > { %v2201_v48 = vpop.xlane.xlu1 %2200 }
 0x62f   : > { %4308 = vrcp.f32 %v2201_v48  ;;  %2210 = vadd.xlane.f32.xlu1 %v6180_v24  ;;  %v4303_v20 = vpop.eup %4302 }
 0x630   : > { %v2344_v23 = vmul.f32 %v4303_v20, %v5724_v1 }
 0x632   : > { %v1899_v49 = vpop.permute.xlu1 %1898 }
 0x633   : > { %1918 = vst.msk [vmem:[#allocation3 + $0x28] sm:$0xff] %vm1912_vm1, %v1899_v49  ;;  %2216 = vadd.xlane.f32.xlu1 %v6181_v50 }
 0x634   : > { %v2937_v43 = vld [vmem:[#allocation3 + $0x20] sm:$0xff] }
 0x635   : > { %v4305_v60 = vpop.eup %4304  ;;  %3913 = vmatprep.mubr.bf16.mxu0 %v2937_v43 }
 0x636   : > { %v2343_v61 = vmul.f32 %v4305_v60, %v5720_v40  ;;  %v4307_v39 = vpop.eup %4306 }
 0x637   : > { %v2345_v59 = vmul.f32 %v4307_v39, %v5718_v46 }
 0x638   : > { %v2357_v12 = vpack.c.bf16 %v2344_v23, %v2343_v61 }
 0x639   : > { %v4309_v47 = vpop.eup %4308 }
 0x63a   : > { %v2346_v10 = vmul.f32 %v4309_v47, %v5722_v7  ;;  %v2938_v56 = vld [vmem:[#allocation3 + $0x28] sm:$0xff]  ;;  %2365 = vst.msk [vmem:[#allocation3 + $0x50] sm:$0xff] %vm931_vm0, %v2357_v12 }
 0x63b   : > { %3914 = vmatmul.mubr.bf16.gmra.mrb[104].mxu0 %v2938_v56 }
 0x63c   : > { %v2358_v0 = vpack.c.bf16 %v2346_v10, %v2345_v59 }
 0x63e   : > { %2366 = vst.msk [vmem:[#allocation3 + $0x58] sm:$0xff] %vm931_vm0, %v2358_v0 }
 0x65d   : > { %v2205_v38 = vpop.xlane.xlu0 %2204 }
 0x65e   : > { %4310 = vrcp.f32 %v2205_v38 }
 0x661   : > { %v2207_v18 = vpop.xlane.xlu0 %2206 }
 0x663   : > { %v2203_v1 = vpop.xlane.xlu1 %2202 }
 0x664   : > { %4312 = vrcp.f32 %v2203_v1 }
 0x665   : > { %v2689_v40 = vpop.xlane.xlu0 %2688  ;;  %4314 = vrcp.f32 %v2207_v18 }
 0x667   : > { %v2209_v28 = vpop.xlane.xlu1 %2208 }
 0x668   : > { %4316 = vrcp.f32 %v2209_v28  ;;  %v4311_v41 = vpop.eup %4310 }
 0x669   : > { %v2685_v58 = vpop.xlane.xlu0 %2684  ;;  %v2348_v55 = vmul.f32 %v4311_v41, %v5748_v2  ;;  %4318 = vrcp.f32 %v2689_v40 }
 0x66a   : > { %4320 = vrcp.f32 %v2685_v58 }
 0x66b   : > { %v2691_v46 = vpop.xlane.xlu1 %2690 }
 0x66c   : > { %4322 = vrcp.f32 %v2691_v46 }
 0x66d   : > { %v2697_v7 = vpop.xlane.xlu0 %2696 }
 0x66e   : > { %v4313_v8 = vpop.eup %4312 }
 0x66f   : > { %v2347_v62 = vmul.f32 %v4313_v8, %v5742_v15  ;;  %v2687_v30 = vpop.xlane.xlu1 %2686  ;;  %v4315_v34 = vpop.eup %4314 }
 0x670   : > { %v2349_v52 = vmul.f32 %v4315_v34, %v5737_v17  ;;  %4324 = vrcp.f32 %v2687_v30 }
 0x671   : > { %v2693_v35 = vpop.xlane.xlu0 %2692  ;;  %v2359_v25 = vpack.c.bf16 %v2348_v55, %v2347_v62  ;;  %4326 = vrcp.f32 %v2697_v7 }
 0x672   : > { %v4317_v54 = vpop.eup %4316  ;;  %4328 = vrcp.f32 %v2693_v35 }
 0x673   : > { %v2350_v6 = vmul.f32 %v4317_v54, %v5744_v21  ;;  %v2699_v11 = vpop.xlane.xlu1 %2698  ;;  %2367 = vst.msk [vmem:[#allocation3 + $0x60] sm:$0xff] %vm931_vm0, %v2359_v25  ;;  %v4319_v3 = vpop.eup %4318 }
 0x674   : > { %v4321_v53 = vpop.eup %4320  ;;  %4330 = vrcp.f32 %v2699_v11 }
 0x675   : > { %v2705_v63 = vpop.xlane.xlu0 %2704  ;;  %v2360_v45 = vpack.c.bf16 %v2350_v6, %v2349_v52 }
 0x676   : > { %v4323_v4 = vpop.eup %4322 }
 0x677   : > { %v2695_v32 = vpop.xlane.xlu1 %2694  ;;  %2368 = vst.msk [vmem:[#allocation3 + $0x68] sm:$0xff] %vm931_vm0, %v2360_v45 }
 0x678   : > { %4332 = vrcp.f32 %v2695_v32 }
 0x679   : > { %v2701_v2 = vpop.xlane.xlu0 %2700  ;;  %4334 = vrcp.f32 %v2705_v63 }
 0x67a   : > { %v4325_v9 = vpop.eup %4324  ;;  %4336 = vrcp.f32 %v2701_v2 }
 0x67b   : > { %v2707_v15 = vpop.xlane.xlu1 %2706  ;;  %v4327_v48 = vpop.eup %4326 }
 0x67c   : > { %4338 = vrcp.f32 %v2707_v15  ;;  %v4329_v49 = vpop.eup %4328 }
 0x67d   : > { %v2713_v29 = vpop.xlane.xlu0 %2712 }
 0x67e   : > { %v4331_v43 = vpop.eup %4330 }
 0x67f   : > { %v2703_v42 = vpop.xlane.xlu1 %2702 }
 0x680   : > { %4340 = vrcp.f32 %v2703_v42 }
 0x681   : > { %v2709_v19 = vpop.xlane.xlu0 %2708  ;;  %4342 = vrcp.f32 %v2713_v29 }
 0x682   : > { %v4333_v23 = vpop.eup %4332  ;;  %4344 = vrcp.f32 %v2709_v19  ;;  %v5950_v19 = vld [vmem:[%s6090_s3] ss:$0 sm:$0xff] }
 0x683   : > { %v2715_v17 = vpop.xlane.xlu1 %2714  ;;  %v4335_v0 = vpop.eup %4334 }
 0x684   : > { %4346 = vrcp.f32 %v2715_v17  ;;  %v4337_v18 = vpop.eup %4336 }
 0x685   : > { %v3875_v21 = vpop.f32.mrb[80].mxu0  ;;  %v1901_v37 = vpop.permute.xlu0 %1900 }
 0x686   : > { %1919 = vst.msk [vmem:[#allocation3 + $0x30] sm:$0xff] %vm1912_vm1, %v1901_v37  ;;  %v2790_v51 = vpop.f32.mrb[81].mxu0  ;;  %v2871_v36 = vmul.f32 %v4319_v3, %v3875_v21  ;;  %v4339_v40 = vpop.eup %4338 }
 0x687   : > { %v3876_v27 = vpop.f32.mrb[82].mxu0  ;;  %v2711_v16 = vpop.xlane.xlu1 %2710  ;;  %v2869_v13 = vmul.f32 %v4321_v53, %v2790_v51 }
 0x688   : > { %v2872_v14 = vmul.f32 %v4323_v4, %v3876_v27  ;;  %v2793_v33 = vpop.f32.mrb[83].mxu0  ;;  %4348 = vrcp.f32 %v2711_v16 }
 0x689   : > { %v2870_v31 = vmul.f32 %v4325_v9, %v2793_v33 }
 0x68a   : > { %v2886_v26 = vpack.c.bf16 %v2872_v14, %v2871_v36  ;;  %v4341_v58 = vpop.eup %4340 }
 0x68b   : > { %v2885_v57 = vpack.c.bf16 %v2870_v31, %v2869_v13  ;;  %v1903_v5 = vpop.permute.xlu1 %1902  ;;  %v4343_v34 = vpop.eup %4342 }
 0x68c   : > { %1920 = vst.msk [vmem:[#allocation3 + $0x38] sm:$0xff] %vm1912_vm1, %v1903_v5  ;;  %2903 = vrot.lane.b32.xlu1 %v2886_v26, %s4526_s21  ;;  %v4345_v25 = vpop.eup %4344  ;;  %v6182_v26 = vld [vmem:[#allocation22_spill] sm:$0xff] }
 0x68d   : > { %2901 = vrot.lane.b32.xlu0 %v2885_v57, %s4526_s21  ;;  %v2939_v22 = vld [vmem:[#allocation3 + $0x30] sm:$0xff] }
 0x68e   : > { %3917 = vmatprep.mubr.bf16.mxu0 %v2939_v22  ;;  %v4347_v52 = vpop.eup %4346 }
 0x692   : > { %v3879_v24 = vpop.f32.mrb[84].mxu0  ;;  %v4349_v11 = vpop.eup %4348 }
 0x693   : > { %v2806_v20 = vpop.f32.mrb[85].mxu0  ;;  %v2940_v50 = vld [vmem:[#allocation3 + $0x38] sm:$0xff]  ;;  %v2875_v61 = vmul.f32 %v4327_v48, %v3879_v24  ;;  %v6183_v24 = vld [vmem:[#allocation18_spill] sm:$0xff] }
 0x694   : > { %v3880_v60 = vpop.f32.mrb[86].mxu0  ;;  %3918 = vmatmul.mubr.bf16.gmra.mrb[108].mxu0 %v2940_v50  ;;  %v2873_v47 = vmul.f32 %v4329_v49, %v2806_v20  ;;  %v6184_v20 = vld [vmem:[#allocation19_spill] sm:$0xff] }
 0x695   : > { %v2876_v39 = vmul.f32 %v4331_v43, %v3880_v60  ;;  %v2809_v12 = vpop.f32.mrb[87].mxu0 }
 0x696   : > { %v2874_v59 = vmul.f32 %v4333_v23, %v2809_v12 }
 0x697   : > { %v2888_v10 = vpack.c.bf16 %v2876_v39, %v2875_v61 }
 0x698   : > { %v2887_v56 = vpack.c.bf16 %v2874_v59, %v2873_v47 }
 0x699   : > { %2907 = vrot.lane.b32.xlu0 %v2888_v10, %s4526_s21 }
 0x69a   : > { %v3883_v38 = vpop.f32.mrb[88].mxu0  ;;  %2905 = vrot.lane.b32.xlu1 %v2887_v56, %s4526_s21 }
 0x69b   : > { %v2822_v1 = vpop.f32.mrb[89].mxu0  ;;  %v2879_v46 = vmul.f32 %v4335_v0, %v3883_v38 }
 0x69c   : > { %v3884_v28 = vpop.f32.mrb[90].mxu0  ;;  %v2877_v8 = vmul.f32 %v4337_v18, %v2822_v1 }
 0x69d   : > { %v2880_v41 = vmul.f32 %v4339_v40, %v3884_v28  ;;  %v2825_v7 = vpop.f32.mrb[91].mxu0 }
 0x69e   : > { %v2878_v55 = vmul.f32 %v4341_v58, %v2825_v7 }
 0x69f   : > { %v2890_v62 = vpack.c.bf16 %v2880_v41, %v2879_v46 }
 0x6a0   : > { %v2889_v30 = vpack.c.bf16 %v2878_v55, %v2877_v8 }
 0x6a1   : > { %2911 = vrot.lane.b32.xlu0 %v2890_v62, %s4526_s21 }
 0x6a2   : > { %v3887_v35 = vpop.f32.mrb[92].mxu0  ;;  %2909 = vrot.lane.b32.xlu1 %v2889_v30, %s4526_s21 }
 0x6a3   : > { %v2838_v54 = vpop.f32.mrb[93].mxu0  ;;  %v2883_v63 = vmul.f32 %v4343_v34, %v3887_v35 }
 0x6a4   : > { %v3888_v6 = vpop.f32.mrb[94].mxu0  ;;  %v2881_v2 = vmul.f32 %v4345_v25, %v2838_v54 }
 0x6a5   : > { %v2884_v45 = vmul.f32 %v4347_v52, %v3888_v6  ;;  %v2841_v32 = vpop.f32.mrb[95].mxu0 }
 0x6a6   : > { %v2882_v15 = vmul.f32 %v4349_v11, %v2841_v32 }
 0x6a7   : > { %v2892_v29 = vpack.c.bf16 %v2884_v45, %v2883_v63 }
 0x6a8   : > { %v2891_v42 = vpack.c.bf16 %v2882_v15, %v2881_v2 }
 0x6a9   : > { %2915 = vrot.lane.b32.xlu0 %v2892_v29, %s4526_s21 }
 0x6aa   : > { %v3907_v17 = vpop.f32.mrb[96].mxu0  ;;  %2913 = vrot.lane.b32.xlu1 %v2891_v42, %s4526_s21 }
 0x6ab   : > { %v3063_v3 = vadd.f32 %v3907_v17, %v5950_v19  ;;  %v3054_v21 = vpop.f32.mrb[97].mxu0 }
 0x6ac   : > { %v3055_v37 = vadd.f32 %v5950_v19, %v3054_v21  ;;  %v3908_v53 = vpop.f32.mrb[98].mxu0 }
 0x6ad   : > { %3183 = vst [vmem:[%s5958_s6 + $0x10] sm:$0xff] %v3063_v3  ;;  %v3066_v51 = vadd.f32 %v3908_v53, %v5950_v19  ;;  %v3057_v4 = vpop.f32.mrb[99].mxu0 }
 0x6ae   : > { %3181 = vst [vmem:[%s5958_s6] sm:$0xff] %v3055_v37  ;;  %v3058_v27 = vadd.f32 %v5950_v19, %v3057_v4 }
 0x6af   : > { %3184 = vst [vmem:[%s5958_s6 + $0x18] sm:$0xff] %v3066_v51 }
 0x6b0   : > { %3182 = vst [vmem:[%s5958_s6 + $0x8] sm:$0xff] %v3058_v27 }
 0x6b6   : > { %v2213_v16 = vpop.xlane.xlu0 %2212 }
 0x6b7   : > { %4350 = vrcp.f32 %v2213_v16 }
 0x6ba   : > { %v2215_v9 = vpop.xlane.xlu0 %2214 }
 0x6bc   : > { %v2211_v36 = vpop.xlane.xlu1 %2210 }
 0x6bd   : > { %4352 = vrcp.f32 %v2211_v36 }
 0x6be   : > { %4354 = vrcp.f32 %v2215_v9 }
 0x6c0   : > { %v2217_v14 = vpop.xlane.xlu1 %2216 }
 0x6c1   : > { %4356 = vrcp.f32 %v2217_v14  ;;  %v4351_v33 = vpop.eup %4350 }
 0x6c2   : > { %v2352_v31 = vmul.f32 %v4351_v33, %v5777_v44 }
 0x6c7   : > { %v4353_v13 = vpop.eup %4352 }
 0x6c8   : > { %v2351_v57 = vmul.f32 %v4353_v13, %v6182_v26  ;;  %v4355_v5 = vpop.eup %4354 }
 0x6c9   : > { %v2353_v49 = vmul.f32 %v4355_v5, %v6183_v24 }
 0x6ca   : > { %v2361_v22 = vpack.c.bf16 %v2352_v31, %v2351_v57 }
 0x6cb   : > { %v4357_v48 = vpop.eup %4356 }
 0x6cc   : > { %v2354_v50 = vmul.f32 %v4357_v48, %v6184_v20  ;;  %2369 = vst.msk [vmem:[#allocation3 + $0x70] sm:$0xff] %vm931_vm0, %v2361_v22 }
 0x6ce   : > { %v2362_v43 = vpack.c.bf16 %v2354_v50, %v2353_v49 }
 0x6d0   : > { %2370 = vst.msk [vmem:[#allocation3 + $0x78] sm:$0xff] %vm931_vm0, %v2362_v43 }
 0x6d5   : > { %v3911_v60 = vpop.f32.mrb[100].mxu0 }
 0x6d6   : > { %v3079_v44 = vadd.f32 %v3911_v60, %v5950_v19  ;;  %v3070_v23 = vpop.f32.mrb[101].mxu0 }
 0x6d7   : > { %v3071_v61 = vadd.f32 %v5950_v19, %v3070_v23  ;;  %v3912_v39 = vpop.f32.mrb[102].mxu0 }
 0x6d8   : > { %3187 = vst [vmem:[%s5958_s6 + $0x30] sm:$0xff] %v3079_v44  ;;  %v3082_v12 = vadd.f32 %v3912_v39, %v5950_v19  ;;  %v3073_v47 = vpop.f32.mrb[103].mxu0 }
 0x6d9   : > { %3185 = vst [vmem:[%s5958_s6 + $0x20] sm:$0xff] %v3071_v61  ;;  %v3074_v59 = vadd.f32 %v5950_v19, %v3073_v47 }
 0x6da   : > { %3188 = vst [vmem:[%s5958_s6 + $0x38] sm:$0xff] %v3082_v12 }
 0x6db   : > { %3186 = vst [vmem:[%s5958_s6 + $0x28] sm:$0xff] %v3074_v59 }
 0x6fe   : > { %v2904_v10 = vpop.permute.xlu1 %2903 }
 0x6ff   : > { %2926 = vst.msk [vmem:[#allocation3 + $0x48] sm:$0xff] %vm1912_vm1, %v2904_v10  ;;  %v2902_v56 = vpop.permute.xlu0 %2901 }
 0x700   : > { %2925 = vst.msk [vmem:[#allocation3 + $0x40] sm:$0xff] %vm1912_vm1, %v2902_v56 }
 0x706   : > { %v2942_v38 = vld [vmem:[#allocation3 + $0x48] sm:$0xff] }
 0x707   : > { %v2941_v0 = vld [vmem:[#allocation3 + $0x40] sm:$0xff] }
 0x708   : > { %3921 = vmatprep.mubr.bf16.mxu0 %v2941_v0 }
 0x709   : > { %3922 = vmatmul.mubr.bf16.gmra.mrb[112].mxu0 %v2942_v38 }
 0x70b   : > { %v2908_v18 = vpop.permute.xlu0 %2907 }
 0x70c   : > { %2928 = vst.msk [vmem:[#allocation3 + $0x58] sm:$0xff] %vm1912_vm1, %v2908_v18  ;;  %v2906_v1 = vpop.permute.xlu1 %2905 }
 0x70d   : > { %2927 = vst.msk [vmem:[#allocation3 + $0x50] sm:$0xff] %vm1912_vm1, %v2906_v1 }
 0x70e   : > { %v3915_v40 = vpop.f32.mrb[104].mxu0 }
 0x70f   : > { %v3095_v28 = vadd.f32 %v3915_v40, %v5950_v19  ;;  %v3086_v58 = vpop.f32.mrb[105].mxu0 }
 0x710   : > { %v3087_v46 = vadd.f32 %v5950_v19, %v3086_v58  ;;  %v3916_v41 = vpop.f32.mrb[106].mxu0 }
 0x711   : > { %3191 = vst [vmem:[%s5958_s6 + $0x50] sm:$0xff] %v3095_v28  ;;  %v3098_v7 = vadd.f32 %v3916_v41, %v5950_v19  ;;  %v3089_v8 = vpop.f32.mrb[107].mxu0 }
 0x712   : > { %3189 = vst [vmem:[%s5958_s6 + $0x40] sm:$0xff] %v3087_v46  ;;  %v3090_v55 = vadd.f32 %v5950_v19, %v3089_v8 }
 0x713   : > { %3192 = vst [vmem:[%s5958_s6 + $0x58] sm:$0xff] %v3098_v7  ;;  %v2912_v62 = vpop.permute.xlu0 %2911  ;;  %v2944_v35 = vld [vmem:[#allocation3 + $0x58] sm:$0xff] }
 0x714   : > { %3190 = vst [vmem:[%s5958_s6 + $0x48] sm:$0xff] %v3090_v55  ;;  %2930 = vst.msk [vmem:[#allocation3 + $0x68] sm:$0xff] %vm1912_vm1, %v2912_v62  ;;  %v2910_v30 = vpop.permute.xlu1 %2909  ;;  %v2943_v34 = vld [vmem:[#allocation3 + $0x50] sm:$0xff] }
 0x715   : > { %2929 = vst.msk [vmem:[#allocation3 + $0x60] sm:$0xff] %vm1912_vm1, %v2910_v30  ;;  %3925 = vmatprep.mubr.bf16.mxu0 %v2943_v34 }
 0x716   : > { %3926 = vmatmul.mubr.bf16.gmra.mrb[116].mxu0 %v2944_v35 }
 0x71b   : > { %v2916_v25 = vpop.permute.xlu0 %2915  ;;  %v2946_v6 = vld [vmem:[#allocation3 + $0x68] sm:$0xff] }
 0x71c   : > { %2932 = vst.msk [vmem:[#allocation3 + $0x78] sm:$0xff] %vm1912_vm1, %v2916_v25  ;;  %v2914_v54 = vpop.permute.xlu1 %2913  ;;  %v2945_v52 = vld [vmem:[#allocation3 + $0x60] sm:$0xff] }
 0x71d   : > { %2931 = vst.msk [vmem:[#allocation3 + $0x70] sm:$0xff] %vm1912_vm1, %v2914_v54  ;;  %3929 = vmatprep.mubr.bf16.mxu0 %v2945_v52 }
 0x71e   : > { %3930 = vmatmul.mubr.bf16.gmra.mrb[120].mxu0 %v2946_v6 }
 0x723   : > { %v2948_v63 = vld [vmem:[#allocation3 + $0x78] sm:$0xff] }
 0x724   : > { %v2947_v11 = vld [vmem:[#allocation3 + $0x70] sm:$0xff] }
 0x725   : > { %3933 = vmatprep.mubr.bf16.mxu0 %v2947_v11 }
 0x726   : > { %3934 = vmatmul.mubr.bf16.gmra.mrb[124].mxu0 %v2948_v63 }
 0x767   : > { %v3919_v45 = vpop.f32.mrb[108].mxu0 }
 0x768   : > { %v3111_v32 = vadd.f32 %v3919_v45, %v5950_v19  ;;  %v3102_v2 = vpop.f32.mrb[109].mxu0 }
 0x769   : > { %v3103_v15 = vadd.f32 %v5950_v19, %v3102_v2  ;;  %v3920_v29 = vpop.f32.mrb[110].mxu0 }
 0x76a   : > { %3195 = vst [vmem:[%s5958_s6 + $0x70] sm:$0xff] %v3111_v32  ;;  %v3114_v42 = vadd.f32 %v3920_v29, %v5950_v19  ;;  %v3105_v17 = vpop.f32.mrb[111].mxu0 }
 0x76b   : > { %3193 = vst [vmem:[%s5958_s6 + $0x60] sm:$0xff] %v3103_v15  ;;  %v3106_v3 = vadd.f32 %v5950_v19, %v3105_v17 }
 0x76c   : > { %3196 = vst [vmem:[%s5958_s6 + $0x78] sm:$0xff] %v3114_v42 }
 0x76d   : > { %3194 = vst [vmem:[%s5958_s6 + $0x68] sm:$0xff] %v3106_v3 }
 0x7dc   : > { %v3923_v21 = vpop.f32.mrb[112].mxu0 }
 0x7dd   : > { %v3127_v37 = vadd.f32 %v3923_v21, %v5950_v19  ;;  %v3118_v53 = vpop.f32.mrb[113].mxu0 }
 0x7de   : > { %v3119_v51 = vadd.f32 %v5950_v19, %v3118_v53  ;;  %v3924_v4 = vpop.f32.mrb[114].mxu0 }
 0x7df   : > { %3199 = vst [vmem:[%s5958_s6 + $0x90] sm:$0xff] %v3127_v37  ;;  %v3130_v27 = vadd.f32 %v3924_v4, %v5950_v19  ;;  %v3121_v16 = vpop.f32.mrb[115].mxu0 }
 0x7e0   : > { %3197 = vst [vmem:[%s5958_s6 + $0x80] sm:$0xff] %v3119_v51  ;;  %v3122_v9 = vadd.f32 %v5950_v19, %v3121_v16 }
 0x7e1   : > { %3200 = vst [vmem:[%s5958_s6 + $0x98] sm:$0xff] %v3130_v27 }
 0x7e2   : > { %3198 = vst [vmem:[%s5958_s6 + $0x88] sm:$0xff] %v3122_v9 }
 0x7e9   : > { %v3927_v36 = vpop.f32.mrb[116].mxu0 }
 0x7ea   : > { %v3143_v14 = vadd.f32 %v3927_v36, %v5950_v19  ;;  %v3134_v33 = vpop.f32.mrb[117].mxu0 }
 0x7eb   : > { %v3135_v13 = vadd.f32 %v5950_v19, %v3134_v33  ;;  %v3928_v31 = vpop.f32.mrb[118].mxu0 }
 0x7ec   : > { %3203 = vst [vmem:[%s5958_s6 + $0xb0] sm:$0xff] %v3143_v14  ;;  %v3146_v26 = vadd.f32 %v3928_v31, %v5950_v19  ;;  %v3137_v57 = vpop.f32.mrb[119].mxu0 }
 0x7ed   : > { %3201 = vst [vmem:[%s5958_s6 + $0xa0] sm:$0xff] %v3135_v13  ;;  %v3138_v5 = vadd.f32 %v5950_v19, %v3137_v57 }
 0x7ee   : > { %3204 = vst [vmem:[%s5958_s6 + $0xb8] sm:$0xff] %v3146_v26 }
 0x7ef   : > { %3202 = vst [vmem:[%s5958_s6 + $0xa8] sm:$0xff] %v3138_v5 }
 0x7f1   : > { %v3931_v22 = vpop.f32.mrb[120].mxu0 }
 0x7f2   : > { %v3159_v48 = vadd.f32 %v3931_v22, %v5950_v19  ;;  %v3150_v24 = vpop.f32.mrb[121].mxu0 }
 0x7f3   : > { %v3151_v49 = vadd.f32 %v5950_v19, %v3150_v24  ;;  %v3932_v20 = vpop.f32.mrb[122].mxu0 }
 0x7f4   : > { %3207 = vst [vmem:[%s5958_s6 + $0xd0] sm:$0xff] %v3159_v48  ;;  %v3162_v50 = vadd.f32 %v3932_v20, %v5950_v19  ;;  %v3153_v43 = vpop.f32.mrb[123].mxu0 }
 0x7f5   : > { %3205 = vst [vmem:[%s5958_s6 + $0xc0] sm:$0xff] %v3151_v49  ;;  %v3154_v60 = vadd.f32 %v5950_v19, %v3153_v43 }
 0x7f6   : > { %3208 = vst [vmem:[%s5958_s6 + $0xd8] sm:$0xff] %v3162_v50 }
 0x7f7   : > { %3206 = vst [vmem:[%s5958_s6 + $0xc8] sm:$0xff] %v3154_v60 }
 0x7f9   : > { %v3935_v44 = vpop.f32.mrb[124].mxu0 }
 0x7fa   : > { %v3175_v23 = vadd.f32 %v3935_v44, %v5950_v19  ;;  %v3166_v61 = vpop.f32.mrb[125].mxu0 }
 0x7fb   : > { %v3167_v39 = vadd.f32 %v5950_v19, %v3166_v61  ;;  %v3936_v12 = vpop.f32.mrb[126].mxu0 }
 0x7fc   : > { %3211 = vst [vmem:[%s5958_s6 + $0xf0] sm:$0xff] %v3175_v23  ;;  %v3178_v47 = vadd.f32 %v3936_v12, %v5950_v19  ;;  %v3169_v59 = vpop.f32.mrb[127].mxu0 }
 0x7fd   : > { %3209 = vst [vmem:[%s5958_s6 + $0xe0] sm:$0xff] %v3167_v39  ;;  %v3170_v10 = vadd.f32 %v5950_v19, %v3169_v59 }
 0x7fe   : > { %3212 = vst [vmem:[%s5958_s6 + $0xf8] sm:$0xff] %v3178_v47 }
 0x7ff   : > { %3210 = vst [vmem:[%s5958_s6 + $0xe8] sm:$0xff] %v3170_v10 }
 0x800   : > { %4457 = shalt.err (!%p4454_p2)
}
 0x801   : > { %s4458_s10 = scalar_lea.hbm %s6037_s28, 4096  ;;  %s4462_s21 = scalar_lea.hbm %s6091_s4, 8192 }
 0x802   : > { %p4459_p13 = scmp.ne.s32.totalorder %s6037_s28, %s4458_s10  ;;  %p4463_p4 = scmp.lt.u32.totalorder %s6037_s28, %s6091_s4 }
 0x803   : > { %p4464_p7 = scmp.lt.u32.totalorder %s4462_s21, %s4458_s10  ;;  %p4466_p11 = scmp.lt.u32.totalorder %s4458_s10, %s6037_s28 }
 0x804   : > { %p4460_p6 = pnand %p4459_p13, %p6185_p0 }
 0x805   : > { %p4465_p8 = por %p4464_p7, %p4463_p4 }
 0x806   : > { %p4461_p10 = pneg %p4460_p6 }
 0x807   : > { %p4467_p1 = por %p4466_p11, %p4465_p8 }
 0x809   : > { %p4468_p3 = pnand %p4467_p1, %p4461_p10 }
 0x80b   : > { %4471 = shalt.err (!%p4468_p3)
}
 0x80c   : > { %s4528_s6 = smov 128   ;;  %s4529_s25 = smov 8  }
 0x80d   : > { %3995 = dma.vmem_to_hbm [thread:$0]  (%p6185_p0), %s6039_s7, 4096, %s6037_s28, %s3214_s19, %s4528_s6, %s4528_s6, %s4529_s25  }
 0x80e PF: > { %s3243_s24 = sand.u32 1, %s4502_s15   ;;  %p6186_p5 = scmp.ne.s32.totalorder %s6118_s22, 0 }
 0x80f   : > { %p6187_p9 = scmp.ge.s32.totalorder %s4514_s18, 2  ;;  %s3244_s26 = scalar_lea.sflag [#allocation6], %s3243_s24 }
 0x811   : > { %p4009_p12 = pnand %p6187_p9, %p6186_p5 }
 0x813   : > { %4497 = dma.done.wait (!%p4009_p12), %s3244_s26, 4096  }
 0x814   : > { %4499 = vsyncadd (!%p4009_p12), %s3244_s26, 4294963200  ;;  %p18_p2 = scmp.ge.s32.totalorder %s4665_s11, 4   ;;  %s6188_s15 = smov %s4506_s16 }
 0x815   : > { %s6189_s16 = smov %s4510_s17  ;;  %s6190_s17 = smov %s4674_s14 }
 0x816   : > { %s6191_s18 = smov %s4665_s11  ;;  %20 = sbr.rel (!%p18_p2) target bundleno = 6 (0x6), region = 89 }
 0x81d   :  { %3249 = vsyncpa [#allocation5], 1 }
 0x81e   :  { %3251 = vsyncpa [#allocation5 + $0x1], 1 }
 0x81f   :  { %3252 = vsyncpa [#allocation8], 1 }
 0x820   :  { %3253 = vsyncpa [#allocation6], 1 }
 0x821   :  { %3255 = vsyncpa [#allocation6 + $0x1], 1 }

</bundles_post_ra>
